<compile_context>
chip_gen: v7x
topology: tpu7x:2x2x1
jax: 0.10.0
libtpu: 0.0.40
codegen_flags: <defaults>
</compile_context>

<pallas_src>
import functools

import jax
import jax.numpy as jnp
from jax import lax
from jax.experimental import pallas as pl
from jax.experimental.pallas import tpu as pltpu


# ------------------------------ fused kernel ------------------------------- #

def _pool_res_kernel(xph_ref, wp_ref, bp_ref, wb_ref, bb_ref, o_ref,
                     hpad_ref, tpad_ref, *, cin, cout, Ho, Wo):
    """Fused pool_conv + ResidualAConv for one batch sample.

    xph_ref : (1, 4, Ho+1, Wo+1, Cin) bf16  stride-2 phase planes of the
              zero-padded input; phase p = 2*(ky % 2) + (kx % 2).
    wp_ref  : (3, 3, Cin, Cout)       bf16  pool conv weights * BN scale
    bp_ref  : (1, Cout)               f32   pool conv BN bias
    wb_ref  : (4, 3, 3, Cout, Cout)   bf16  branch conv weights * BN scale
    bb_ref  : (4, 1, Cout)            f32   branch BN biases
    o_ref   : (1, Ho, Wo, Cout)       f32   module output
    hpad_ref, tpad_ref : (Ho+2, Wo+2, Cout) f32 VMEM scratch holding the
              zero-padded on-chip feature maps between the fused convolutions.
    """
    M = Ho * Wo
    xph = xph_ref[0]          # (4, Ho+1, Wo+1, Cin)   bf16
    wp = wp_ref[...]          # (3, 3, Cin, Cout)      bf16
    wb = wb_ref[...]          # (4, 3, 3, Cout, Cout)  bf16
    bb = bb_ref[...]          # (4, 1, Cout)           f32

    # ---- 1) pool_conv: 3x3 / stride 2 / pad 1 conv + BN affine (no act) ----
    acc = jnp.zeros((M, cout), jnp.float32)
    for ky in range(3):
        ry, dy = ky % 2, ky // 2
        for kx in range(3):
            rx, dx = kx % 2, kx // 2
            win = xph[2 * ry + rx, dy:dy + Ho, dx:dx + Wo, :]   # (Ho, Wo, Cin)
            acc = acc + jnp.dot(win.reshape(M, cin), wp[ky, kx],
                                preferred_element_type=jnp.float32)
    h = acc + bp_ref[...]                                       # (M, Cout) f32

    # Zero-padded copies of the on-chip feature maps for the 3x3 branch convs.
    hpad_ref[...] = jnp.zeros_like(hpad_ref)
    tpad_ref[...] = jnp.zeros_like(tpad_ref)
    hpad_ref[1:Ho + 1, 1:Wo + 1, :] = h.reshape(Ho, Wo, cout)
    h_src = hpad_ref[...].astype(jnp.bfloat16)                  # (Ho+2, Wo+2, C)

    def conv3x3_bn_silu(src, widx):
        """3x3 / stride 1 / pad 1 conv (BN scale pre-folded) + bias + SiLU."""
        a = jnp.zeros((M, cout), jnp.float32)
        for ky in range(3):
            for kx in range(3):
                win = src[ky:ky + Ho, kx:kx + Wo, :]            # (Ho, Wo, C)
                a = a + jnp.dot(win.reshape(M, cout), wb[widx, ky, kx],
                                preferred_element_type=jnp.float32)
        a = a + bb[widx]
        return a * jax.nn.sigmoid(a)                            # SiLU

    # ---- 2) ResidualAConv (skip = Identity) --------------------------------
    out = h
    for br in range(2):
        t = conv3x3_bn_silu(h_src, 2 * br)
        tpad_ref[1:Ho + 1, 1:Wo + 1, :] = t.reshape(Ho, Wo, cout)
        out = out + conv3x3_bn_silu(tpad_ref[...].astype(jnp.bfloat16),
                                    2 * br + 1)

    # ---- 3) Dropout2d(p=0.0) == identity ------------------------------------
    o_ref[0] = out.reshape(Ho, Wo, cout).astype(o_ref.dtype)


# -------------------------- PoolResidualConv forward ----------------------- #

def pool_residual_conv_forward(x_nchw, params):
    """Full forward pass. Input/output NCHW (PyTorch convention)."""
    N, Cin, H, W = x_nchw.shape
    assert H % 2 == 0 and W % 2 == 0, "even spatial dims expected (stride-2)"
    Cout = params['pool_w'].shape[-1]
    Ho, Wo = H // 2, W // 2
    Hp, Wp = Ho + 1, Wo + 1                   # phase-plane size = (H+2)//2

    # NCHW -> NHWC, zero-pad by 1, split into the 4 stride-2 phases.
    # Pure data movement, 1x the input bytes (replaces the old 9x im2col).
    x = jnp.transpose(x_nchw, (0, 2, 3, 1))
    xpad = jnp.pad(x, ((0, 0), (1, 1), (1, 1), (0, 0)))
    xph = xpad.reshape(N, Hp, 2, Wp, 2, Cin).transpose(0, 2, 4, 1, 3, 5)
    xph = xph.reshape(N, 4, Hp, Wp, Cin).astype(jnp.bfloat16)

    # Fold BN scale into conv weights (bf16 MXU operands); bias stays f32.
    wp = (params['pool_w'] * params['pool_scale'][None, None, None, :]
          ).astype(jnp.bfloat16)
    bp = params['pool_bias'].reshape(1, Cout).astype(jnp.float32)
    w_list, b_list = [], []
    for br in params['branches']:
        for j in range(2):
            w_list.append(br[f'w{j}'] * br[f's{j}'][None, None, None, :])
            b_list.append(br[f'b{j}'])
    wb = jnp.stack(w_list).astype(jnp.bfloat16)          # (4, 3, 3, Cout, Cout)
    bb = jnp.stack(b_list).reshape(4, 1, Cout).astype(jnp.float32)

    kernel = functools.partial(_pool_res_kernel,
                               cin=Cin, cout=Cout, Ho=Ho, Wo=Wo)
    out = pl.pallas_call(
        kernel,
        grid=(N,),                                       # one sample per step
        in_specs=[
            pl.BlockSpec((1, 4, Hp, Wp, Cin), lambda n: (n, 0, 0, 0, 0)),
            pl.BlockSpec((3, 3, Cin, Cout), lambda n: (0, 0, 0, 0)),
            pl.BlockSpec((1, Cout), lambda n: (0, 0)),
            pl.BlockSpec((4, 3, 3, Cout, Cout), lambda n: (0, 0, 0, 0, 0)),
            pl.BlockSpec((4, 1, Cout), lambda n: (0, 0, 0)),
        ],
        out_specs=pl.BlockSpec((1, Ho, Wo, Cout), lambda n: (n, 0, 0, 0)),
        out_shape=jax.ShapeDtypeStruct((N, Ho, Wo, Cout), jnp.float32),
        scratch_shapes=[
            pltpu.VMEM((Ho + 2, Wo + 2, Cout), jnp.float32),   # padded h
            pltpu.VMEM((Ho + 2, Wo + 2, Cout), jnp.float32),   # padded t
        ],
        compiler_params=pltpu.CompilerParams(
            dimension_semantics=("parallel",)),    # batch axis -> both v7x TCs
    )(xph, wp, bp, wb, bb)

    return jnp.transpose(out, (0, 3, 1, 2))              # NHWC -> NCHW


# ------------------------------ references (JAX) ---------------------------- #

def _ref_forward_bf16(x_nchw, params):
    """Same numerics as the kernel: BN scale folded into the weights, conv
    operands in bf16, f32 accumulation, bias/SiLU/residual adds in f32."""
    def conv(x_f32, w_f32, scale, stride):
        w = (w_f32 * scale[None, None, None, :]).astype(jnp.bfloat16)
        return lax.conv_general_dilated(
            x_f32.astype(jnp.bfloat16), w,
            window_strides=(stride, stride), padding=((1, 1), (1, 1)),
            dimension_numbers=('NCHW', 'HWIO', 'NCHW'),
            preferred_element_type=jnp.float32)

    silu = lambda v: v * jax.nn.sigmoid(v)
    add_bias = lambda v, b: v + b[None, :, None, None]

    h = add_bias(conv(x_nchw, params['pool_w'], params['pool_scale'], 2),
                 params['pool_bias'])
    out = h
    for br in params['branches']:
        t = silu(add_bias(conv(h, br['w0'], br['s0'], 1), br['b0']))
        t = silu(add_bias(conv(t, br['w1'], br['s1'], 1), br['b1']))
        out = out + t
    return out


def _ref_forward_f32(x_nchw, params):
    """Pure-f32 module semantics (BN as affine with running stats)."""
    def conv(x, w_hwio, stride):
        return lax.conv_general_dilated(
            x, w_hwio, window_strides=(stride, stride),
            padding=((1, 1), (1, 1)),
            dimension_numbers=('NCHW', 'HWIO', 'NCHW'),
            precision=lax.Precision.HIGHEST)

    def bn(x, scale, bias):
        return x * scale[None, :, None, None] + bias[None, :, None, None]

    silu = lambda v: v * jax.nn.sigmoid(v)

    h = bn(conv(x_nchw, params['pool_w'], 2),
           params['pool_scale'], params['pool_bias'])
    out = h
    for br in params['branches']:
        t = silu(bn(conv(h, br['w0'], 1), br['s0'], br['b0']))
        t = silu(bn(conv(t, br['w1'], 1), br['s1'], br['b1']))
        out = out + t
    return out


# ------------------------------- param init --------------------------------- #

def _make_bn_affine(key, c, eps=1e-5):
    k1, k2, k3, k4 = jax.random.split(key, 4)
    gamma = jax.random.uniform(k1, (c,), minval=0.8, maxval=1.2)
    beta = jax.random.normal(k2, (c,)) * 0.05
    running_mean = jax.random.normal(k3, (c,)) * 0.05
    running_var = jax.random.uniform(k4, (c,), minval=0.5, maxval=1.5)
    scale = gamma / jnp.sqrt(running_var + eps)
    bias = beta - running_mean * scale
    return scale.astype(jnp.float32), bias.astype(jnp.float32)


def init_params(key, cin, cout):
    keys = jax.random.split(key, 16)
    params = {}
    params['pool_w'] = (jax.random.normal(keys[0], (3, 3, cin, cout)) * 0.1
                        ).astype(jnp.float32)
    params['pool_scale'], params['pool_bias'] = _make_bn_affine(keys[1], cout)

    branches = []
    kidx = 2
    for _ in range(2):                                   # dilations = [1, 2]
        w0 = (jax.random.normal(keys[kidx], (3, 3, cout, cout)) * 0.1
              ).astype(jnp.float32)
        s0, b0 = _make_bn_affine(keys[kidx + 1], cout)
        w1 = (jax.random.normal(keys[kidx + 2], (3, 3, cout, cout)) * 0.1
              ).astype(jnp.float32)
        s1, b1 = _make_bn_affine(keys[kidx + 3], cout)
        branches.append(dict(w0=w0, s0=s0, b0=b0, w1=w1, s1=s1, b1=b1))
        kidx += 4
    params['branches'] = branches
    return params


# ----------------------------------- main ----------------------------------- #

if __name__ == "__main__":
    key = jax.random.PRNGKey(0)
    k_x, k_p = jax.random.split(key)

    N, Cin, Cout, H, W = 2, 4, 8, 16, 16
    x = jax.random.normal(k_x, (N, Cin, H, W), dtype=jnp.float32)
    params = init_params(k_p, Cin, Cout)

    fwd = jax.jit(pool_residual_conv_forward)
    out = jax.block_until_ready(fwd(x, params))
    assert out.shape == (N, Cout, H // 2, W // 2), out.shape

    # Tight check: reference with identical numerics (bf16 MXU operands,
    # BN scale folded into weights, f32 accumulation).
    ref_bf16 = jax.block_until_ready(_ref_forward_bf16(x, params))
    assert jnp.allclose(out, ref_bf16, rtol=2e-3, atol=2e-3), (
        float(jnp.max(jnp.abs(out - ref_bf16))))

    # Loose check: pure-f32 module semantics (tolerance accounts for the bf16
    # operand rounding introduced per the performance feedback).
    ref_f32 = jax.block_until_ready(_ref_forward_f32(x, params))
    assert jnp.allclose(out, ref_f32, rtol=5e-2, atol=5e-2), (
        float(jnp.max(jnp.abs(out - ref_f32))))

    print("KERNEL_OK")
</pallas_src>

<mosaic_0001>
module attributes {stable_mosaic.version = 11 : i64} {
  func.func @_pool_res_kernel(%arg0: i32, %arg1: memref<1x4x9x9x4xbf16, #tpu.memory_space<vmem>>, %arg2: memref<3x3x4x8xbf16, #tpu.memory_space<vmem>>, %arg3: memref<1x8xf32, #tpu.memory_space<vmem>>, %arg4: memref<4x3x3x8x8xbf16, #tpu.memory_space<vmem>>, %arg5: memref<4x1x8xf32, #tpu.memory_space<vmem>>, %arg6: memref<1x8x8x8xf32, #tpu.memory_space<vmem>>, %arg7: memref<10x10x8xf32, #tpu.memory_space<vmem>>, %arg8: memref<10x10x8xf32, #tpu.memory_space<vmem>>) attributes {dimension_semantics = [#tpu.dimension_semantics<parallel>], iteration_bounds = array<i64: 2>, scalar_prefetch = 0 : i64, scratch_operands = 2 : i64, tpu.core_type = #tpu.core_type<tc>, window_params = [{transform_indices = @transform_0, window_bounds = array<i64: 1, 4, 9, 9, 4>}, {pipeline_mode = #tpu.pipeline_mode<synchronous>, transform_indices = @transform_1, window_bounds = array<i64: 3, 3, 4, 8>}, {pipeline_mode = #tpu.pipeline_mode<synchronous>, transform_indices = @transform_2, window_bounds = array<i64: 1, 8>}, {pipeline_mode = #tpu.pipeline_mode<synchronous>, transform_indices = @transform_3, window_bounds = array<i64: 4, 3, 3, 8, 8>}, {pipeline_mode = #tpu.pipeline_mode<synchronous>, transform_indices = @transform_4, window_bounds = array<i64: 4, 1, 8>}, {transform_indices = @transform_5, window_bounds = array<i64: 1, 8, 8, 8>}]} {
    %c0 = arith.constant 0 : index
    %c0_0 = arith.constant 0 : index
    %c0_1 = arith.constant 0 : index
    %c0_2 = arith.constant 0 : index
    %c0_3 = arith.constant 0 : index
    %0 = vector.load %arg1[%c0, %c0_0, %c0_1, %c0_2, %c0_3] : memref<1x4x9x9x4xbf16, #tpu.memory_space<vmem>>, vector<1x4x9x9x4xbf16>
    %1 = vector.shape_cast %0 : vector<1x4x9x9x4xbf16> to vector<4x9x9x4xbf16>
    %c0_4 = arith.constant 0 : index
    %c0_5 = arith.constant 0 : index
    %c0_6 = arith.constant 0 : index
    %c0_7 = arith.constant 0 : index
    %2 = vector.load %arg2[%c0_4, %c0_5, %c0_6, %c0_7] : memref<3x3x4x8xbf16, #tpu.memory_space<vmem>>, vector<3x3x4x8xbf16>
    %c0_8 = arith.constant 0 : index
    %c0_9 = arith.constant 0 : index
    %c0_10 = arith.constant 0 : index
    %c0_11 = arith.constant 0 : index
    %c0_12 = arith.constant 0 : index
    %3 = vector.load %arg4[%c0_8, %c0_9, %c0_10, %c0_11, %c0_12] : memref<4x3x3x8x8xbf16, #tpu.memory_space<vmem>>, vector<4x3x3x8x8xbf16>
    %c0_13 = arith.constant 0 : index
    %c0_14 = arith.constant 0 : index
    %c0_15 = arith.constant 0 : index
    %4 = vector.load %arg5[%c0_13, %c0_14, %c0_15] : memref<4x1x8xf32, #tpu.memory_space<vmem>>, vector<4x1x8xf32>
    %cst = arith.constant 0.000000e+00 : f32
    %5 = vector.broadcast %cst : f32 to vector<64x8xf32>
    %6 = vector.extract_strided_slice %1 {offsets = [0, 0, 0, 0], sizes = [1, 8, 8, 4], strides = [1, 1, 1, 1]} : vector<4x9x9x4xbf16> to vector<1x8x8x4xbf16>
    %7 = vector.shape_cast %6 : vector<1x8x8x4xbf16> to vector<8x8x4xbf16>
    %8 = vector.shape_cast %7 : vector<8x8x4xbf16> to vector<64x4xbf16>
    %9 = vector.extract_strided_slice %2 {offsets = [0, 0, 0, 0], sizes = [1, 1, 4, 8], strides = [1, 1, 1, 1]} : vector<3x3x4x8xbf16> to vector<1x1x4x8xbf16>
    %10 = vector.shape_cast %9 : vector<1x1x4x8xbf16> to vector<4x8xbf16>
    %cst_16 = arith.constant dense<0.000000e+00> : vector<64x8xf32>
    %11 = tpu.matmul %8, %10, %cst_16 {dimension_numbers = #tpu.dot_dimension_numbers<[1], [0], [0], [1], [0, 0, 1, 1], [], []>} : vector<64x4xbf16>, vector<4x8xbf16>, vector<64x8xf32> -> vector<64x8xf32>
    %12 = arith.addf %5, %11 : vector<64x8xf32>
    %13 = vector.extract_strided_slice %1 {offsets = [1, 0, 0, 0], sizes = [1, 8, 8, 4], strides = [1, 1, 1, 1]} : vector<4x9x9x4xbf16> to vector<1x8x8x4xbf16>
    %14 = vector.shape_cast %13 : vector<1x8x8x4xbf16> to vector<8x8x4xbf16>
    %15 = vector.shape_cast %14 : vector<8x8x4xbf16> to vector<64x4xbf16>
    %16 = vector.extract_strided_slice %2 {offsets = [0, 1, 0, 0], sizes = [1, 1, 4, 8], strides = [1, 1, 1, 1]} : vector<3x3x4x8xbf16> to vector<1x1x4x8xbf16>
    %17 = vector.shape_cast %16 : vector<1x1x4x8xbf16> to vector<4x8xbf16>
    %cst_17 = arith.constant dense<0.000000e+00> : vector<64x8xf32>
    %18 = tpu.matmul %15, %17, %cst_17 {dimension_numbers = #tpu.dot_dimension_numbers<[1], [0], [0], [1], [0, 0, 1, 1], [], []>} : vector<64x4xbf16>, vector<4x8xbf16>, vector<64x8xf32> -> vector<64x8xf32>
    %19 = arith.addf %12, %18 : vector<64x8xf32>
    %20 = vector.extract_strided_slice %1 {offsets = [0, 0, 1, 0], sizes = [1, 8, 8, 4], strides = [1, 1, 1, 1]} : vector<4x9x9x4xbf16> to vector<1x8x8x4xbf16>
    %21 = vector.shape_cast %20 : vector<1x8x8x4xbf16> to vector<8x8x4xbf16>
    %22 = vector.shape_cast %21 : vector<8x8x4xbf16> to vector<64x4xbf16>
    %23 = vector.extract_strided_slice %2 {offsets = [0, 2, 0, 0], sizes = [1, 1, 4, 8], strides = [1, 1, 1, 1]} : vector<3x3x4x8xbf16> to vector<1x1x4x8xbf16>
    %24 = vector.shape_cast %23 : vector<1x1x4x8xbf16> to vector<4x8xbf16>
    %cst_18 = arith.constant dense<0.000000e+00> : vector<64x8xf32>
    %25 = tpu.matmul %22, %24, %cst_18 {dimension_numbers = #tpu.dot_dimension_numbers<[1], [0], [0], [1], [0, 0, 1, 1], [], []>} : vector<64x4xbf16>, vector<4x8xbf16>, vector<64x8xf32> -> vector<64x8xf32>
    %26 = arith.addf %19, %25 : vector<64x8xf32>
    %27 = vector.extract_strided_slice %1 {offsets = [2, 0, 0, 0], sizes = [1, 8, 8, 4], strides = [1, 1, 1, 1]} : vector<4x9x9x4xbf16> to vector<1x8x8x4xbf16>
    %28 = vector.shape_cast %27 : vector<1x8x8x4xbf16> to vector<8x8x4xbf16>
    %29 = vector.shape_cast %28 : vector<8x8x4xbf16> to vector<64x4xbf16>
    %30 = vector.extract_strided_slice %2 {offsets = [1, 0, 0, 0], sizes = [1, 1, 4, 8], strides = [1, 1, 1, 1]} : vector<3x3x4x8xbf16> to vector<1x1x4x8xbf16>
    %31 = vector.shape_cast %30 : vector<1x1x4x8xbf16> to vector<4x8xbf16>
    %cst_19 = arith.constant dense<0.000000e+00> : vector<64x8xf32>
    %32 = tpu.matmul %29, %31, %cst_19 {dimension_numbers = #tpu.dot_dimension_numbers<[1], [0], [0], [1], [0, 0, 1, 1], [], []>} : vector<64x4xbf16>, vector<4x8xbf16>, vector<64x8xf32> -> vector<64x8xf32>
    %33 = arith.addf %26, %32 : vector<64x8xf32>
    %34 = vector.extract_strided_slice %1 {offsets = [3, 0, 0, 0], sizes = [1, 8, 8, 4], strides = [1, 1, 1, 1]} : vector<4x9x9x4xbf16> to vector<1x8x8x4xbf16>
    %35 = vector.shape_cast %34 : vector<1x8x8x4xbf16> to vector<8x8x4xbf16>
    %36 = vector.shape_cast %35 : vector<8x8x4xbf16> to vector<64x4xbf16>
    %37 = vector.extract_strided_slice %2 {offsets = [1, 1, 0, 0], sizes = [1, 1, 4, 8], strides = [1, 1, 1, 1]} : vector<3x3x4x8xbf16> to vector<1x1x4x8xbf16>
    %38 = vector.shape_cast %37 : vector<1x1x4x8xbf16> to vector<4x8xbf16>
    %cst_20 = arith.constant dense<0.000000e+00> : vector<64x8xf32>
    %39 = tpu.matmul %36, %38, %cst_20 {dimension_numbers = #tpu.dot_dimension_numbers<[1], [0], [0], [1], [0, 0, 1, 1], [], []>} : vector<64x4xbf16>, vector<4x8xbf16>, vector<64x8xf32> -> vector<64x8xf32>
    %40 = arith.addf %33, %39 : vector<64x8xf32>
    %41 = vector.extract_strided_slice %1 {offsets = [2, 0, 1, 0], sizes = [1, 8, 8, 4], strides = [1, 1, 1, 1]} : vector<4x9x9x4xbf16> to vector<1x8x8x4xbf16>
    %42 = vector.shape_cast %41 : vector<1x8x8x4xbf16> to vector<8x8x4xbf16>
    %43 = vector.shape_cast %42 : vector<8x8x4xbf16> to vector<64x4xbf16>
    %44 = vector.extract_strided_slice %2 {offsets = [1, 2, 0, 0], sizes = [1, 1, 4, 8], strides = [1, 1, 1, 1]} : vector<3x3x4x8xbf16> to vector<1x1x4x8xbf16>
    %45 = vector.shape_cast %44 : vector<1x1x4x8xbf16> to vector<4x8xbf16>
    %cst_21 = arith.constant dense<0.000000e+00> : vector<64x8xf32>
    %46 = tpu.matmul %43, %45, %cst_21 {dimension_numbers = #tpu.dot_dimension_numbers<[1], [0], [0], [1], [0, 0, 1, 1], [], []>} : vector<64x4xbf16>, vector<4x8xbf16>, vector<64x8xf32> -> vector<64x8xf32>
    %47 = arith.addf %40, %46 : vector<64x8xf32>
    %48 = vector.extract_strided_slice %1 {offsets = [0, 1, 0, 0], sizes = [1, 8, 8, 4], strides = [1, 1, 1, 1]} : vector<4x9x9x4xbf16> to vector<1x8x8x4xbf16>
    %49 = vector.shape_cast %48 : vector<1x8x8x4xbf16> to vector<8x8x4xbf16>
    %50 = vector.shape_cast %49 : vector<8x8x4xbf16> to vector<64x4xbf16>
    %51 = vector.extract_strided_slice %2 {offsets = [2, 0, 0, 0], sizes = [1, 1, 4, 8], strides = [1, 1, 1, 1]} : vector<3x3x4x8xbf16> to vector<1x1x4x8xbf16>
    %52 = vector.shape_cast %51 : vector<1x1x4x8xbf16> to vector<4x8xbf16>
    %cst_22 = arith.constant dense<0.000000e+00> : vector<64x8xf32>
    %53 = tpu.matmul %50, %52, %cst_22 {dimension_numbers = #tpu.dot_dimension_numbers<[1], [0], [0], [1], [0, 0, 1, 1], [], []>} : vector<64x4xbf16>, vector<4x8xbf16>, vector<64x8xf32> -> vector<64x8xf32>
    %54 = arith.addf %47, %53 : vector<64x8xf32>
    %55 = vector.extract_strided_slice %1 {offsets = [1, 1, 0, 0], sizes = [1, 8, 8, 4], strides = [1, 1, 1, 1]} : vector<4x9x9x4xbf16> to vector<1x8x8x4xbf16>
    %56 = vector.shape_cast %55 : vector<1x8x8x4xbf16> to vector<8x8x4xbf16>
    %57 = vector.shape_cast %56 : vector<8x8x4xbf16> to vector<64x4xbf16>
    %58 = vector.extract_strided_slice %2 {offsets = [2, 1, 0, 0], sizes = [1, 1, 4, 8], strides = [1, 1, 1, 1]} : vector<3x3x4x8xbf16> to vector<1x1x4x8xbf16>
    %59 = vector.shape_cast %58 : vector<1x1x4x8xbf16> to vector<4x8xbf16>
    %cst_23 = arith.constant dense<0.000000e+00> : vector<64x8xf32>
    %60 = tpu.matmul %57, %59, %cst_23 {dimension_numbers = #tpu.dot_dimension_numbers<[1], [0], [0], [1], [0, 0, 1, 1], [], []>} : vector<64x4xbf16>, vector<4x8xbf16>, vector<64x8xf32> -> vector<64x8xf32>
    %61 = arith.addf %54, %60 : vector<64x8xf32>
    %62 = vector.extract_strided_slice %1 {offsets = [0, 1, 1, 0], sizes = [1, 8, 8, 4], strides = [1, 1, 1, 1]} : vector<4x9x9x4xbf16> to vector<1x8x8x4xbf16>
    %63 = vector.shape_cast %62 : vector<1x8x8x4xbf16> to vector<8x8x4xbf16>
    %64 = vector.shape_cast %63 : vector<8x8x4xbf16> to vector<64x4xbf16>
    %65 = vector.extract_strided_slice %2 {offsets = [2, 2, 0, 0], sizes = [1, 1, 4, 8], strides = [1, 1, 1, 1]} : vector<3x3x4x8xbf16> to vector<1x1x4x8xbf16>
    %66 = vector.shape_cast %65 : vector<1x1x4x8xbf16> to vector<4x8xbf16>
    %cst_24 = arith.constant dense<0.000000e+00> : vector<64x8xf32>
    %67 = tpu.matmul %64, %66, %cst_24 {dimension_numbers = #tpu.dot_dimension_numbers<[1], [0], [0], [1], [0, 0, 1, 1], [], []>} : vector<64x4xbf16>, vector<4x8xbf16>, vector<64x8xf32> -> vector<64x8xf32>
    %68 = arith.addf %61, %67 : vector<64x8xf32>
    %c0_25 = arith.constant 0 : index
    %c0_26 = arith.constant 0 : index
    %69 = vector.load %arg3[%c0_25, %c0_26] : memref<1x8xf32, #tpu.memory_space<vmem>>, vector<1x8xf32>
    %70 = vector.broadcast %69 : vector<1x8xf32> to vector<64x8xf32>
    %71 = arith.addf %68, %70 : vector<64x8xf32>
    %cst_27 = arith.constant 0.000000e+00 : f32
    %72 = vector.broadcast %cst_27 : f32 to vector<10x10x8xf32>
    %c0_28 = arith.constant 0 : index
    %c0_29 = arith.constant 0 : index
    %c0_30 = arith.constant 0 : index
    %73 = vector.load %arg7[%c0_28, %c0_29, %c0_30] : memref<10x10x8xf32, #tpu.memory_space<vmem>>, vector<10x10x8xf32>
    tpu.vector_store %arg7[%c0_28, %c0_29, %c0_30], %72 {strides = array<i32>} : memref<10x10x8xf32, #tpu.memory_space<vmem>>, vector<10x10x8xf32>,
    %cst_31 = arith.constant 0.000000e+00 : f32
    %74 = vector.broadcast %cst_31 : f32 to vector<10x10x8xf32>
    %c0_32 = arith.constant 0 : index
    %c0_33 = arith.constant 0 : index
    %c0_34 = arith.constant 0 : index
    %75 = vector.load %arg8[%c0_32, %c0_33, %c0_34] : memref<10x10x8xf32, #tpu.memory_space<vmem>>, vector<10x10x8xf32>
    tpu.vector_store %arg8[%c0_32, %c0_33, %c0_34], %74 {strides = array<i32>} : memref<10x10x8xf32, #tpu.memory_space<vmem>>, vector<10x10x8xf32>,
    %76 = vector.shape_cast %71 : vector<64x8xf32> to vector<8x8x8xf32>
    %c1 = arith.constant 1 : index
    %c1_35 = arith.constant 1 : index
    %c0_36 = arith.constant 0 : index
    %77 = vector.load %arg7[%c1, %c1_35, %c0_36] : memref<10x10x8xf32, #tpu.memory_space<vmem>>, vector<8x8x8xf32>
    tpu.vector_store %arg7[%c1, %c1_35, %c0_36], %76 {strides = array<i32>} : memref<10x10x8xf32, #tpu.memory_space<vmem>>, vector<8x8x8xf32>,
    %c0_37 = arith.constant 0 : index
    %c0_38 = arith.constant 0 : index
    %c0_39 = arith.constant 0 : index
    %78 = vector.load %arg7[%c0_37, %c0_38, %c0_39] : memref<10x10x8xf32, #tpu.memory_space<vmem>>, vector<10x10x8xf32>
    %79 = arith.truncf %78 : vector<10x10x8xf32> to vector<10x10x8xbf16>
    %cst_40 = arith.constant 0.000000e+00 : f32
    %80 = vector.broadcast %cst_40 : f32 to vector<64x8xf32>
    %81 = vector.extract_strided_slice %79 {offsets = [0, 0, 0], sizes = [8, 8, 8], strides = [1, 1, 1]} : vector<10x10x8xbf16> to vector<8x8x8xbf16>
    %82 = vector.shape_cast %81 : vector<8x8x8xbf16> to vector<64x8xbf16>
    %83 = vector.extract_strided_slice %3 {offsets = [0, 0, 0, 0, 0], sizes = [1, 1, 1, 8, 8], strides = [1, 1, 1, 1, 1]} : vector<4x3x3x8x8xbf16> to vector<1x1x1x8x8xbf16>
    %84 = vector.shape_cast %83 : vector<1x1x1x8x8xbf16> to vector<8x8xbf16>
    %cst_41 = arith.constant dense<0.000000e+00> : vector<64x8xf32>
    %85 = tpu.matmul %82, %84, %cst_41 {dimension_numbers = #tpu.dot_dimension_numbers<[1], [0], [0], [1], [0, 0, 1, 1], [], []>} : vector<64x8xbf16>, vector<8x8xbf16>, vector<64x8xf32> -> vector<64x8xf32>
    %86 = arith.addf %80, %85 : vector<64x8xf32>
    %87 = vector.extract_strided_slice %79 {offsets = [0, 1, 0], sizes = [8, 8, 8], strides = [1, 1, 1]} : vector<10x10x8xbf16> to vector<8x8x8xbf16>
    %88 = vector.shape_cast %87 : vector<8x8x8xbf16> to vector<64x8xbf16>
    %89 = vector.extract_strided_slice %3 {offsets = [0, 0, 1, 0, 0], sizes = [1, 1, 1, 8, 8], strides = [1, 1, 1, 1, 1]} : vector<4x3x3x8x8xbf16> to vector<1x1x1x8x8xbf16>
    %90 = vector.shape_cast %89 : vector<1x1x1x8x8xbf16> to vector<8x8xbf16>
    %cst_42 = arith.constant dense<0.000000e+00> : vector<64x8xf32>
    %91 = tpu.matmul %88, %90, %cst_42 {dimension_numbers = #tpu.dot_dimension_numbers<[1], [0], [0], [1], [0, 0, 1, 1], [], []>} : vector<64x8xbf16>, vector<8x8xbf16>, vector<64x8xf32> -> vector<64x8xf32>
    %92 = arith.addf %86, %91 : vector<64x8xf32>
    %93 = vector.extract_strided_slice %79 {offsets = [0, 2, 0], sizes = [8, 8, 8], strides = [1, 1, 1]} : vector<10x10x8xbf16> to vector<8x8x8xbf16>
    %94 = vector.shape_cast %93 : vector<8x8x8xbf16> to vector<64x8xbf16>
    %95 = vector.extract_strided_slice %3 {offsets = [0, 0, 2, 0, 0], sizes = [1, 1, 1, 8, 8], strides = [1, 1, 1, 1, 1]} : vector<4x3x3x8x8xbf16> to vector<1x1x1x8x8xbf16>
    %96 = vector.shape_cast %95 : vector<1x1x1x8x8xbf16> to vector<8x8xbf16>
    %cst_43 = arith.constant dense<0.000000e+00> : vector<64x8xf32>
    %97 = tpu.matmul %94, %96, %cst_43 {dimension_numbers = #tpu.dot_dimension_numbers<[1], [0], [0], [1], [0, 0, 1, 1], [], []>} : vector<64x8xbf16>, vector<8x8xbf16>, vector<64x8xf32> -> vector<64x8xf32>
    %98 = arith.addf %92, %97 : vector<64x8xf32>
    %99 = vector.extract_strided_slice %79 {offsets = [1, 0, 0], sizes = [8, 8, 8], strides = [1, 1, 1]} : vector<10x10x8xbf16> to vector<8x8x8xbf16>
    %100 = vector.shape_cast %99 : vector<8x8x8xbf16> to vector<64x8xbf16>
    %101 = vector.extract_strided_slice %3 {offsets = [0, 1, 0, 0, 0], sizes = [1, 1, 1, 8, 8], strides = [1, 1, 1, 1, 1]} : vector<4x3x3x8x8xbf16> to vector<1x1x1x8x8xbf16>
    %102 = vector.shape_cast %101 : vector<1x1x1x8x8xbf16> to vector<8x8xbf16>
    %cst_44 = arith.constant dense<0.000000e+00> : vector<64x8xf32>
    %103 = tpu.matmul %100, %102, %cst_44 {dimension_numbers = #tpu.dot_dimension_numbers<[1], [0], [0], [1], [0, 0, 1, 1], [], []>} : vector<64x8xbf16>, vector<8x8xbf16>, vector<64x8xf32> -> vector<64x8xf32>
    %104 = arith.addf %98, %103 : vector<64x8xf32>
    %105 = vector.extract_strided_slice %79 {offsets = [1, 1, 0], sizes = [8, 8, 8], strides = [1, 1, 1]} : vector<10x10x8xbf16> to vector<8x8x8xbf16>
    %106 = vector.shape_cast %105 : vector<8x8x8xbf16> to vector<64x8xbf16>
    %107 = vector.extract_strided_slice %3 {offsets = [0, 1, 1, 0, 0], sizes = [1, 1, 1, 8, 8], strides = [1, 1, 1, 1, 1]} : vector<4x3x3x8x8xbf16> to vector<1x1x1x8x8xbf16>
    %108 = vector.shape_cast %107 : vector<1x1x1x8x8xbf16> to vector<8x8xbf16>
    %cst_45 = arith.constant dense<0.000000e+00> : vector<64x8xf32>
    %109 = tpu.matmul %106, %108, %cst_45 {dimension_numbers = #tpu.dot_dimension_numbers<[1], [0], [0], [1], [0, 0, 1, 1], [], []>} : vector<64x8xbf16>, vector<8x8xbf16>, vector<64x8xf32> -> vector<64x8xf32>
    %110 = arith.addf %104, %109 : vector<64x8xf32>
    %111 = vector.extract_strided_slice %79 {offsets = [1, 2, 0], sizes = [8, 8, 8], strides = [1, 1, 1]} : vector<10x10x8xbf16> to vector<8x8x8xbf16>
    %112 = vector.shape_cast %111 : vector<8x8x8xbf16> to vector<64x8xbf16>
    %113 = vector.extract_strided_slice %3 {offsets = [0, 1, 2, 0, 0], sizes = [1, 1, 1, 8, 8], strides = [1, 1, 1, 1, 1]} : vector<4x3x3x8x8xbf16> to vector<1x1x1x8x8xbf16>
    %114 = vector.shape_cast %113 : vector<1x1x1x8x8xbf16> to vector<8x8xbf16>
    %cst_46 = arith.constant dense<0.000000e+00> : vector<64x8xf32>
    %115 = tpu.matmul %112, %114, %cst_46 {dimension_numbers = #tpu.dot_dimension_numbers<[1], [0], [0], [1], [0, 0, 1, 1], [], []>} : vector<64x8xbf16>, vector<8x8xbf16>, vector<64x8xf32> -> vector<64x8xf32>
    %116 = arith.addf %110, %115 : vector<64x8xf32>
    %117 = vector.extract_strided_slice %79 {offsets = [2, 0, 0], sizes = [8, 8, 8], strides = [1, 1, 1]} : vector<10x10x8xbf16> to vector<8x8x8xbf16>
    %118 = vector.shape_cast %117 : vector<8x8x8xbf16> to vector<64x8xbf16>
    %119 = vector.extract_strided_slice %3 {offsets = [0, 2, 0, 0, 0], sizes = [1, 1, 1, 8, 8], strides = [1, 1, 1, 1, 1]} : vector<4x3x3x8x8xbf16> to vector<1x1x1x8x8xbf16>
    %120 = vector.shape_cast %119 : vector<1x1x1x8x8xbf16> to vector<8x8xbf16>
    %cst_47 = arith.constant dense<0.000000e+00> : vector<64x8xf32>
    %121 = tpu.matmul %118, %120, %cst_47 {dimension_numbers = #tpu.dot_dimension_numbers<[1], [0], [0], [1], [0, 0, 1, 1], [], []>} : vector<64x8xbf16>, vector<8x8xbf16>, vector<64x8xf32> -> vector<64x8xf32>
    %122 = arith.addf %116, %121 : vector<64x8xf32>
    %123 = vector.extract_strided_slice %79 {offsets = [2, 1, 0], sizes = [8, 8, 8], strides = [1, 1, 1]} : vector<10x10x8xbf16> to vector<8x8x8xbf16>
    %124 = vector.shape_cast %123 : vector<8x8x8xbf16> to vector<64x8xbf16>
    %125 = vector.extract_strided_slice %3 {offsets = [0, 2, 1, 0, 0], sizes = [1, 1, 1, 8, 8], strides = [1, 1, 1, 1, 1]} : vector<4x3x3x8x8xbf16> to vector<1x1x1x8x8xbf16>
    %126 = vector.shape_cast %125 : vector<1x1x1x8x8xbf16> to vector<8x8xbf16>
    %cst_48 = arith.constant dense<0.000000e+00> : vector<64x8xf32>
    %127 = tpu.matmul %124, %126, %cst_48 {dimension_numbers = #tpu.dot_dimension_numbers<[1], [0], [0], [1], [0, 0, 1, 1], [], []>} : vector<64x8xbf16>, vector<8x8xbf16>, vector<64x8xf32> -> vector<64x8xf32>
    %128 = arith.addf %122, %127 : vector<64x8xf32>
    %129 = vector.extract_strided_slice %79 {offsets = [2, 2, 0], sizes = [8, 8, 8], strides = [1, 1, 1]} : vector<10x10x8xbf16> to vector<8x8x8xbf16>
    %130 = vector.shape_cast %129 : vector<8x8x8xbf16> to vector<64x8xbf16>
    %131 = vector.extract_strided_slice %3 {offsets = [0, 2, 2, 0, 0], sizes = [1, 1, 1, 8, 8], strides = [1, 1, 1, 1, 1]} : vector<4x3x3x8x8xbf16> to vector<1x1x1x8x8xbf16>
    %132 = vector.shape_cast %131 : vector<1x1x1x8x8xbf16> to vector<8x8xbf16>
    %cst_49 = arith.constant dense<0.000000e+00> : vector<64x8xf32>
    %133 = tpu.matmul %130, %132, %cst_49 {dimension_numbers = #tpu.dot_dimension_numbers<[1], [0], [0], [1], [0, 0, 1, 1], [], []>} : vector<64x8xbf16>, vector<8x8xbf16>, vector<64x8xf32> -> vector<64x8xf32>
    %134 = arith.addf %128, %133 : vector<64x8xf32>
    %135 = vector.extract_strided_slice %4 {offsets = [0, 0, 0], sizes = [1, 1, 8], strides = [1, 1, 1]} : vector<4x1x8xf32> to vector<1x1x8xf32>
    %136 = vector.shape_cast %135 : vector<1x1x8xf32> to vector<1x8xf32>
    %137 = vector.broadcast %136 : vector<1x8xf32> to vector<64x8xf32>
    %138 = arith.addf %134, %137 : vector<64x8xf32>
    %139 = arith.negf %138 : vector<64x8xf32>
    %140 = math.exp %139 : vector<64x8xf32>
    %cst_50 = arith.constant 1.000000e+00 : f32
    %141 = vector.broadcast %cst_50 : f32 to vector<64x8xf32>
    %142 = arith.addf %141, %140 : vector<64x8xf32>
    %143 = arith.divf %141, %142 : vector<64x8xf32>
    %144 = arith.mulf %138, %143 : vector<64x8xf32>
    %145 = vector.shape_cast %144 : vector<64x8xf32> to vector<8x8x8xf32>
    %c1_51 = arith.constant 1 : index
    %c1_52 = arith.constant 1 : index
    %c0_53 = arith.constant 0 : index
    %146 = vector.load %arg8[%c1_51, %c1_52, %c0_53] : memref<10x10x8xf32, #tpu.memory_space<vmem>>, vector<8x8x8xf32>
    tpu.vector_store %arg8[%c1_51, %c1_52, %c0_53], %145 {strides = array<i32>} : memref<10x10x8xf32, #tpu.memory_space<vmem>>, vector<8x8x8xf32>,
    %c0_54 = arith.constant 0 : index
    %c0_55 = arith.constant 0 : index
    %c0_56 = arith.constant 0 : index
    %147 = vector.load %arg8[%c0_54, %c0_55, %c0_56] : memref<10x10x8xf32, #tpu.memory_space<vmem>>, vector<10x10x8xf32>
    %148 = arith.truncf %147 : vector<10x10x8xf32> to vector<10x10x8xbf16>
    %cst_57 = arith.constant 0.000000e+00 : f32
    %149 = vector.broadcast %cst_57 : f32 to vector<64x8xf32>
    %150 = vector.extract_strided_slice %148 {offsets = [0, 0, 0], sizes = [8, 8, 8], strides = [1, 1, 1]} : vector<10x10x8xbf16> to vector<8x8x8xbf16>
    %151 = vector.shape_cast %150 : vector<8x8x8xbf16> to vector<64x8xbf16>
    %152 = vector.extract_strided_slice %3 {offsets = [1, 0, 0, 0, 0], sizes = [1, 1, 1, 8, 8], strides = [1, 1, 1, 1, 1]} : vector<4x3x3x8x8xbf16> to vector<1x1x1x8x8xbf16>
    %153 = vector.shape_cast %152 : vector<1x1x1x8x8xbf16> to vector<8x8xbf16>
    %cst_58 = arith.constant dense<0.000000e+00> : vector<64x8xf32>
    %154 = tpu.matmul %151, %153, %cst_58 {dimension_numbers = #tpu.dot_dimension_numbers<[1], [0], [0], [1], [0, 0, 1, 1], [], []>} : vector<64x8xbf16>, vector<8x8xbf16>, vector<64x8xf32> -> vector<64x8xf32>
    %155 = arith.addf %149, %154 : vector<64x8xf32>
    %156 = vector.extract_strided_slice %148 {offsets = [0, 1, 0], sizes = [8, 8, 8], strides = [1, 1, 1]} : vector<10x10x8xbf16> to vector<8x8x8xbf16>
    %157 = vector.shape_cast %156 : vector<8x8x8xbf16> to vector<64x8xbf16>
    %158 = vector.extract_strided_slice %3 {offsets = [1, 0, 1, 0, 0], sizes = [1, 1, 1, 8, 8], strides = [1, 1, 1, 1, 1]} : vector<4x3x3x8x8xbf16> to vector<1x1x1x8x8xbf16>
    %159 = vector.shape_cast %158 : vector<1x1x1x8x8xbf16> to vector<8x8xbf16>
    %cst_59 = arith.constant dense<0.000000e+00> : vector<64x8xf32>
    %160 = tpu.matmul %157, %159, %cst_59 {dimension_numbers = #tpu.dot_dimension_numbers<[1], [0], [0], [1], [0, 0, 1, 1], [], []>} : vector<64x8xbf16>, vector<8x8xbf16>, vector<64x8xf32> -> vector<64x8xf32>
    %161 = arith.addf %155, %160 : vector<64x8xf32>
    %162 = vector.extract_strided_slice %148 {offsets = [0, 2, 0], sizes = [8, 8, 8], strides = [1, 1, 1]} : vector<10x10x8xbf16> to vector<8x8x8xbf16>
    %163 = vector.shape_cast %162 : vector<8x8x8xbf16> to vector<64x8xbf16>
    %164 = vector.extract_strided_slice %3 {offsets = [1, 0, 2, 0, 0], sizes = [1, 1, 1, 8, 8], strides = [1, 1, 1, 1, 1]} : vector<4x3x3x8x8xbf16> to vector<1x1x1x8x8xbf16>
    %165 = vector.shape_cast %164 : vector<1x1x1x8x8xbf16> to vector<8x8xbf16>
    %cst_60 = arith.constant dense<0.000000e+00> : vector<64x8xf32>
    %166 = tpu.matmul %163, %165, %cst_60 {dimension_numbers = #tpu.dot_dimension_numbers<[1], [0], [0], [1], [0, 0, 1, 1], [], []>} : vector<64x8xbf16>, vector<8x8xbf16>, vector<64x8xf32> -> vector<64x8xf32>
    %167 = arith.addf %161, %166 : vector<64x8xf32>
    %168 = vector.extract_strided_slice %148 {offsets = [1, 0, 0], sizes = [8, 8, 8], strides = [1, 1, 1]} : vector<10x10x8xbf16> to vector<8x8x8xbf16>
    %169 = vector.shape_cast %168 : vector<8x8x8xbf16> to vector<64x8xbf16>
    %170 = vector.extract_strided_slice %3 {offsets = [1, 1, 0, 0, 0], sizes = [1, 1, 1, 8, 8], strides = [1, 1, 1, 1, 1]} : vector<4x3x3x8x8xbf16> to vector<1x1x1x8x8xbf16>
    %171 = vector.shape_cast %170 : vector<1x1x1x8x8xbf16> to vector<8x8xbf16>
    %cst_61 = arith.constant dense<0.000000e+00> : vector<64x8xf32>
    %172 = tpu.matmul %169, %171, %cst_61 {dimension_numbers = #tpu.dot_dimension_numbers<[1], [0], [0], [1], [0, 0, 1, 1], [], []>} : vector<64x8xbf16>, vector<8x8xbf16>, vector<64x8xf32> -> vector<64x8xf32>
    %173 = arith.addf %167, %172 : vector<64x8xf32>
    %174 = vector.extract_strided_slice %148 {offsets = [1, 1, 0], sizes = [8, 8, 8], strides = [1, 1, 1]} : vector<10x10x8xbf16> to vector<8x8x8xbf16>
    %175 = vector.shape_cast %174 : vector<8x8x8xbf16> to vector<64x8xbf16>
    %176 = vector.extract_strided_slice %3 {offsets = [1, 1, 1, 0, 0], sizes = [1, 1, 1, 8, 8], strides = [1, 1, 1, 1, 1]} : vector<4x3x3x8x8xbf16> to vector<1x1x1x8x8xbf16>
    %177 = vector.shape_cast %176 : vector<1x1x1x8x8xbf16> to vector<8x8xbf16>
    %cst_62 = arith.constant dense<0.000000e+00> : vector<64x8xf32>
    %178 = tpu.matmul %175, %177, %cst_62 {dimension_numbers = #tpu.dot_dimension_numbers<[1], [0], [0], [1], [0, 0, 1, 1], [], []>} : vector<64x8xbf16>, vector<8x8xbf16>, vector<64x8xf32> -> vector<64x8xf32>
    %179 = arith.addf %173, %178 : vector<64x8xf32>
    %180 = vector.extract_strided_slice %148 {offsets = [1, 2, 0], sizes = [8, 8, 8], strides = [1, 1, 1]} : vector<10x10x8xbf16> to vector<8x8x8xbf16>
    %181 = vector.shape_cast %180 : vector<8x8x8xbf16> to vector<64x8xbf16>
    %182 = vector.extract_strided_slice %3 {offsets = [1, 1, 2, 0, 0], sizes = [1, 1, 1, 8, 8], strides = [1, 1, 1, 1, 1]} : vector<4x3x3x8x8xbf16> to vector<1x1x1x8x8xbf16>
    %183 = vector.shape_cast %182 : vector<1x1x1x8x8xbf16> to vector<8x8xbf16>
    %cst_63 = arith.constant dense<0.000000e+00> : vector<64x8xf32>
    %184 = tpu.matmul %181, %183, %cst_63 {dimension_numbers = #tpu.dot_dimension_numbers<[1], [0], [0], [1], [0, 0, 1, 1], [], []>} : vector<64x8xbf16>, vector<8x8xbf16>, vector<64x8xf32> -> vector<64x8xf32>
    %185 = arith.addf %179, %184 : vector<64x8xf32>
    %186 = vector.extract_strided_slice %148 {offsets = [2, 0, 0], sizes = [8, 8, 8], strides = [1, 1, 1]} : vector<10x10x8xbf16> to vector<8x8x8xbf16>
    %187 = vector.shape_cast %186 : vector<8x8x8xbf16> to vector<64x8xbf16>
    %188 = vector.extract_strided_slice %3 {offsets = [1, 2, 0, 0, 0], sizes = [1, 1, 1, 8, 8], strides = [1, 1, 1, 1, 1]} : vector<4x3x3x8x8xbf16> to vector<1x1x1x8x8xbf16>
    %189 = vector.shape_cast %188 : vector<1x1x1x8x8xbf16> to vector<8x8xbf16>
    %cst_64 = arith.constant dense<0.000000e+00> : vector<64x8xf32>
    %190 = tpu.matmul %187, %189, %cst_64 {dimension_numbers = #tpu.dot_dimension_numbers<[1], [0], [0], [1], [0, 0, 1, 1], [], []>} : vector<64x8xbf16>, vector<8x8xbf16>, vector<64x8xf32> -> vector<64x8xf32>
    %191 = arith.addf %185, %190 : vector<64x8xf32>
    %192 = vector.extract_strided_slice %148 {offsets = [2, 1, 0], sizes = [8, 8, 8], strides = [1, 1, 1]} : vector<10x10x8xbf16> to vector<8x8x8xbf16>
    %193 = vector.shape_cast %192 : vector<8x8x8xbf16> to vector<64x8xbf16>
    %194 = vector.extract_strided_slice %3 {offsets = [1, 2, 1, 0, 0], sizes = [1, 1, 1, 8, 8], strides = [1, 1, 1, 1, 1]} : vector<4x3x3x8x8xbf16> to vector<1x1x1x8x8xbf16>
    %195 = vector.shape_cast %194 : vector<1x1x1x8x8xbf16> to vector<8x8xbf16>
    %cst_65 = arith.constant dense<0.000000e+00> : vector<64x8xf32>
    %196 = tpu.matmul %193, %195, %cst_65 {dimension_numbers = #tpu.dot_dimension_numbers<[1], [0], [0], [1], [0, 0, 1, 1], [], []>} : vector<64x8xbf16>, vector<8x8xbf16>, vector<64x8xf32> -> vector<64x8xf32>
    %197 = arith.addf %191, %196 : vector<64x8xf32>
    %198 = vector.extract_strided_slice %148 {offsets = [2, 2, 0], sizes = [8, 8, 8], strides = [1, 1, 1]} : vector<10x10x8xbf16> to vector<8x8x8xbf16>
    %199 = vector.shape_cast %198 : vector<8x8x8xbf16> to vector<64x8xbf16>
    %200 = vector.extract_strided_slice %3 {offsets = [1, 2, 2, 0, 0], sizes = [1, 1, 1, 8, 8], strides = [1, 1, 1, 1, 1]} : vector<4x3x3x8x8xbf16> to vector<1x1x1x8x8xbf16>
    %201 = vector.shape_cast %200 : vector<1x1x1x8x8xbf16> to vector<8x8xbf16>
    %cst_66 = arith.constant dense<0.000000e+00> : vector<64x8xf32>
    %202 = tpu.matmul %199, %201, %cst_66 {dimension_numbers = #tpu.dot_dimension_numbers<[1], [0], [0], [1], [0, 0, 1, 1], [], []>} : vector<64x8xbf16>, vector<8x8xbf16>, vector<64x8xf32> -> vector<64x8xf32>
    %203 = arith.addf %197, %202 : vector<64x8xf32>
    %204 = vector.extract_strided_slice %4 {offsets = [1, 0, 0], sizes = [1, 1, 8], strides = [1, 1, 1]} : vector<4x1x8xf32> to vector<1x1x8xf32>
    %205 = vector.shape_cast %204 : vector<1x1x8xf32> to vector<1x8xf32>
    %206 = vector.broadcast %205 : vector<1x8xf32> to vector<64x8xf32>
    %207 = arith.addf %203, %206 : vector<64x8xf32>
    %208 = arith.negf %207 : vector<64x8xf32>
    %209 = math.exp %208 : vector<64x8xf32>
    %cst_67 = arith.constant 1.000000e+00 : f32
    %210 = vector.broadcast %cst_67 : f32 to vector<64x8xf32>
    %211 = arith.addf %210, %209 : vector<64x8xf32>
    %212 = arith.divf %210, %211 : vector<64x8xf32>
    %213 = arith.mulf %207, %212 : vector<64x8xf32>
    %214 = arith.addf %71, %213 : vector<64x8xf32>
    %cst_68 = arith.constant 0.000000e+00 : f32
    %215 = vector.broadcast %cst_68 : f32 to vector<64x8xf32>
    %216 = vector.extract_strided_slice %79 {offsets = [0, 0, 0], sizes = [8, 8, 8], strides = [1, 1, 1]} : vector<10x10x8xbf16> to vector<8x8x8xbf16>
    %217 = vector.shape_cast %216 : vector<8x8x8xbf16> to vector<64x8xbf16>
    %218 = vector.extract_strided_slice %3 {offsets = [2, 0, 0, 0, 0], sizes = [1, 1, 1, 8, 8], strides = [1, 1, 1, 1, 1]} : vector<4x3x3x8x8xbf16> to vector<1x1x1x8x8xbf16>
    %219 = vector.shape_cast %218 : vector<1x1x1x8x8xbf16> to vector<8x8xbf16>
    %cst_69 = arith.constant dense<0.000000e+00> : vector<64x8xf32>
    %220 = tpu.matmul %217, %219, %cst_69 {dimension_numbers = #tpu.dot_dimension_numbers<[1], [0], [0], [1], [0, 0, 1, 1], [], []>} : vector<64x8xbf16>, vector<8x8xbf16>, vector<64x8xf32> -> vector<64x8xf32>
    %221 = arith.addf %215, %220 : vector<64x8xf32>
    %222 = vector.extract_strided_slice %79 {offsets = [0, 1, 0], sizes = [8, 8, 8], strides = [1, 1, 1]} : vector<10x10x8xbf16> to vector<8x8x8xbf16>
    %223 = vector.shape_cast %222 : vector<8x8x8xbf16> to vector<64x8xbf16>
    %224 = vector.extract_strided_slice %3 {offsets = [2, 0, 1, 0, 0], sizes = [1, 1, 1, 8, 8], strides = [1, 1, 1, 1, 1]} : vector<4x3x3x8x8xbf16> to vector<1x1x1x8x8xbf16>
    %225 = vector.shape_cast %224 : vector<1x1x1x8x8xbf16> to vector<8x8xbf16>
    %cst_70 = arith.constant dense<0.000000e+00> : vector<64x8xf32>
    %226 = tpu.matmul %223, %225, %cst_70 {dimension_numbers = #tpu.dot_dimension_numbers<[1], [0], [0], [1], [0, 0, 1, 1], [], []>} : vector<64x8xbf16>, vector<8x8xbf16>, vector<64x8xf32> -> vector<64x8xf32>
    %227 = arith.addf %221, %226 : vector<64x8xf32>
    %228 = vector.extract_strided_slice %79 {offsets = [0, 2, 0], sizes = [8, 8, 8], strides = [1, 1, 1]} : vector<10x10x8xbf16> to vector<8x8x8xbf16>
    %229 = vector.shape_cast %228 : vector<8x8x8xbf16> to vector<64x8xbf16>
    %230 = vector.extract_strided_slice %3 {offsets = [2, 0, 2, 0, 0], sizes = [1, 1, 1, 8, 8], strides = [1, 1, 1, 1, 1]} : vector<4x3x3x8x8xbf16> to vector<1x1x1x8x8xbf16>
    %231 = vector.shape_cast %230 : vector<1x1x1x8x8xbf16> to vector<8x8xbf16>
    %cst_71 = arith.constant dense<0.000000e+00> : vector<64x8xf32>
    %232 = tpu.matmul %229, %231, %cst_71 {dimension_numbers = #tpu.dot_dimension_numbers<[1], [0], [0], [1], [0, 0, 1, 1], [], []>} : vector<64x8xbf16>, vector<8x8xbf16>, vector<64x8xf32> -> vector<64x8xf32>
    %233 = arith.addf %227, %232 : vector<64x8xf32>
    %234 = vector.extract_strided_slice %79 {offsets = [1, 0, 0], sizes = [8, 8, 8], strides = [1, 1, 1]} : vector<10x10x8xbf16> to vector<8x8x8xbf16>
    %235 = vector.shape_cast %234 : vector<8x8x8xbf16> to vector<64x8xbf16>
    %236 = vector.extract_strided_slice %3 {offsets = [2, 1, 0, 0, 0], sizes = [1, 1, 1, 8, 8], strides = [1, 1, 1, 1, 1]} : vector<4x3x3x8x8xbf16> to vector<1x1x1x8x8xbf16>
    %237 = vector.shape_cast %236 : vector<1x1x1x8x8xbf16> to vector<8x8xbf16>
    %cst_72 = arith.constant dense<0.000000e+00> : vector<64x8xf32>
    %238 = tpu.matmul %235, %237, %cst_72 {dimension_numbers = #tpu.dot_dimension_numbers<[1], [0], [0], [1], [0, 0, 1, 1], [], []>} : vector<64x8xbf16>, vector<8x8xbf16>, vector<64x8xf32> -> vector<64x8xf32>
    %239 = arith.addf %233, %238 : vector<64x8xf32>
    %240 = vector.extract_strided_slice %79 {offsets = [1, 1, 0], sizes = [8, 8, 8], strides = [1, 1, 1]} : vector<10x10x8xbf16> to vector<8x8x8xbf16>
    %241 = vector.shape_cast %240 : vector<8x8x8xbf16> to vector<64x8xbf16>
    %242 = vector.extract_strided_slice %3 {offsets = [2, 1, 1, 0, 0], sizes = [1, 1, 1, 8, 8], strides = [1, 1, 1, 1, 1]} : vector<4x3x3x8x8xbf16> to vector<1x1x1x8x8xbf16>
    %243 = vector.shape_cast %242 : vector<1x1x1x8x8xbf16> to vector<8x8xbf16>
    %cst_73 = arith.constant dense<0.000000e+00> : vector<64x8xf32>
    %244 = tpu.matmul %241, %243, %cst_73 {dimension_numbers = #tpu.dot_dimension_numbers<[1], [0], [0], [1], [0, 0, 1, 1], [], []>} : vector<64x8xbf16>, vector<8x8xbf16>, vector<64x8xf32> -> vector<64x8xf32>
    %245 = arith.addf %239, %244 : vector<64x8xf32>
    %246 = vector.extract_strided_slice %79 {offsets = [1, 2, 0], sizes = [8, 8, 8], strides = [1, 1, 1]} : vector<10x10x8xbf16> to vector<8x8x8xbf16>
    %247 = vector.shape_cast %246 : vector<8x8x8xbf16> to vector<64x8xbf16>
    %248 = vector.extract_strided_slice %3 {offsets = [2, 1, 2, 0, 0], sizes = [1, 1, 1, 8, 8], strides = [1, 1, 1, 1, 1]} : vector<4x3x3x8x8xbf16> to vector<1x1x1x8x8xbf16>
    %249 = vector.shape_cast %248 : vector<1x1x1x8x8xbf16> to vector<8x8xbf16>
    %cst_74 = arith.constant dense<0.000000e+00> : vector<64x8xf32>
    %250 = tpu.matmul %247, %249, %cst_74 {dimension_numbers = #tpu.dot_dimension_numbers<[1], [0], [0], [1], [0, 0, 1, 1], [], []>} : vector<64x8xbf16>, vector<8x8xbf16>, vector<64x8xf32> -> vector<64x8xf32>
    %251 = arith.addf %245, %250 : vector<64x8xf32>
    %252 = vector.extract_strided_slice %79 {offsets = [2, 0, 0], sizes = [8, 8, 8], strides = [1, 1, 1]} : vector<10x10x8xbf16> to vector<8x8x8xbf16>
    %253 = vector.shape_cast %252 : vector<8x8x8xbf16> to vector<64x8xbf16>
    %254 = vector.extract_strided_slice %3 {offsets = [2, 2, 0, 0, 0], sizes = [1, 1, 1, 8, 8], strides = [1, 1, 1, 1, 1]} : vector<4x3x3x8x8xbf16> to vector<1x1x1x8x8xbf16>
    %255 = vector.shape_cast %254 : vector<1x1x1x8x8xbf16> to vector<8x8xbf16>
    %cst_75 = arith.constant dense<0.000000e+00> : vector<64x8xf32>
    %256 = tpu.matmul %253, %255, %cst_75 {dimension_numbers = #tpu.dot_dimension_numbers<[1], [0], [0], [1], [0, 0, 1, 1], [], []>} : vector<64x8xbf16>, vector<8x8xbf16>, vector<64x8xf32> -> vector<64x8xf32>
    %257 = arith.addf %251, %256 : vector<64x8xf32>
    %258 = vector.extract_strided_slice %79 {offsets = [2, 1, 0], sizes = [8, 8, 8], strides = [1, 1, 1]} : vector<10x10x8xbf16> to vector<8x8x8xbf16>
    %259 = vector.shape_cast %258 : vector<8x8x8xbf16> to vector<64x8xbf16>
    %260 = vector.extract_strided_slice %3 {offsets = [2, 2, 1, 0, 0], sizes = [1, 1, 1, 8, 8], strides = [1, 1, 1, 1, 1]} : vector<4x3x3x8x8xbf16> to vector<1x1x1x8x8xbf16>
    %261 = vector.shape_cast %260 : vector<1x1x1x8x8xbf16> to vector<8x8xbf16>
    %cst_76 = arith.constant dense<0.000000e+00> : vector<64x8xf32>
    %262 = tpu.matmul %259, %261, %cst_76 {dimension_numbers = #tpu.dot_dimension_numbers<[1], [0], [0], [1], [0, 0, 1, 1], [], []>} : vector<64x8xbf16>, vector<8x8xbf16>, vector<64x8xf32> -> vector<64x8xf32>
    %263 = arith.addf %257, %262 : vector<64x8xf32>
    %264 = vector.extract_strided_slice %79 {offsets = [2, 2, 0], sizes = [8, 8, 8], strides = [1, 1, 1]} : vector<10x10x8xbf16> to vector<8x8x8xbf16>
    %265 = vector.shape_cast %264 : vector<8x8x8xbf16> to vector<64x8xbf16>
    %266 = vector.extract_strided_slice %3 {offsets = [2, 2, 2, 0, 0], sizes = [1, 1, 1, 8, 8], strides = [1, 1, 1, 1, 1]} : vector<4x3x3x8x8xbf16> to vector<1x1x1x8x8xbf16>
    %267 = vector.shape_cast %266 : vector<1x1x1x8x8xbf16> to vector<8x8xbf16>
    %cst_77 = arith.constant dense<0.000000e+00> : vector<64x8xf32>
    %268 = tpu.matmul %265, %267, %cst_77 {dimension_numbers = #tpu.dot_dimension_numbers<[1], [0], [0], [1], [0, 0, 1, 1], [], []>} : vector<64x8xbf16>, vector<8x8xbf16>, vector<64x8xf32> -> vector<64x8xf32>
    %269 = arith.addf %263, %268 : vector<64x8xf32>
    %270 = vector.extract_strided_slice %4 {offsets = [2, 0, 0], sizes = [1, 1, 8], strides = [1, 1, 1]} : vector<4x1x8xf32> to vector<1x1x8xf32>
    %271 = vector.shape_cast %270 : vector<1x1x8xf32> to vector<1x8xf32>
    %272 = vector.broadcast %271 : vector<1x8xf32> to vector<64x8xf32>
    %273 = arith.addf %269, %272 : vector<64x8xf32>
    %274 = arith.negf %273 : vector<64x8xf32>
    %275 = math.exp %274 : vector<64x8xf32>
    %cst_78 = arith.constant 1.000000e+00 : f32
    %276 = vector.broadcast %cst_78 : f32 to vector<64x8xf32>
    %277 = arith.addf %276, %275 : vector<64x8xf32>
    %278 = arith.divf %276, %277 : vector<64x8xf32>
    %279 = arith.mulf %273, %278 : vector<64x8xf32>
    %280 = vector.shape_cast %279 : vector<64x8xf32> to vector<8x8x8xf32>
    %c1_79 = arith.constant 1 : index
    %c1_80 = arith.constant 1 : index
    %c0_81 = arith.constant 0 : index
    %281 = vector.load %arg8[%c1_79, %c1_80, %c0_81] : memref<10x10x8xf32, #tpu.memory_space<vmem>>, vector<8x8x8xf32>
    tpu.vector_store %arg8[%c1_79, %c1_80, %c0_81], %280 {strides = array<i32>} : memref<10x10x8xf32, #tpu.memory_space<vmem>>, vector<8x8x8xf32>,
    %c0_82 = arith.constant 0 : index
    %c0_83 = arith.constant 0 : index
    %c0_84 = arith.constant 0 : index
    %282 = vector.load %arg8[%c0_82, %c0_83, %c0_84] : memref<10x10x8xf32, #tpu.memory_space<vmem>>, vector<10x10x8xf32>
    %283 = arith.truncf %282 : vector<10x10x8xf32> to vector<10x10x8xbf16>
    %cst_85 = arith.constant 0.000000e+00 : f32
    %284 = vector.broadcast %cst_85 : f32 to vector<64x8xf32>
    %285 = vector.extract_strided_slice %283 {offsets = [0, 0, 0], sizes = [8, 8, 8], strides = [1, 1, 1]} : vector<10x10x8xbf16> to vector<8x8x8xbf16>
    %286 = vector.shape_cast %285 : vector<8x8x8xbf16> to vector<64x8xbf16>
    %287 = vector.extract_strided_slice %3 {offsets = [3, 0, 0, 0, 0], sizes = [1, 1, 1, 8, 8], strides = [1, 1, 1, 1, 1]} : vector<4x3x3x8x8xbf16> to vector<1x1x1x8x8xbf16>
    %288 = vector.shape_cast %287 : vector<1x1x1x8x8xbf16> to vector<8x8xbf16>
    %cst_86 = arith.constant dense<0.000000e+00> : vector<64x8xf32>
    %289 = tpu.matmul %286, %288, %cst_86 {dimension_numbers = #tpu.dot_dimension_numbers<[1], [0], [0], [1], [0, 0, 1, 1], [], []>} : vector<64x8xbf16>, vector<8x8xbf16>, vector<64x8xf32> -> vector<64x8xf32>
    %290 = arith.addf %284, %289 : vector<64x8xf32>
    %291 = vector.extract_strided_slice %283 {offsets = [0, 1, 0], sizes = [8, 8, 8], strides = [1, 1, 1]} : vector<10x10x8xbf16> to vector<8x8x8xbf16>
    %292 = vector.shape_cast %291 : vector<8x8x8xbf16> to vector<64x8xbf16>
    %293 = vector.extract_strided_slice %3 {offsets = [3, 0, 1, 0, 0], sizes = [1, 1, 1, 8, 8], strides = [1, 1, 1, 1, 1]} : vector<4x3x3x8x8xbf16> to vector<1x1x1x8x8xbf16>
    %294 = vector.shape_cast %293 : vector<1x1x1x8x8xbf16> to vector<8x8xbf16>
    %cst_87 = arith.constant dense<0.000000e+00> : vector<64x8xf32>
    %295 = tpu.matmul %292, %294, %cst_87 {dimension_numbers = #tpu.dot_dimension_numbers<[1], [0], [0], [1], [0, 0, 1, 1], [], []>} : vector<64x8xbf16>, vector<8x8xbf16>, vector<64x8xf32> -> vector<64x8xf32>
    %296 = arith.addf %290, %295 : vector<64x8xf32>
    %297 = vector.extract_strided_slice %283 {offsets = [0, 2, 0], sizes = [8, 8, 8], strides = [1, 1, 1]} : vector<10x10x8xbf16> to vector<8x8x8xbf16>
    %298 = vector.shape_cast %297 : vector<8x8x8xbf16> to vector<64x8xbf16>
    %299 = vector.extract_strided_slice %3 {offsets = [3, 0, 2, 0, 0], sizes = [1, 1, 1, 8, 8], strides = [1, 1, 1, 1, 1]} : vector<4x3x3x8x8xbf16> to vector<1x1x1x8x8xbf16>
    %300 = vector.shape_cast %299 : vector<1x1x1x8x8xbf16> to vector<8x8xbf16>
    %cst_88 = arith.constant dense<0.000000e+00> : vector<64x8xf32>
    %301 = tpu.matmul %298, %300, %cst_88 {dimension_numbers = #tpu.dot_dimension_numbers<[1], [0], [0], [1], [0, 0, 1, 1], [], []>} : vector<64x8xbf16>, vector<8x8xbf16>, vector<64x8xf32> -> vector<64x8xf32>
    %302 = arith.addf %296, %301 : vector<64x8xf32>
    %303 = vector.extract_strided_slice %283 {offsets = [1, 0, 0], sizes = [8, 8, 8], strides = [1, 1, 1]} : vector<10x10x8xbf16> to vector<8x8x8xbf16>
    %304 = vector.shape_cast %303 : vector<8x8x8xbf16> to vector<64x8xbf16>
    %305 = vector.extract_strided_slice %3 {offsets = [3, 1, 0, 0, 0], sizes = [1, 1, 1, 8, 8], strides = [1, 1, 1, 1, 1]} : vector<4x3x3x8x8xbf16> to vector<1x1x1x8x8xbf16>
    %306 = vector.shape_cast %305 : vector<1x1x1x8x8xbf16> to vector<8x8xbf16>
    %cst_89 = arith.constant dense<0.000000e+00> : vector<64x8xf32>
    %307 = tpu.matmul %304, %306, %cst_89 {dimension_numbers = #tpu.dot_dimension_numbers<[1], [0], [0], [1], [0, 0, 1, 1], [], []>} : vector<64x8xbf16>, vector<8x8xbf16>, vector<64x8xf32> -> vector<64x8xf32>
    %308 = arith.addf %302, %307 : vector<64x8xf32>
    %309 = vector.extract_strided_slice %283 {offsets = [1, 1, 0], sizes = [8, 8, 8], strides = [1, 1, 1]} : vector<10x10x8xbf16> to vector<8x8x8xbf16>
    %310 = vector.shape_cast %309 : vector<8x8x8xbf16> to vector<64x8xbf16>
    %311 = vector.extract_strided_slice %3 {offsets = [3, 1, 1, 0, 0], sizes = [1, 1, 1, 8, 8], strides = [1, 1, 1, 1, 1]} : vector<4x3x3x8x8xbf16> to vector<1x1x1x8x8xbf16>
    %312 = vector.shape_cast %311 : vector<1x1x1x8x8xbf16> to vector<8x8xbf16>
    %cst_90 = arith.constant dense<0.000000e+00> : vector<64x8xf32>
    %313 = tpu.matmul %310, %312, %cst_90 {dimension_numbers = #tpu.dot_dimension_numbers<[1], [0], [0], [1], [0, 0, 1, 1], [], []>} : vector<64x8xbf16>, vector<8x8xbf16>, vector<64x8xf32> -> vector<64x8xf32>
    %314 = arith.addf %308, %313 : vector<64x8xf32>
    %315 = vector.extract_strided_slice %283 {offsets = [1, 2, 0], sizes = [8, 8, 8], strides = [1, 1, 1]} : vector<10x10x8xbf16> to vector<8x8x8xbf16>
    %316 = vector.shape_cast %315 : vector<8x8x8xbf16> to vector<64x8xbf16>
    %317 = vector.extract_strided_slice %3 {offsets = [3, 1, 2, 0, 0], sizes = [1, 1, 1, 8, 8], strides = [1, 1, 1, 1, 1]} : vector<4x3x3x8x8xbf16> to vector<1x1x1x8x8xbf16>
    %318 = vector.shape_cast %317 : vector<1x1x1x8x8xbf16> to vector<8x8xbf16>
    %cst_91 = arith.constant dense<0.000000e+00> : vector<64x8xf32>
    %319 = tpu.matmul %316, %318, %cst_91 {dimension_numbers = #tpu.dot_dimension_numbers<[1], [0], [0], [1], [0, 0, 1, 1], [], []>} : vector<64x8xbf16>, vector<8x8xbf16>, vector<64x8xf32> -> vector<64x8xf32>
    %320 = arith.addf %314, %319 : vector<64x8xf32>
    %321 = vector.extract_strided_slice %283 {offsets = [2, 0, 0], sizes = [8, 8, 8], strides = [1, 1, 1]} : vector<10x10x8xbf16> to vector<8x8x8xbf16>
    %322 = vector.shape_cast %321 : vector<8x8x8xbf16> to vector<64x8xbf16>
    %323 = vector.extract_strided_slice %3 {offsets = [3, 2, 0, 0, 0], sizes = [1, 1, 1, 8, 8], strides = [1, 1, 1, 1, 1]} : vector<4x3x3x8x8xbf16> to vector<1x1x1x8x8xbf16>
    %324 = vector.shape_cast %323 : vector<1x1x1x8x8xbf16> to vector<8x8xbf16>
    %cst_92 = arith.constant dense<0.000000e+00> : vector<64x8xf32>
    %325 = tpu.matmul %322, %324, %cst_92 {dimension_numbers = #tpu.dot_dimension_numbers<[1], [0], [0], [1], [0, 0, 1, 1], [], []>} : vector<64x8xbf16>, vector<8x8xbf16>, vector<64x8xf32> -> vector<64x8xf32>
    %326 = arith.addf %320, %325 : vector<64x8xf32>
    %327 = vector.extract_strided_slice %283 {offsets = [2, 1, 0], sizes = [8, 8, 8], strides = [1, 1, 1]} : vector<10x10x8xbf16> to vector<8x8x8xbf16>
    %328 = vector.shape_cast %327 : vector<8x8x8xbf16> to vector<64x8xbf16>
    %329 = vector.extract_strided_slice %3 {offsets = [3, 2, 1, 0, 0], sizes = [1, 1, 1, 8, 8], strides = [1, 1, 1, 1, 1]} : vector<4x3x3x8x8xbf16> to vector<1x1x1x8x8xbf16>
    %330 = vector.shape_cast %329 : vector<1x1x1x8x8xbf16> to vector<8x8xbf16>
    %cst_93 = arith.constant dense<0.000000e+00> : vector<64x8xf32>
    %331 = tpu.matmul %328, %330, %cst_93 {dimension_numbers = #tpu.dot_dimension_numbers<[1], [0], [0], [1], [0, 0, 1, 1], [], []>} : vector<64x8xbf16>, vector<8x8xbf16>, vector<64x8xf32> -> vector<64x8xf32>
    %332 = arith.addf %326, %331 : vector<64x8xf32>
    %333 = vector.extract_strided_slice %283 {offsets = [2, 2, 0], sizes = [8, 8, 8], strides = [1, 1, 1]} : vector<10x10x8xbf16> to vector<8x8x8xbf16>
    %334 = vector.shape_cast %333 : vector<8x8x8xbf16> to vector<64x8xbf16>
    %335 = vector.extract_strided_slice %3 {offsets = [3, 2, 2, 0, 0], sizes = [1, 1, 1, 8, 8], strides = [1, 1, 1, 1, 1]} : vector<4x3x3x8x8xbf16> to vector<1x1x1x8x8xbf16>
    %336 = vector.shape_cast %335 : vector<1x1x1x8x8xbf16> to vector<8x8xbf16>
    %cst_94 = arith.constant dense<0.000000e+00> : vector<64x8xf32>
    %337 = tpu.matmul %334, %336, %cst_94 {dimension_numbers = #tpu.dot_dimension_numbers<[1], [0], [0], [1], [0, 0, 1, 1], [], []>} : vector<64x8xbf16>, vector<8x8xbf16>, vector<64x8xf32> -> vector<64x8xf32>
    %338 = arith.addf %332, %337 : vector<64x8xf32>
    %339 = vector.extract_strided_slice %4 {offsets = [3, 0, 0], sizes = [1, 1, 8], strides = [1, 1, 1]} : vector<4x1x8xf32> to vector<1x1x8xf32>
    %340 = vector.shape_cast %339 : vector<1x1x8xf32> to vector<1x8xf32>
    %341 = vector.broadcast %340 : vector<1x8xf32> to vector<64x8xf32>
    %342 = arith.addf %338, %341 : vector<64x8xf32>
    %343 = arith.negf %342 : vector<64x8xf32>
    %344 = math.exp %343 : vector<64x8xf32>
    %cst_95 = arith.constant 1.000000e+00 : f32
    %345 = vector.broadcast %cst_95 : f32 to vector<64x8xf32>
    %346 = arith.addf %345, %344 : vector<64x8xf32>
    %347 = arith.divf %345, %346 : vector<64x8xf32>
    %348 = arith.mulf %342, %347 : vector<64x8xf32>
    %349 = arith.addf %214, %348 : vector<64x8xf32>
    %350 = vector.shape_cast %349 : vector<64x8xf32> to vector<8x8x8xf32>
    %c0_96 = arith.constant 0 : index
    %c0_97 = arith.constant 0 : index
    %c0_98 = arith.constant 0 : index
    %c0_99 = arith.constant 0 : index
    %351 = vector.load %arg6[%c0_96, %c0_97, %c0_98, %c0_99] : memref<1x8x8x8xf32, #tpu.memory_space<vmem>>, vector<1x8x8x8xf32>
    %352 = vector.shape_cast %351 : vector<1x8x8x8xf32> to vector<8x8x8xf32>
    %353 = vector.shape_cast %350 : vector<8x8x8xf32> to vector<1x8x8x8xf32>
    tpu.vector_store %arg6[%c0_96, %c0_97, %c0_98, %c0_99], %353 {strides = array<i32>} : memref<1x8x8x8xf32, #tpu.memory_space<vmem>>, vector<1x8x8x8xf32>,
    return
  }
  func.func @transform_0(%arg0: i32) -> (i32, i32, i32, i32, i32) {
    %c0_i32 = arith.constant 0 : i32
    %c0_i32_0 = arith.constant 0 : i32
    %c0_i32_1 = arith.constant 0 : i32
    %c0_i32_2 = arith.constant 0 : i32
    %c0_i32_3 = arith.constant 0 : i32
    return %arg0, %c0_i32, %c0_i32_0, %c0_i32_1, %c0_i32_2 : i32, i32, i32, i32, i32
  }
  func.func @transform_1(%arg0: i32) -> (i32, i32, i32, i32) {
    %c0_i32 = arith.constant 0 : i32
    %c0_i32_0 = arith.constant 0 : i32
    %c0_i32_1 = arith.constant 0 : i32
    %c0_i32_2 = arith.constant 0 : i32
    %c0_i32_3 = arith.constant 0 : i32
    return %c0_i32, %c0_i32_0, %c0_i32_1, %c0_i32_2 : i32, i32, i32, i32
  }
  func.func @transform_2(%arg0: i32) -> (i32, i32) {
    %c0_i32 = arith.constant 0 : i32
    %c0_i32_0 = arith.constant 0 : i32
    %c0_i32_1 = arith.constant 0 : i32
    return %c0_i32, %c0_i32_0 : i32, i32
  }
  func.func @transform_3(%arg0: i32) -> (i32, i32, i32, i32, i32) {
    %c0_i32 = arith.constant 0 : i32
    %c0_i32_0 = arith.constant 0 : i32
    %c0_i32_1 = arith.constant 0 : i32
    %c0_i32_2 = arith.constant 0 : i32
    %c0_i32_3 = arith.constant 0 : i32
    %c0_i32_4 = arith.constant 0 : i32
    return %c0_i32, %c0_i32_0, %c0_i32_1, %c0_i32_2, %c0_i32_3 : i32, i32, i32, i32, i32
  }
  func.func @transform_4(%arg0: i32) -> (i32, i32, i32) {
    %c0_i32 = arith.constant 0 : i32
    %c0_i32_0 = arith.constant 0 : i32
    %c0_i32_1 = arith.constant 0 : i32
    %c0_i32_2 = arith.constant 0 : i32
    return %c0_i32, %c0_i32_0, %c0_i32_1 : i32, i32, i32
  }
  func.func @transform_5(%arg0: i32) -> (i32, i32, i32, i32) {
    %c0_i32 = arith.constant 0 : i32
    %c0_i32_0 = arith.constant 0 : i32
    %c0_i32_1 = arith.constant 0 : i32
    %c0_i32_2 = arith.constant 0 : i32
    return %arg0, %c0_i32, %c0_i32_0, %c0_i32_1 : i32, i32, i32, i32
  }
}

</mosaic_0001>

<bundles_post_ra>
// kernel: pool_residual_conv_forward.1
= control target key start
LH: loop header
LB: loop body
LE: loop exit
PB: predicated region body
PF: predicated region fallthrough
CT: control target
= control target key end

     0   :  { %s7514_s18 = smov 0   ;;  %s9274_s0 = inlined_call_operand.vmem [shape: bf16[2,4,9,9,4], index: 0, kind: input, shape index: {}]   ;;  %s9275_s1 = inlined_call_operand.vmem [shape: bf16[3,3,4,8], index: 1, kind: input, shape index: {}]   ;;  %s9276_s2 = inlined_call_operand.vmem [shape: f32[1,8], index: 2, kind: input, shape index: {}]   ;;  %s9277_s3 = inlined_call_operand.vmem [shape: bf16[4,3,3,8,8], index: 3, kind: input, shape index: {}]   ;;  %s9278_s4 = inlined_call_operand.vmem [shape: f32[4,1,8], index: 4, kind: input, shape index: {}]   ;;  %s9279_s5 = inlined_call_operand.vmem [shape: f32[2,8,8,8], index: 5, kind: output, shape index: {}]  }
   0x1 LB: > { %s5748_s19 = sadd.s32 4294967295, %s7481_s18   ;;  %p5752_p0 = scmp.ge.s32.totalorder %s7481_s18, 1  ;;  %s7481_s18 = sphi %s7514_s18, %s15_s18  }
   0x2   : > { %p187_p1 = scmp.lt.s32.totalorder %s7481_s18, 3 }
   0x4   : > { %p188_p2 = pnand %p5752_p0, %p187_p1 }
   0x5   : > { %v278_v0 = vld [vmem:[%s9275_s1 + $0x2] sm:$0x3] (!%p188_p2)  ;;  %vm359_vm0 = vcmask (!%p188_p2), 1041408   ;;  %v7528_v1 = vld [vmem:[%s9275_s1 + $0x8] sm:$0x3] (!%p188_p2)  ;;  %p215_p3 = scmp.lt.s32.totalorder (!%p188_p2), %s5748_s19, 1 }
   0x6   : > { %191 = sbr.rel (%p188_p2) target bundleno = 1257 (0x4e9), region = 40  ;;  %7267 = vmatprep.subr.msk.bf16.mxu1 (!%p188_p2), %vm359_vm0, %v278_v0  ;;  %7271 = vmatprep.subr.msk.bf16.mxu0 (!%p188_p2), %vm359_vm0, %v7528_v1  ;;  %v361_v2 = vsel (!%p188_p2), %vm359_vm0, %v278_v0, 0  ;;  %v7536_v3 = vsel (!%p188_p2), %vm359_vm0, %v7528_v1, 0  ;;  %v277_v4 = vld [vmem:[%s9275_s1] sm:$0x3] (!%p188_p2)  ;;  %vm346_vm1 = vcmask (!%p188_p2), 31744  }
   0x7   : > { %6496 = vmatpush3.bf16.msra.mxu1 (!%p188_p2), %v361_v2  ;;  %6536 = vmatpush3.bf16.msra.mxu0 (!%p188_p2), %v7536_v3  ;;  %v282_v5 = vld [vmem:[%s9275_s1 + $0xa] sm:$0x3] (!%p188_p2)  ;;  %v283_v6 = vld [vmem:[%s9275_s1 + $0xc] sm:$0x3] (!%p188_p2)  ;;  %v461_v7 = vsel (!%p188_p2), %vm359_vm0, %v277_v4, 0  ;;  %vm1481_vm5 = vcmask (!%p188_p2), 64512  }
   0x8   : > { %7268 = vmatprep.subr.msk.bf16.mxu1 (!%p188_p2), %vm359_vm0, %v277_v4  ;;  %7273 = vmatprep.subr.msk.bf16.mxu0 (!%p188_p2), %vm359_vm0, %v282_v5  ;;  %v1096_v8 = vsel (!%p188_p2), %vm359_vm0, %v282_v5, 0  ;;  %v7561_v9 = vsel (!%p188_p2), %vm359_vm0, %v283_v6, 0  ;;  %vm528_vm2 = vsmask.f32 (!%p188_p2), 3328  ;;  %vm529_vm3 = vsmask.f32 (!%p188_p2), 7440 }
   0x9   : > { %v279_v18 = vld [vmem:[%s9275_s1 + $0x4] sm:$0x3] (!%p188_p2)  ;;  %vm7636_vm4 = vmor (!%p188_p2), %vm528_vm2, %vm529_vm3  ;;  %v7643_v58 = vld [vmem:[%s9275_s1 + $0xe] sm:$0x3] (!%p188_p2)  ;;  %vm1483_vm6 = vcmask (!%p188_p2), 58368   ;;  %vm1738_vm7 = vcmask (!%p188_p2), 1043456  }
   0xa   : > { %v668_v62 = vsel (!%p188_p2), %vm359_vm0, %v279_v18, 0  ;;  %v280_v63 = vld [vmem:[%s9275_s1 + $0x6] sm:$0x3] (!%p188_p2)  ;;  %vm1891_vm8 = vcmask (!%p188_p2), 1042432   ;;  %vm1892_vm9 = vcmask (!%p188_p2), 1046532  }
   0xb   : > { %vm8115_vm10 = vmor (!%p188_p2), %vm1891_vm8, %vm1892_vm9 }
   0xd   : > { %s9285_s19 = smov (!%p215_p3, %s5748_s19), 1 }
   0xe   : > { %s7313_s30 = smul.u32 288, %s9285_s19  ;;  %s6182_s7 = sshll.u32 %s9285_s19, 6 }
   0xf   : > { %s9236_s10 = scalar_lea.vmem %s9279_s5, %s6182_s7 }
  0x10   : > { %s7556_s8 = scalar_lea.vmem %s9274_s0, %s7313_s30 }
  0x11   : > { %v244_v10 = vld [vmem:[%s7556_s8 + $0x48] sm:$0xf]  ;;  %v7565_v11 = vld [vmem:[%s7556_s8 + $0x50] sm:$0xf]  ;;  %v7568_v12 = vld [vmem:[%s7556_s8 + $0x58] sm:$0xf] }
  0x12   : > { %v7571_v13 = vld [vmem:[%s7556_s8 + $0x60] sm:$0xf]  ;;  %v7574_v14 = vld [vmem:[%s7556_s8 + $0x68] sm:$0xf]  ;;  %v5756_v15 = vcombine.low %v244_v10, %v7565_v11  ;;  %v7586_v20 = vld [vmem:[%s7556_s8 + $0x70] sm:$0xf] }
  0x13   : > { %v5757_v16 = vcombine.low %v7568_v12, %v7571_v13  ;;  %v7327_v17 = vld [vmem:[%s7556_s8 + $0xd8] ss:$8 sps:$4 sm:$0xff]   ;;  %v7328_v19 = vld [vmem:[%s7556_s8 + $0xe8] ss:$8 sps:$4 sm:$0xff]   ;;  %v5758_v21 = vcombine.low %v7574_v14, %v7586_v20  ;;  %v254_v25 = vld [vmem:[%s7556_s8 + $0x94] sm:$0x1] }
  0x14   : > { %6497 = vmatprep.mubr.msk.bf16.mxu1 %vm346_vm1, %v5756_v15  ;;  %6537 = vmatprep.mubr.msk.bf16.mxu0 %vm346_vm1, %v7327_v17  ;;  %v7593_v22 = vld [vmem:[%s7556_s8 + $0x78] sm:$0xf]  ;;  %v7596_v23 = vld [vmem:[%s7556_s8 + $0x80] sm:$0xf]  ;;  %v7599_v24 = vld [vmem:[%s7556_s8 + $0x90] sm:$0xf] }
  0x15   : > { %6498 = vmatmul.mubr.msk.bf16.vlgmr.msra.gmra.mrb[0].mxu1 %vm346_vm1, %v5757_v16  ;;  %6538 = vmatmul.mubr.msk.bf16.vlgmr.msra.gmra.mrb[0].mxu0 %vm346_vm1, %v7328_v19  ;;  %v7604_v26 = vld [vmem:[%s7556_s8 + $0x98] sm:$0xf]  ;;  %v256_v27 = vld [vmem:[%s7556_s8 + $0x9c] sm:$0x1]  ;;  %v960_v28 = vshrl.u32 %v7599_v24, 16  ;;  %v963_v29 = vshll.u32 %v7599_v24, 16  ;;  %v5759_v33 = vcombine.low %v7593_v22, %v7596_v23 }
  0x16   : > { %6506 = vmatpush3.bf16.msra.mxu1 %v461_v7  ;;  %6546 = vmatpush3.bf16.msra.mxu0 %v1096_v8  ;;  %v969_v30 = vshll.u32 %v254_v25, 16  ;;  %v974_v31 = vshrl.u32 %v7604_v26, 16  ;;  %v7612_v32 = vld [vmem:[%s7556_s8 + $0xa0] sm:$0xf]  ;;  %v977_v34 = vshll.u32 %v7604_v26, 16  ;;  %v983_v35 = vshll.u32 %v256_v27, 16 }
  0x17   : > { %6501 = vmatprep.mubr.msk.bf16.mxu1 %vm346_vm1, %v5758_v21  ;;  %7274 = vmatprep.subr.msk.bf16.mxu0 %vm359_vm0, %v283_v6  ;;  %v258_v36 = vld [vmem:[%s7556_s8 + $0xa4] sm:$0x1]  ;;  %v7620_v37 = vld [vmem:[%s7556_s8 + $0xa8] sm:$0xf]  ;;  %v962_v38 = vrot.slane %v960_v28, 4  ;;  %v965_v39 = vrot.slane %v963_v29, 5 }
  0x18   : > { %7269 = vmatprep.subr.msk.bf16.mxu1 %vm359_vm0, %v279_v18  ;;  %v971_v40 = vrot.slane %v969_v30, 5  ;;  %v976_v41 = vrot.slane %v974_v31, 4  ;;  %v260_v42 = vld [vmem:[%s7556_s8 + $0xac] sm:$0x1]  ;;  %v979_v43 = vrot.slane %v977_v34, 5  ;;  %v985_v44 = vrot.slane %v983_v35, 5 }
  0x19   : > { %v988_v45 = vshrl.u32 %v7612_v32, 16  ;;  %v991_v46 = vshll.u32 %v7612_v32, 16  ;;  %v7627_v47 = vld [vmem:[%s7556_s8] sm:$0xf]  ;;  %v966_v48 = vor.u32 %v965_v39, %v962_v38  ;;  %v997_v49 = vshll.u32 %v258_v36, 16 }
  0x1a   : > { %v1002_v50 = vshrl.u32 %v7620_v37, 16  ;;  %v1005_v51 = vshll.u32 %v7620_v37, 16  ;;  %v7632_v52 = vld [vmem:[%s7556_s8 + $0x8] sm:$0xf]  ;;  %v980_v54 = vor.u32 %v979_v43, %v976_v41  ;;  %v1011_v57 = vshll.u32 %v260_v42, 16 }
  0x1b   : > { %v990_v55 = vrot.slane %v988_v45, 4  ;;  %v993_v56 = vrot.slane %v991_v46, 5  ;;  %v967_v59 = vrot.slane %v966_v48, 4  ;;  %v999_v4 = vrot.slane %v997_v49, 5  ;;  %v7656_v15 = vld [vmem:[%s7556_s8 + $0x10] sm:$0xf] }
  0x1c   : > { %v1004_v60 = vrot.slane %v1002_v50, 4  ;;  %v1007_v61 = vrot.slane %v1005_v51, 5  ;;  %v981_v0 = vrot.slane %v980_v54, 4  ;;  %v5764_v5 = vcombine.low %v7627_v47, %v7632_v52  ;;  %v7659_v16 = vld [vmem:[%s7556_s8 + $0x18] sm:$0xf] }
  0x1d   : > { %6502 = vmatmul.mubr.msk.bf16.gmra.mrb[4].mxu1 %vm346_vm1, %v5759_v33  ;;  %v994_v2 = vor.u32 %v993_v56, %v990_v55  ;;  %v972_v6 = vsel %vm7636_vm4, %v967_v59, %v971_v40  ;;  %v1013_v8 = vrot.slane %v1011_v57, 5  ;;  %v532_v10 = vshrl.u32 %v7627_v47, 16  ;;  %v7665_v19 = vld [vmem:[%s7556_s8 + $0xb0] sm:$0xf]  ;;  %v262_v30 = vld [vmem:[%s7556_s8 + $0xb4] sm:$0x1] }
  0x1e   : > { %v1008_v7 = vor.u32 %v1007_v61, %v1004_v60  ;;  %v986_v17 = vsel %vm7636_vm4, %v981_v0, %v985_v44  ;;  %6507 = vmatprep.mubr.msk.bf16.mxu1 %vm346_vm1, %v5764_v5  ;;  %v7669_v21 = vsel %vm359_vm0, %v7643_v58, 0  ;;  %v7672_v25 = vsel %vm359_vm0, %v280_v63, 0  ;;  %v7677_v31 = vld [vmem:[%s7556_s8 + $0xb8] sm:$0xf]  ;;  %v264_v38 = vld [vmem:[%s7556_s8 + $0xbc] sm:$0x1] }
  0x1f   : > { %v995_v18 = vrot.slane %v994_v2, 4  ;;  %v5796_v27 = vcombine.low %v972_v6, %v986_v17  ;;  %v535_v29 = vshll.u32 %v7627_v47, 16  ;;  %v546_v34 = vshrl.u32 %v7632_v52, 16  ;;  %v7687_v39 = vld [vmem:[%s7556_s8 + $0xc0] sm:$0xf] }
  0x20   : > { %v1009_v28 = vrot.slane %v1008_v7, 4  ;;  %v549_v35 = vshll.u32 %v7632_v52, 16  ;;  %v5765_v36 = vcombine.low %v7656_v15, %v7659_v16  ;;  %v7692_v41 = vrot.slane %v532_v10, 4  ;;  %v266_v43 = vld [vmem:[%s7556_s8 + $0xc4] sm:$0x1] }
  0x21   : > { %v1000_v33 = vsel %vm7636_vm4, %v995_v18, %v999_v4  ;;  %6547 = vmatprep.mubr.msk.bf16.mxu0 %vm346_vm1, %v5796_v27  ;;  %v1016_v42 = vshrl.u32 %v7665_v19, 16  ;;  %v7697_v44 = vld [vmem:[%s7556_s8 + $0xc8] sm:$0xf]  ;;  %v1019_v46 = vshll.u32 %v7665_v19, 16  ;;  %v1025_v47 = vshll.u32 %v262_v30, 16 }
  0x22   : > { %v1014_v40 = vsel %vm7636_vm4, %v1009_v28, %v1013_v8  ;;  %v1030_v48 = vshrl.u32 %v7677_v31, 16  ;;  %v268_v49 = vld [vmem:[%s7556_s8 + $0xcc] sm:$0x1]  ;;  %v1033_v51 = vshll.u32 %v7677_v31, 16  ;;  %v1039_v54 = vshll.u32 %v264_v38, 16 }
  0x23   : > { %v5797_v45 = vcombine.low %v1000_v33, %v1014_v40  ;;  %v1018_v50 = vrot.slane %v1016_v42, 4  ;;  %v1044_v55 = vshrl.u32 %v7687_v39, 16  ;;  %v7706_v56 = vld [vmem:[%s7556_s8 + $0x20] sm:$0xf]  ;;  %v1021_v57 = vrot.slane %v1019_v46, 5 }
  0x24   : > { %v1027_v59 = vrot.slane %v1025_v47, 5  ;;  %v1032_v60 = vrot.slane %v1030_v48, 4  ;;  %v1047_v61 = vshll.u32 %v7687_v39, 16  ;;  %v7711_v0 = vld [vmem:[%s7556_s8 + $0x28] sm:$0xf]  ;;  %v1035_v2 = vrot.slane %v1033_v51, 5 }
  0x25   : > { %6508 = vmatmul.mubr.msk.bf16.vlgmr.msra.gmra.mrb[0].mxu1 %vm346_vm1, %v5765_v36  ;;  %6548 = vmatmul.mubr.msk.bf16.vlgmr.msra.gmra.mrb[0].mxu0 %vm346_vm1, %v5797_v45  ;;  %v1041_v4 = vrot.slane %v1039_v54, 5  ;;  %v1046_v5 = vrot.slane %v1044_v55, 4  ;;  %v1053_v6 = vshll.u32 %v266_v43, 16  ;;  %v1022_v7 = vor.u32 %v1021_v57, %v1018_v50  ;;  %v7722_v28 = vld [vmem:[%s7556_s8 + $0x30] sm:$0xf] }
  0x26   : > { %6516 = vmatpush3.bf16.msra.mxu1 %v668_v62  ;;  %6556 = vmatpush3.bf16.msra.mxu0 %v7561_v9  ;;  %v1049_v8 = vrot.slane %v1047_v61, 5  ;;  %v1058_v62 = vshrl.u32 %v7697_v44, 16  ;;  %v1061_v10 = vshll.u32 %v7697_v44, 16  ;;  %v1036_v17 = vor.u32 %v1035_v2, %v1032_v60  ;;  %v7725_v38 = vld [vmem:[%s7556_s8 + $0x38] sm:$0xf] }
  0x27   : > { %7270 = vmatprep.subr.msk.bf16.mxu1 %vm359_vm0, %v280_v63  ;;  %7275 = vmatprep.subr.msk.bf16.mxu0 %vm359_vm0, %v7643_v58  ;;  %v1055_v18 = vrot.slane %v1053_v6, 5  ;;  %v1067_v27 = vshll.u32 %v268_v49, 16  ;;  %v5766_v9 = vcombine.low %v7706_v56, %v7711_v0  ;;  %v1023_v30 = vrot.slane %v1022_v7, 4  ;;  %v227_v54 = vld [vmem:[%s7556_s8 + $0x4] sm:$0x1] }
  0x28   : > { %v1050_v33 = vor.u32 %v1049_v8, %v1046_v5  ;;  %v1060_v63 = vrot.slane %v1058_v62, 4  ;;  %v1063_v36 = vrot.slane %v1061_v10, 5  ;;  %v537_v40 = vrot.slane %v535_v29, 5  ;;  %v229_v55 = vld [vmem:[%s7556_s8 + $0xc] sm:$0x1] }
  0x29   : > { %v560_v42 = vshrl.u32 %v7656_v15, 16  ;;  %v563_v58 = vshll.u32 %v7656_v15, 16  ;;  %v1037_v43 = vrot.slane %v1036_v17, 4  ;;  %6511 = vmatprep.mubr.msk.bf16.mxu1 %vm346_vm1, %v5766_v9  ;;  %v1028_v45 = vsel %vm7636_vm4, %v1023_v30, %v1027_v59  ;;  %v231_v7 = vld [vmem:[%s7556_s8 + $0x14] sm:$0x1] }
  0x2a   : > { %v1051_v46 = vrot.slane %v1050_v33, 4  ;;  %v1064_v47 = vor.u32 %v1063_v36, %v1060_v63  ;;  %v1069_v48 = vrot.slane %v1067_v27, 5  ;;  %v574_v49 = vshrl.u32 %v7659_v16, 16  ;;  %v233_v30 = vld [vmem:[%s7556_s8 + $0x1c] sm:$0x1] }
  0x2b   : > { %v577_v50 = vshll.u32 %v7659_v16, 16  ;;  %v1042_v29 = vsel %vm7636_vm4, %v1037_v43, %v1041_v4  ;;  %v5767_v51 = vcombine.low %v7722_v28, %v7725_v38  ;;  %v588_v61 = vshrl.u32 %v7706_v56, 16 }
  0x2c   : > { %v5798_v57 = vcombine.low %v1028_v45, %v1042_v29  ;;  %v1056_v59 = vsel %vm7636_vm4, %v1051_v46, %v1055_v18  ;;  %v1065_v60 = vrot.slane %v1064_v47, 4  ;;  %v591_v2 = vshll.u32 %v7706_v56, 16 }
  0x2d   : > { %v602_v5 = vshrl.u32 %v7711_v0, 16  ;;  %v605_v6 = vshll.u32 %v7711_v0, 16  ;;  %6512 = vmatmul.mubr.msk.bf16.gmra.mrb[4].mxu1 %vm346_vm1, %v5767_v51  ;;  %v5804_v4 = vcombine.low %v7632_v52, %v7656_v15  ;;  %v538_v62 = vor.u32 %v537_v40, %v7692_v41 }
  0x2e   : > { %6551 = vmatprep.mubr.msk.bf16.mxu0 %vm346_vm1, %v5798_v57  ;;  %v1070_v8 = vsel %vm7636_vm4, %v1065_v60, %v1069_v48  ;;  %v541_v10 = vshll.u32 %v227_v54, 16  ;;  %v548_v17 = vrot.slane %v546_v34, 4  ;;  %v551_v27 = vrot.slane %v549_v35, 5  ;;  %v237_v57 = vld [vmem:[%s7556_s8 + $0x2c] sm:$0x1] }
  0x2f   : > { %v5799_v18 = vcombine.low %v1056_v59, %v1070_v8  ;;  %v555_v9 = vshll.u32 %v229_v55, 16  ;;  %v562_v33 = vrot.slane %v560_v42, 4  ;;  %v539_v15 = vrot.slane %v538_v62, 4 }
  0x30   : > { %v543_v63 = vrot.slane %v541_v10, 5  ;;  %v565_v36 = vrot.slane %v563_v58, 5  ;;  %v569_v43 = vshll.u32 %v231_v7, 16  ;;  %v552_v45 = vor.u32 %v551_v27, %v548_v17  ;;  %v239_v10 = vld [vmem:[%s7556_s8 + $0x34] sm:$0x1] }
  0x31   : > { %6552 = vmatmul.mubr.msk.bf16.gmra.mrb[4].mxu0 %vm346_vm1, %v5799_v18  ;;  %v557_v46 = vrot.slane %v555_v9, 5  ;;  %v576_v41 = vrot.slane %v574_v49, 4  ;;  %v579_v40 = vrot.slane %v577_v50, 5  ;;  %v5805_v34 = vcombine.low %v7659_v16, %v7706_v56  ;;  %v235_v56 = vld [vmem:[%s7556_s8 + $0x24] sm:$0x1] }
  0x32   : > { %6557 = vmatprep.mubr.msk.bf16.mxu0 %vm346_vm1, %v5804_v4  ;;  %v566_v52 = vor.u32 %v565_v36, %v562_v33  ;;  %v571_v35 = vrot.slane %v569_v43, 5  ;;  %v583_v42 = vshll.u32 %v233_v30, 16  ;;  %v616_v47 = vshrl.u32 %v7722_v28, 16  ;;  %v241_v33 = vld [vmem:[%s7556_s8 + $0x3c] sm:$0x1] }
  0x33   : > { %v544_v58 = vsel %vm7636_vm4, %v539_v15, %v543_v63  ;;  %v553_v48 = vrot.slane %v552_v45, 4  ;;  %v580_v29 = vor.u32 %v579_v40, %v576_v41  ;;  %v619_v49 = vshll.u32 %v7722_v28, 16  ;;  %v285_v43 = vld [vmem:[%s9275_s1 + $0x10] sm:$0x3] }
  0x34   : > { %v630_v50 = vshrl.u32 %v7725_v38, 16  ;;  %v567_v51 = vrot.slane %v566_v52, 4  ;;  %v585_v16 = vrot.slane %v583_v42, 5  ;;  %v590_v59 = vrot.slane %v588_v61, 4 }
  0x35   : > { %v7771_v54 = vsel %vm7636_vm4, %v553_v48, %v557_v46  ;;  %v581_v55 = vrot.slane %v580_v29, 4  ;;  %v593_v60 = vrot.slane %v591_v2, 5  ;;  %v633_v4 = vshll.u32 %v7725_v38, 16 }
  0x36   : > { %v5772_v7 = vcombine.low %v544_v58, %v7771_v54  ;;  %v7778_v8 = vsel %vm7636_vm4, %v567_v51, %v571_v35  ;;  %v5806_v62 = vcombine.low %v7711_v0, %v7722_v28  ;;  %v597_v27 = vshll.u32 %v235_v56, 16 }
  0x37   : > { %v7785_v17 = vsel %vm7636_vm4, %v581_v55, %v585_v16  ;;  %v594_v18 = vor.u32 %v593_v60, %v590_v59  ;;  %v604_v61 = vrot.slane %v602_v5, 4  ;;  %v607_v9 = vrot.slane %v605_v6, 5  ;;  %v242_v5 = vld [vmem:[%s7556_s8 + $0x40] sm:$0xf] }
  0x38   : > { %6517 = vmatprep.mubr.msk.bf16.mxu1 %vm346_vm1, %v5772_v7  ;;  %v5773_v2 = vcombine.low %v7778_v8, %v7785_v17  ;;  %v611_v30 = vshll.u32 %v237_v57, 16  ;;  %v618_v15 = vrot.slane %v616_v47, 4  ;;  %v599_v28 = vrot.slane %v597_v27, 5 }
  0x39   : > { %6558 = vmatmul.mubr.msk.bf16.vlgmr.msra.gmra.mrb[0].mxu0 %vm346_vm1, %v5805_v34  ;;  %v595_v0 = vrot.slane %v594_v18, 4  ;;  %v621_v63 = vrot.slane %v619_v49, 5  ;;  %v625_v36 = vshll.u32 %v239_v10, 16  ;;  %v608_v45 = vor.u32 %v607_v9, %v604_v61 }
  0x3a   : > { %6566 = vmatpush3.bf16.msra.mxu0 %v7669_v21  ;;  %6518 = vmatmul.mubr.msk.bf16.vlgmr.msra.gmra.mrb[0].mxu1 %vm346_vm1, %v5773_v2  ;;  %v613_v6 = vrot.slane %v611_v30, 5  ;;  %v632_v46 = vrot.slane %v630_v50, 4  ;;  %v635_v41 = vrot.slane %v633_v4, 5  ;;  %v639_v52 = vshll.u32 %v241_v33, 16 }
  0x3b   : > { %6526 = vmatpush3.bf16.msra.mxu1 %v7672_v25  ;;  %6561 = vmatprep.mubr.msk.bf16.mxu0 %vm346_vm1, %v5806_v62  ;;  %v622_v40 = vor.u32 %v621_v63, %v618_v15  ;;  %v627_v34 = vrot.slane %v625_v36, 5  ;;  %v600_v35 = vsel %vm7636_vm4, %v595_v0, %v599_v28  ;;  %v609_v42 = vrot.slane %v608_v45, 4  ;;  %v287_v62 = vld [vmem:[%s9277_s3 + $0x4] sm:$0xf]  ;;  %v5828_v15 = vld [vmem:[%s9276_s2] ss:$0 sm:$0xff] }
  0x3c   : > { %v636_v47 = vor.u32 %v635_v41, %v632_v46  ;;  %7276 = vmatprep.subr.msk.bf16.mxu0 %vm359_vm0, %v285_v43  ;;  %7272 = vmatprep.subr.msk.bf16.mxu1 %vm359_vm0, %v7528_v1  ;;  %v5807_v21 = vcombine.low %v7725_v38, %v242_v5  ;;  %v641_v48 = vrot.slane %v639_v52, 5  ;;  %v5812_v25 = vcombine.low %v7565_v11, %v7568_v12 }
  0x3d   : > { %v623_v58 = vrot.slane %v622_v40, 4  ;;  %v614_v29 = vsel %vm7636_vm4, %v609_v42, %v613_v6  ;;  %v5780_v1 = vcombine.low %v7599_v24, %v7604_v26  ;;  %v5813_v12 = vcombine.low %v7571_v13, %v7574_v14  ;;  %v252_v13 = vld [vmem:[%s7556_s8 + $0x88] sm:$0xf] }
  0x3e   : > { %v637_v49 = vrot.slane %v636_v47, 4  ;;  %v5774_v50 = vcombine.low %v600_v35, %v614_v29  ;;  %v5814_v38 = vcombine.low %v7586_v20, %v7593_v22  ;;  %v1391_v24 = vsel %vm359_vm0, %v285_v43, 0 }
  0x3f   : > { %v628_v51 = vsel %vm7636_vm4, %v623_v58, %v627_v34  ;;  %v5781_v26 = vcombine.low %v7612_v32, %v7620_v37  ;;  %v5782_v56 = vcombine.low %v7665_v19, %v7677_v31  ;;  %v1360_v55 = vshrl.u32 %v242_v5, 16  ;;  %v243_v19 = vld [vmem:[%s7556_s8 + $0x44] sm:$0x1]  ;;  %v7345_v31 = vld [vmem:[%s7556_s8 + $0xf8] ss:$8 sps:$4 sm:$0xff]  }
  0x40   : > { %v642_v16 = vsel %vm7636_vm4, %v637_v49, %v641_v48  ;;  %6521 = vmatprep.mubr.msk.bf16.mxu1 %vm346_vm1, %v5774_v50  ;;  %v1363_v57 = vshll.u32 %v242_v5, 16  ;;  %v5815_v14 = vcombine.low %v7596_v23, %v252_v13  ;;  %v5820_v32 = vcombine.low %v7771_v54, %v7778_v8 }
  0x41   : > { %6562 = vmatmul.mubr.msk.bf16.gmra.mrb[4].mxu0 %vm346_vm1, %v5807_v21  ;;  %v5775_v11 = vcombine.low %v628_v51, %v642_v16  ;;  %v1362_v20 = vrot.slane %v1360_v55, 4  ;;  %v5783_v37 = vcombine.low %v7687_v39, %v7697_v44  ;;  %v1369_v59 = vshll.u32 %v243_v19, 16  ;;  %v7346_v44 = vld [vmem:[%s7556_s8 + $0x108] ss:$8 sps:$4 sm:$0xff]  }
  0x42   : > { %6567 = vmatprep.mubr.msk.bf16.mxu0 %vm346_vm1, %v5812_v25  ;;  %v1365_v22 = vrot.slane %v1363_v57, 5  ;;  %v5821_v23 = vcombine.low %v7785_v17, %v600_v35  ;;  %v5822_v60 = vcombine.low %v614_v29, %v628_v51  ;;  %v7483_v8 = vmov 0.0   ;;  %v7903_v17 = vld [vmem:[%s9277_s3] sm:$0xf] }
  0x43   : > { %6522 = vmatmul.mubr.msk.bf16.gmra.mrb[4].mxu1 %vm346_vm1, %v5775_v11  ;;  %v1371_v4 = vrot.slane %v1369_v59, 5  ;;  %1489 = vst.msk [vmem:[#allocation2 + $0x30] sm:$0xff] %vm1481_vm5, %v7483_v8  ;;  %1482 = vst.msk [vmem:[#allocation2] sm:$0xff] %vm1481_vm5, %v7483_v8  ;;  %v1740_v10 = vsel %vm1738_vm7, %v287_v62, 0 }
  0x44   : > { %6527 = vmatprep.mubr.msk.bf16.mxu1 %vm346_vm1, %v5780_v1  ;;  %1490 = vst.msk [vmem:[#allocation2 + $0x38] sm:$0x3] %vm1483_vm6, %v7483_v8  ;;  %1484 = vst.msk [vmem:[#allocation2 + $0x8] sm:$0x3] %vm1483_vm6, %v7483_v8 }
  0x45   : > { %1485 = vst.msk [vmem:[#allocation2 + $0x10] sm:$0xff] %vm1481_vm5, %v7483_v8  ;;  %1487 = vst.msk [vmem:[#allocation2 + $0x20] sm:$0xff] %vm1481_vm5, %v7483_v8 }
  0x46   : > { %1486 = vst.msk [vmem:[#allocation2 + $0x18] sm:$0x3] %vm1483_vm6, %v7483_v8  ;;  %1488 = vst.msk [vmem:[#allocation2 + $0x28] sm:$0x3] %vm1483_vm6, %v7483_v8 }
  0x47   : > { %1491 = vst.msk [vmem:[#allocation2 + $0x40] sm:$0xff] %vm1481_vm5, %v7483_v8  ;;  %1493 = vst.msk [vmem:[#allocation2 + $0x50] sm:$0xff] %vm1481_vm5, %v7483_v8 }
  0x48   : > { %1492 = vst.msk [vmem:[#allocation2 + $0x48] sm:$0x3] %vm1483_vm6, %v7483_v8  ;;  %1494 = vst.msk [vmem:[#allocation2 + $0x58] sm:$0x3] %vm1483_vm6, %v7483_v8 }
  0x49   : > { %6568 = vmatmul.mubr.msk.bf16.vlgmr.msra.gmra.mrb[0].mxu0 %vm346_vm1, %v5813_v12  ;;  %1495 = vst.msk [vmem:[#allocation2 + $0x60] sm:$0xff] %vm1481_vm5, %v7483_v8  ;;  %1497 = vst.msk [vmem:[#allocation2 + $0x70] sm:$0xff] %vm1481_vm5, %v7483_v8 }
  0x4a   : > { %6576 = vmatpush3.bf16.msra.mxu0 %v1391_v24  ;;  %6571 = vmatprep.mubr.msk.bf16.mxu0 %vm346_vm1, %v5814_v38  ;;  %1496 = vst.msk [vmem:[#allocation2 + $0x68] sm:$0x3] %vm1483_vm6, %v7483_v8  ;;  %1498 = vst.msk [vmem:[#allocation2 + $0x78] sm:$0x3] %vm1483_vm6, %v7483_v8  ;;  %v7907_v9 = vld [vmem:[#allocation2] sm:$0xff] }
  0x4b   : > { %6528 = vmatmul.mubr.msk.bf16.vlgmr.msra.gmra.mrb[0].mxu1 %vm346_vm1, %v5781_v26  ;;  %1499 = vst.msk [vmem:[#allocation2 + $0x80] sm:$0xff] %vm1481_vm5, %v7483_v8  ;;  %1501 = vst.msk [vmem:[#allocation2 + $0x90] sm:$0xff] %vm1481_vm5, %v7483_v8  ;;  %v7911_v30 = vpack.c.bf16 %v7907_v9, %v7907_v9  ;;  %v1533_v34 = vld [vmem:[#allocation2 + $0x8] sm:$0x3] }
  0x4c   : > { %6946 = vmatpush3.bf16.msra.mxu1 %v7536_v3  ;;  %6531 = vmatprep.mubr.msk.bf16.mxu1 %vm346_vm1, %v5782_v56  ;;  %v1366_v3 = vor.u32 %v1365_v22, %v1362_v20  ;;  %1500 = vst.msk [vmem:[#allocation2 + $0x88] sm:$0x3] %vm1483_vm6, %v7483_v8  ;;  %1502 = vst.msk [vmem:[#allocation2 + $0x98] sm:$0x3] %vm1483_vm6, %v7483_v8  ;;  %v7932_v48 = vpack.c.bf16 %v1533_v34, %v1533_v34 }
  0x4d   : > { %1503 = vst.msk [vmem:[#allocation3] sm:$0xff] %vm1481_vm5, %v7483_v8  ;;  %1505 = vst.msk [vmem:[#allocation3 + $0x10] sm:$0xff] %vm1481_vm5, %v7483_v8  ;;  %7277 = vmatprep.subr.msk.bf16.mxu1 %vm1738_vm7, %v287_v62  ;;  %v1603_v43 = vshrl.u32 %v7911_v30, 16  ;;  %v1606_v5 = vshll.u32 %v7911_v30, 16 }
  0x4e   : > { %v1367_v54 = vrot.slane %v1366_v3, 4  ;;  %1504 = vst.msk [vmem:[#allocation3 + $0x8] sm:$0x3] %vm1483_vm6, %v7483_v8  ;;  %1506 = vst.msk [vmem:[#allocation3 + $0x18] sm:$0x3] %vm1483_vm6, %v7483_v8 }
  0x4f   : > { %1507 = vst.msk [vmem:[#allocation3 + $0x20] sm:$0xff] %vm1481_vm5, %v7483_v8  ;;  %1509 = vst.msk [vmem:[#allocation3 + $0x30] sm:$0xff] %vm1481_vm5, %v7483_v8  ;;  %v1605_v47 = vrot.slane %v1603_v43, 4  ;;  %v1608_v21 = vrot.slane %v1606_v5, 5 }
  0x50   : > { %v1372_v39 = vsel %vm7636_vm4, %v1367_v54, %v1371_v4  ;;  %1508 = vst.msk [vmem:[#allocation3 + $0x28] sm:$0x3] %vm1483_vm6, %v7483_v8  ;;  %1510 = vst.msk [vmem:[#allocation3 + $0x38] sm:$0x3] %vm1483_vm6, %v7483_v8 }
  0x51   : > { %6572 = vmatmul.mubr.msk.bf16.gmra.mrb[4].mxu0 %vm346_vm1, %v5815_v14  ;;  %v5823_v7 = vcombine.low %v642_v16, %v1372_v39  ;;  %1511 = vst.msk [vmem:[#allocation3 + $0x40] sm:$0xff] %vm1481_vm5, %v7483_v8  ;;  %1513 = vst.msk [vmem:[#allocation3 + $0x50] sm:$0xff] %vm1481_vm5, %v7483_v8  ;;  %v1612_v16 = vshll.u32 %v7932_v48, 16  ;;  %v1609_v12 = vor.u32 %v1608_v21, %v1605_v47 }
  0x52   : > { %6577 = vmatprep.mubr.msk.bf16.mxu0 %vm346_vm1, %v5820_v32  ;;  %1512 = vst.msk [vmem:[#allocation3 + $0x48] sm:$0x3] %vm1483_vm6, %v7483_v8  ;;  %1514 = vst.msk [vmem:[#allocation3 + $0x58] sm:$0x3] %vm1483_vm6, %v7483_v8 }
  0x53   : > { %6532 = vmatmul.mubr.msk.bf16.gmra.mrb[4].mxu1 %vm346_vm1, %v5783_v37  ;;  %1515 = vst.msk [vmem:[#allocation3 + $0x60] sm:$0xff] %vm1481_vm5, %v7483_v8  ;;  %1517 = vst.msk [vmem:[#allocation3 + $0x70] sm:$0xff] %vm1481_vm5, %v7483_v8  ;;  %v1614_v32 = vrot.slane %v1612_v16, 5 }
  0x54   : > { %6541 = vmatprep.mubr.msk.bf16.mxu1 %vm346_vm1, %v7345_v31  ;;  %1516 = vst.msk [vmem:[#allocation3 + $0x68] sm:$0x3] %vm1483_vm6, %v7483_v8  ;;  %1518 = vst.msk [vmem:[#allocation3 + $0x78] sm:$0x3] %vm1483_vm6, %v7483_v8 }
  0x55   : > { %1519 = vst.msk [vmem:[#allocation3 + $0x80] sm:$0xff] %vm1481_vm5, %v7483_v8  ;;  %1521 = vst.msk [vmem:[#allocation3 + $0x90] sm:$0xff] %vm1481_vm5, %v7483_v8 }
  0x56   : > { %1520 = vst.msk [vmem:[#allocation3 + $0x88] sm:$0x3] %vm1483_vm6, %v7483_v8  ;;  %1522 = vst.msk [vmem:[#allocation3 + $0x98] sm:$0x3] %vm1483_vm6, %v7483_v8 }
  0x59   : > { %6578 = vmatmul.mubr.msk.bf16.vlgmr.msra.gmra.mrb[0].mxu0 %vm346_vm1, %v5821_v23  ;;  %v1610_v23 = vrot.slane %v1609_v12, 4 }
  0x5a   : > { %6581 = vmatprep.mubr.msk.bf16.mxu0 %vm346_vm1, %v5822_v60 }
  0x5f   : > { %6542 = vmatmul.mubr.msk.bf16.vlgmr.msra.gmra.mrb[4].mxu1 %vm346_vm1, %v7346_v44 }
  0x60   : > { %6586 = vmatpush3.bf16.msra.mxu1 %v1740_v10 }
  0x61   : > { %6582 = vmatmul.mubr.msk.bf16.gmra.mrb[4].mxu0 %vm346_vm1, %v5823_v7  ;;  %7278 = vmatprep.subr.msk.bf16.mxu1 %vm1738_vm7, %v7903_v17 }
 0x11e   : > { %v6529_v18 = vpop.f32.mrb[0].mxu1 }
 0x11f   : > { %v812_v27 = vpop.f32.mrb[1].mxu1 }
 0x120   : > { %v6530_v61 = vpop.f32.mrb[2].mxu1 }
 0x121   : > { %v815_v2 = vpop.f32.mrb[3].mxu1 }
 0x12c   : > { %v6579_v33 = vpop.f32.mrb[0].mxu0 }
 0x12d   : > { %v6947_v0 = vadd.f32 %v6579_v33, %v6529_v18  ;;  %v1427_v28 = vpop.f32.mrb[1].mxu0 }
 0x12e   : > { %v6948_v63 = vadd.f32 %v1427_v28, %v812_v27  ;;  %v6580_v36 = vpop.f32.mrb[2].mxu0 }
 0x12f   : > { %v7918_v45 = vadd.f32 %v6947_v0, %v5828_v15  ;;  %v6949_v6 = vadd.f32 %v6580_v36, %v6530_v61  ;;  %v1430_v46 = vpop.f32.mrb[3].mxu0  ;;  %v1615_v36 = vsel %vm7636_vm4, %v1610_v23, %v1614_v32 }
 0x130   : > { %v7920_v41 = vadd.f32 %v6948_v63, %v5828_v15  ;;  %v6950_v40 = vadd.f32 %v1430_v46, %v815_v2 }
 0x131   : > { %1526 = vst.msk [vmem:[#allocation2 + $0x31] sm:$0xff] %vm1481_vm5, %v7918_v45  ;;  %v7924_v52 = vadd.f32 %v6949_v6, %v5828_v15 }
 0x132   : > { %1524 = vst.msk [vmem:[#allocation2 + $0x11] sm:$0xff] %vm1481_vm5, %v7920_v41  ;;  %v7928_v35 = vadd.f32 %v6950_v40, %v5828_v15  ;;  %v6543_v42 = vpop.f32.mrb[4].mxu1 }
 0x133   : > { %1527 = vst.msk [vmem:[#allocation2 + $0x41] sm:$0xff] %vm1481_vm5, %v7924_v52  ;;  %v936_v58 = vpop.f32.mrb[5].mxu1 }
 0x134   : > { %1525 = vst.msk [vmem:[#allocation2 + $0x21] sm:$0xff] %vm1481_vm5, %v7928_v35  ;;  %v6583_v25 = vpop.f32.mrb[4].mxu0  ;;  %v6544_v29 = vpop.f32.mrb[6].mxu1 }
 0x135   : > { %v6951_v49 = vadd.f32 %v6583_v25, %v6543_v42  ;;  %v1443_v50 = vpop.f32.mrb[5].mxu0  ;;  %v939_v51 = vpop.f32.mrb[7].mxu1  ;;  %v1824_v42 = vsel %vm1738_vm7, %v7903_v17, 0 }
 0x136   : > { %v6952_v1 = vadd.f32 %v1443_v50, %v936_v58  ;;  %v6584_v11 = vpop.f32.mrb[6].mxu0 }
 0x137   : > { %v7937_v38 = vadd.f32 %v6951_v49, %v5828_v15  ;;  %v6953_v24 = vadd.f32 %v6584_v11, %v6544_v29  ;;  %v1446_v26 = vpop.f32.mrb[7].mxu0 }
 0x138   : > { %v7939_v56 = vadd.f32 %v6952_v1, %v5828_v15  ;;  %v6954_v55 = vadd.f32 %v1446_v26, %v939_v51  ;;  %v7941_v57 = vld [vmem:[#allocation2 + $0x30] sm:$0xff]  ;;  %v1539_v13 = vld [vmem:[#allocation2 + $0x38] sm:$0x3] }
 0x139   : > { %1530 = vst.msk [vmem:[#allocation2 + $0x71] sm:$0xff] %vm1481_vm5, %v7937_v38  ;;  %v7945_v14 = vadd.f32 %v6953_v24, %v5828_v15  ;;  %v7947_v20 = vld [vmem:[#allocation2 + $0x10] sm:$0xff]  ;;  %v1535_v22 = vld [vmem:[#allocation2 + $0x18] sm:$0x3]  ;;  %v7951_v37 = vpack.c.bf16 %v7941_v57, %v7941_v57  ;;  %v7953_v19 = vpack.c.bf16 %v1539_v13, %v1539_v13 }
 0x13a   : > { %1528 = vst.msk [vmem:[#allocation2 + $0x51] sm:$0xff] %vm1481_vm5, %v7939_v56  ;;  %v7957_v31 = vadd.f32 %v6954_v55, %v5828_v15  ;;  %v7961_v3 = vpack.c.bf16 %v7947_v20, %v7947_v20  ;;  %v7963_v59 = vpack.c.bf16 %v1535_v22, %v1535_v22  ;;  %v7971_v44 = vld [vmem:[#allocation2 + $0x40] sm:$0xff]  ;;  %v1541_v28 = vld [vmem:[#allocation2 + $0x48] sm:$0x3] }
 0x13b   : > { %1531 = vst.msk [vmem:[#allocation2 + $0x81] sm:$0xff] %vm1481_vm5, %v7945_v14  ;;  %v7967_v60 = vld [vmem:[#allocation2 + $0x20] sm:$0xff]  ;;  %v1537_v54 = vld [vmem:[#allocation2 + $0x28] sm:$0x3]  ;;  %v1645_v4 = vshrl.u32 %v7951_v37, 16  ;;  %v1648_v39 = vshll.u32 %v7951_v37, 16  ;;  %v7988_v63 = vpack.c.bf16 %v7971_v44, %v7971_v44  ;;  %v8000_v50 = vpack.c.bf16 %v1541_v28, %v1541_v28 }
 0x13c   : > { %1529 = vst.msk [vmem:[#allocation2 + $0x61] sm:$0xff] %vm1481_vm5, %v7957_v31  ;;  %v1617_v7 = vshrl.u32 %v7961_v3, 16  ;;  %v1620_v8 = vshll.u32 %v7961_v3, 16  ;;  %v7979_v62 = vpack.c.bf16 %v7967_v60, %v7967_v60  ;;  %v1654_v10 = vshll.u32 %v7953_v19, 16 }
 0x13d   : > { %v1626_v18 = vshll.u32 %v7963_v59, 16  ;;  %v7983_v27 = vpack.c.bf16 %v1537_v54, %v1537_v54  ;;  %v1647_v61 = vrot.slane %v1645_v4, 4  ;;  %v1650_v2 = vrot.slane %v1648_v39, 5 }
 0x13e   : > { %v1619_v33 = vrot.slane %v1617_v7, 4  ;;  %v1622_v15 = vrot.slane %v1620_v8, 5  ;;  %v1631_v0 = vshrl.u32 %v7979_v62, 16  ;;  %v1634_v43 = vshll.u32 %v7979_v62, 16 }
 0x13f   : > { %v1640_v5 = vshll.u32 %v7983_v27, 16  ;;  %v1651_v6 = vor.u32 %v1650_v2, %v1647_v61  ;;  %v1656_v34 = vrot.slane %v1654_v10, 5  ;;  %v1628_v21 = vrot.slane %v1626_v18, 5 }
 0x140   : > { %v1623_v46 = vor.u32 %v1622_v15, %v1619_v33  ;;  %v1633_v40 = vrot.slane %v1631_v0, 4  ;;  %v7996_v47 = vld [vmem:[#allocation2 + $0x70] sm:$0xff]  ;;  %v1636_v58 = vrot.slane %v1634_v43, 5  ;;  %v1659_v11 = vshrl.u32 %v7988_v63, 16  ;;  %v1547_v10 = vld [vmem:[#allocation2 + $0x78] sm:$0x3] }
 0x141   : > { %v1642_v25 = vrot.slane %v1640_v5, 5  ;;  %v7998_v29 = vld [vmem:[#allocation2 + $0x50] sm:$0xff]  ;;  %v1543_v49 = vld [vmem:[#allocation2 + $0x58] sm:$0x3]  ;;  %v1652_v12 = vrot.slane %v1651_v6, 4  ;;  %v1662_v24 = vshll.u32 %v7988_v63, 16  ;;  %v8014_v55 = vpack.c.bf16 %v7996_v47, %v7996_v47 }
 0x142   : > { %v1624_v51 = vrot.slane %v1623_v46, 4  ;;  %v8004_v16 = vpack.c.bf16 %v7998_v29, %v7998_v29  ;;  %v8006_v1 = vpack.c.bf16 %v1543_v49, %v1543_v49  ;;  %v1637_v17 = vor.u32 %v1636_v58, %v1633_v40 }
 0x143   : > { %v8010_v26 = vld [vmem:[#allocation2 + $0x60] sm:$0xff]  ;;  %v1661_v22 = vrot.slane %v1659_v11, 4  ;;  %v1545_v54 = vld [vmem:[#allocation2 + $0x68] sm:$0x3]  ;;  %v1664_v7 = vrot.slane %v1662_v24, 5  ;;  %v1668_v8 = vshll.u32 %v8000_v50, 16  ;;  %v8039_v0 = vsel %vm7636_vm4, %v1652_v12, %v1656_v34 }
 0x144   : > { %v8018_v13 = vsel %vm7636_vm4, %v1624_v51, %v1628_v21  ;;  %v1673_v32 = vshrl.u32 %v8004_v16, 16  ;;  %v1676_v23 = vshll.u32 %v8004_v16, 16  ;;  %v1638_v39 = vrot.slane %v1637_v17, 4  ;;  %v288_v34 = vld [vmem:[%s9277_s3 + $0x8] sm:$0xf] }
 0x145   : > { %v8023_v4 = vcombine.low %v1615_v36, %v8018_v13  ;;  %v1682_v2 = vshll.u32 %v8006_v1, 16  ;;  %v8029_v33 = vpack.c.bf16 %v8010_v26, %v8010_v26  ;;  %v1665_v28 = vor.u32 %v1664_v7, %v1661_v22 }
 0x146   : > { %v1675_v18 = vrot.slane %v1673_v32, 4  ;;  %v1678_v61 = vrot.slane %v1676_v23, 5  ;;  %v8035_v15 = vsel %vm7636_vm4, %v1638_v39, %v1642_v25  ;;  %v8041_v36 = vpack.c.bf16 %v1545_v54, %v1545_v54 }
 0x147   : > { %6587 = vmatprep.mubr.msk.bf16.mxu1 %vm1481_vm5, %v8023_v4  ;;  %v8045_v43 = vcombine.low %v8035_v15, %v8039_v0  ;;  %v8047_v6 = vpack.c.bf16 %v1547_v10, %v1547_v10  ;;  %v1687_v46 = vshrl.u32 %v8029_v33, 16  ;;  %v1666_v40 = vrot.slane %v1665_v28, 4 }
 0x148   : > { %v1679_v5 = vor.u32 %v1678_v61, %v1675_v18  ;;  %v1670_v21 = vrot.slane %v1668_v8, 5  ;;  %v1690_v58 = vshll.u32 %v8029_v33, 16  ;;  %v1701_v25 = vshrl.u32 %v8014_v55, 16 }
 0x149   : > { %6588 = vmatmul.mubr.msk.bf16.vlgmr.msra.gmra.mrb[8].mxu1 %vm1481_vm5, %v8045_v43  ;;  %v1684_v51 = vrot.slane %v1682_v2, 5  ;;  %v1689_v11 = vrot.slane %v1687_v46, 4  ;;  %v1704_v17 = vshll.u32 %v8014_v55, 16  ;;  %v1696_v24 = vshll.u32 %v8041_v36, 16 }
 0x14a   : > { %v1680_v49 = vrot.slane %v1679_v5, 4  ;;  %6596 = vmatpush3.bf16.msra.mxu1 %v1824_v42  ;;  %v1692_v12 = vrot.slane %v1690_v58, 5  ;;  %v1703_v22 = vrot.slane %v1701_v25, 4  ;;  %v8061_v32 = vsel %vm7636_vm4, %v1666_v40, %v1670_v21 }
 0x14b   : > { %v1706_v54 = vrot.slane %v1704_v17, 5  ;;  %v1710_v39 = vshll.u32 %v8047_v6, 16  ;;  %7279 = vmatprep.subr.msk.bf16.mxu1 %vm1738_vm7, %v288_v34  ;;  %v1698_v18 = vrot.slane %v1696_v24, 5  ;;  %v8089_v40 = vpack.c.bf16 %v7947_v20, %v7907_v9  ;;  %v289_v9 = vld [vmem:[%s9277_s3 + $0xc] sm:$0xf] }
 0x14c   : > { %v8065_v23 = vsel %vm7636_vm4, %v1680_v49, %v1684_v51  ;;  %v1693_v7 = vor.u32 %v1692_v12, %v1689_v11  ;;  %v8097_v21 = vpack.c.bf16 %v7941_v57, %v7967_v60  ;;  %v1951_v58 = vsel %vm1738_vm7, %v288_v34, 0 }
 0x14d   : > { %v8071_v42 = vcombine.low %v8061_v32, %v8065_v23  ;;  %v1707_v8 = vor.u32 %v1706_v54, %v1703_v22  ;;  %v1712_v2 = vrot.slane %v1710_v39, 5  ;;  %v8102_v25 = vpack.c.bf16 %v7998_v29, %v7971_v44 }
 0x14e   : > { %v1694_v10 = vrot.slane %v1693_v7, 4  ;;  %v5861_v49 = vrot.slane %v7911_v30, 9  ;;  %v1896_v51 = vrot.slane %v7932_v48, 5  ;;  %v5862_v11 = vrot.slane %v7961_v3, 9 }
 0x14f   : > { %6591 = vmatprep.mubr.msk.bf16.mxu1 %vm1481_vm5, %v8071_v42  ;;  %v1708_v61 = vrot.slane %v1707_v8, 4  ;;  %v1900_v34 = vrot.slane %v7963_v59, 5  ;;  %v8128_v48 = vpack.c.bf16 %v7996_v47, %v8010_v26  ;;  %v1904_v3 = vrot.slane %v7983_v27, 5 }
 0x150   : > { %v8077_v28 = vsel %vm7636_vm4, %v1694_v10, %v1698_v18  ;;  %v1897_v12 = vsel %vm8115_vm10, %v5861_v49, %v1896_v51  ;;  %v5863_v24 = vrot.slane %v7979_v62, 9  ;;  %v5866_v22 = vrot.slane %v8004_v16, 9 }
 0x151   : > { %v8081_v5 = vsel %vm7636_vm4, %v1708_v61, %v1712_v2  ;;  %v8124_v30 = vsel %vm8115_vm10, %v5862_v11, %v1900_v34  ;;  %v1916_v54 = vrot.slane %v8006_v1, 5  ;;  %v1908_v39 = vrot.slane %v7953_v19, 5  ;;  %v290_v61 = vld [vmem:[%s9277_s3 + $0x10] sm:$0xf] }
 0x152   : > { %v8085_v46 = vcombine.low %v8077_v28, %v8081_v5  ;;  %v8132_v59 = vcombine.low %v1897_v12, %v8124_v30  ;;  %v5864_v7 = vrot.slane %v7951_v37, 9  ;;  %v5865_v27 = vrot.slane %v7988_v63, 9 }
 0x153   : > { %v1912_v8 = vrot.slane %v8000_v50, 5  ;;  %v1905_v62 = vsel %vm8115_vm10, %v5863_v24, %v1904_v3  ;;  %v1917_v10 = vsel %vm8115_vm10, %v5866_v22, %v1916_v54  ;;  %v2045_v19 = vsel %vm1738_vm7, %v289_v9, 0 }
 0x154   : > { %6592 = vmatmul.mubr.msk.bf16.gmra.mrb[12].mxu1 %vm1481_vm5, %v8085_v46  ;;  %v1909_v16 = vsel %vm8115_vm10, %v5864_v7, %v1908_v39  ;;  %v5867_v63 = vrot.slane %v8029_v33, 9  ;;  %v1920_v50 = vrot.slane %v8041_v36, 5  ;;  %v5868_v2 = vrot.slane %v8014_v55, 9  ;;  %v1548_v55 = vld [vmem:[#allocation2 + $0x80] sm:$0xff]  ;;  %v292_v7 = vld [vmem:[%s9277_s3 + $0x18] sm:$0xf] }
 0x155   : > { %6597 = vmatprep.mubr.msk.bf16.mxu1 %vm1481_vm5, %v8089_v40  ;;  %v8151_v1 = vcombine.low %v1905_v62, %v1909_v16  ;;  %v1913_v37 = vsel %vm8115_vm10, %v5865_v27, %v1912_v8  ;;  %v8178_v49 = vpack.c.bf16 %v7967_v60, %v7947_v20  ;;  %v2155_v51 = vsel %vm1738_vm7, %v290_v61, 0  ;;  %v291_v20 = vld [vmem:[%s9277_s3 + $0x14] sm:$0xf] }
 0x156   : > { %v8156_v18 = vcombine.low %v1913_v37, %v1917_v10  ;;  %v1921_v33 = vsel %vm8115_vm10, %v5867_v63, %v1920_v50  ;;  %v8191_v11 = vpack.c.bf16 %v8010_v26, %v7998_v29  ;;  %v6207_v34 = vpack.c.bf16 %v1548_v55, %v1548_v55  ;;  %v1549_v29 = vld [vmem:[#allocation2 + $0x88] sm:$0x3] }
 0x157   : > { %v8206_v26 = vcombine.low %v8018_v13, %v8035_v15  ;;  %v6208_v24 = vpack.c.bf16 %v1549_v29, %v1549_v29  ;;  %v2252_v39 = vsel %vm1738_vm7, %v291_v20, 0  ;;  %v8219_v13 = vcombine.low %v8065_v23, %v8077_v28 }
 0x158   : > { %v2127_v60 = vshll.u32 %v6207_v34, 16  ;;  %v8235_v28 = vcombine.low %v8124_v30, %v1905_v62  ;;  %v8241_v27 = vcombine.low %v1909_v16, %v1913_v37  ;;  %v2334_v8 = vsel %vm1738_vm7, %v292_v7, 0 }
 0x159   : > { %v2133_v54 = vshll.u32 %v6208_v24, 16  ;;  %v5895_v63 = vrot.slane %v6207_v34, 9  ;;  %v2232_v50 = vrot.slane %v6208_v24, 5 }
 0x15a   : > { %v2129_v3 = vrot.slane %v2127_v60, 5 }
 0x15b   : > { %v2233_v30 = vsel %vm8115_vm10, %v5895_v63, %v2232_v50  ;;  %v306_v63 = vld [vmem:[%s9277_s3 + $0x50] sm:$0xf]  ;;  %v307_v50 = vld [vmem:[%s9277_s3 + $0x54] sm:$0xf] }
 0x15c   : > { %6598 = vmatmul.mubr.msk.bf16.vlgmr.msra.gmra.mrb[8].mxu1 %vm1481_vm5, %v8097_v21 }
 0x15d   : > { %6606 = vmatpush3.bf16.msra.mxu1 %v1951_v58  ;;  %6601 = vmatprep.mubr.msk.bf16.mxu1 %vm1481_vm5, %v8102_v25  ;;  %v1924_v58 = vrot.slane %v8047_v6, 5  ;;  %v8186_v6 = vpack.c.bf16 %v7971_v44, %v7941_v57  ;;  %v2124_v57 = vshrl.u32 %v6207_v34, 16  ;;  %v8202_v44 = vpack.c.bf16 %v1548_v55, %v7996_v47 }
 0x15e   : > { %7280 = vmatprep.subr.msk.bf16.mxu1 %vm1738_vm7, %v289_v9  ;;  %v8214_v47 = vcombine.low %v8039_v0, %v8061_v32  ;;  %v2135_v0 = vrot.slane %v2133_v54, 5 }
 0x15f   : > { %v1925_v36 = vsel %vm8115_vm10, %v5868_v2, %v1924_v58  ;;  %v2126_v12 = vrot.slane %v2124_v57, 4 }
 0x160   : > { %v8174_v9 = vcombine.low %v1921_v33, %v1925_v36  ;;  %v8256_v62 = vcombine.low %v1925_v36, %v2233_v30  ;;  %v1551_v36 = vld [vmem:[#allocation2 + $0x98] sm:$0x3] }
 0x161   : > { %v2130_v22 = vor.u32 %v2129_v3, %v2126_v12 }
 0x163   : > { %v2131_v15 = vrot.slane %v2130_v22, 4 }
 0x164   : > { %6602 = vmatmul.mubr.msk.bf16.gmra.mrb[12].mxu1 %vm1481_vm5, %v8128_v48 }
 0x165   : > { %6607 = vmatprep.mubr.msk.bf16.mxu1 %vm1481_vm5, %v8132_v59  ;;  %v2136_v32 = vsel %vm7636_vm4, %v2131_v15, %v2135_v0 }
 0x166   : > { %v8232_v23 = vcombine.low %v8081_v5, %v2136_v32  ;;  %v293_v5 = vld [vmem:[%s9277_s3 + $0x1c] sm:$0xf] }
 0x167   : > { %v2432_v16 = vsel %vm1738_vm7, %v293_v5, 0 }
 0x16c   : > { %6608 = vmatmul.mubr.msk.bf16.vlgmr.msra.gmra.mrb[8].mxu1 %vm1481_vm5, %v8151_v1 }
 0x16d   : > { %6616 = vmatpush3.bf16.msra.mxu1 %v2045_v19  ;;  %6611 = vmatprep.mubr.msk.bf16.mxu1 %vm1481_vm5, %v8156_v18  ;;  %v8244_v19 = vcombine.low %v1917_v10, %v1921_v33  ;;  %v1550_v10 = vld [vmem:[#allocation2 + $0x90] sm:$0xff] }
 0x16e   : > { %7281 = vmatprep.subr.msk.bf16.mxu1 %vm1738_vm7, %v290_v61  ;;  %v6210_v37 = vpack.c.bf16 %v1550_v10, %v1550_v10  ;;  %v294_v61 = vld [vmem:[%s9277_s3 + $0x20] sm:$0xf]  ;;  %v8271_v33 = vpack.c.bf16 %v1550_v10, %v1548_v55  ;;  %v305_v55 = vld [vmem:[%s9277_s3 + $0x4c] sm:$0xf] }
 0x16f   : > { %v2517_v29 = vsel %vm1738_vm7, %v294_v61, 0  ;;  %v3806_v54 = vsel %vm1738_vm7, %v305_v55, 0  ;;  %v310_v10 = vld [vmem:[%s9277_s3 + $0x60] sm:$0xf] }
 0x170   : > { %v2413_v2 = vshrl.u32 %v6210_v37, 16  ;;  %v2416_v58 = vshll.u32 %v6210_v37, 16 }
 0x172   : > { %v2418_v34 = vrot.slane %v2416_v58, 5 }
 0x174   : > { %6612 = vmatmul.mubr.msk.bf16.gmra.mrb[12].mxu1 %vm1481_vm5, %v8174_v9 }
 0x175   : > { %6617 = vmatprep.mubr.msk.bf16.mxu1 %vm1481_vm5, %v8178_v49 }
 0x17c   : > { %6618 = vmatmul.mubr.msk.bf16.vlgmr.msra.gmra.mrb[8].mxu1 %vm1481_vm5, %v8186_v6 }
 0x17d   : > { %6626 = vmatpush3.bf16.msra.mxu1 %v2155_v51  ;;  %6621 = vmatprep.mubr.msk.bf16.mxu1 %vm1481_vm5, %v8191_v11  ;;  %v2415_v51 = vrot.slane %v2413_v2, 4 }
 0x17e   : > { %7282 = vmatprep.subr.msk.bf16.mxu1 %vm1738_vm7, %v291_v20  ;;  %v6211_v20 = vpack.c.bf16 %v1551_v36, %v1551_v36 }
 0x17f   : > { %v2419_v57 = vor.u32 %v2418_v34, %v2415_v51 }
 0x180   : > { %v2422_v60 = vshll.u32 %v6211_v20, 16  ;;  %v2509_v15 = vrot.slane %v6211_v20, 5 }
 0x181   : > { %v2420_v12 = vrot.slane %v2419_v57, 4 }
 0x182   : > { %v2424_v3 = vrot.slane %v2422_v60, 5 }
 0x184   : > { %6622 = vmatmul.mubr.msk.bf16.gmra.mrb[12].mxu1 %vm1481_vm5, %v8202_v44  ;;  %v2425_v24 = vsel %vm7636_vm4, %v2420_v12, %v2424_v3 }
 0x185   : > { %6627 = vmatprep.mubr.msk.bf16.mxu1 %vm1481_vm5, %v8206_v26  ;;  %v8288_v22 = vcombine.low %v2136_v32, %v2425_v24 }
 0x18c   : > { %6628 = vmatmul.mubr.msk.bf16.vlgmr.msra.gmra.mrb[8].mxu1 %vm1481_vm5, %v8214_v47 }
 0x18d   : > { %6636 = vmatpush3.bf16.msra.mxu1 %v2252_v39  ;;  %6631 = vmatprep.mubr.msk.bf16.mxu1 %vm1481_vm5, %v8219_v13  ;;  %v5916_v39 = vrot.slane %v6210_v37, 9 }
 0x18e   : > { %7283 = vmatprep.subr.msk.bf16.mxu1 %vm1738_vm7, %v292_v7  ;;  %v304_v7 = vld [vmem:[%s9277_s3 + $0x48] sm:$0xf] }
 0x18f   : > { %v2510_v0 = vsel %vm8115_vm10, %v5916_v39, %v2509_v15 }
 0x190   : > { %v8305_v32 = vcombine.low %v2233_v30, %v2510_v0  ;;  %v309_v30 = vld [vmem:[%s9277_s3 + $0x5c] sm:$0xf] }
 0x194   : > { %6632 = vmatmul.mubr.msk.bf16.gmra.mrb[12].mxu1 %vm1481_vm5, %v8232_v23 }
 0x195   : > { %6637 = vmatprep.mubr.msk.bf16.mxu1 %vm1481_vm5, %v8235_v28 }
 0x19c   : > { %6638 = vmatmul.mubr.msk.bf16.vlgmr.msra.gmra.mrb[8].mxu1 %vm1481_vm5, %v8241_v27 }
 0x19d   : > { %6646 = vmatpush3.bf16.msra.mxu1 %v2334_v8  ;;  %6641 = vmatprep.mubr.msk.bf16.mxu1 %vm1481_vm5, %v8244_v19  ;;  %v3874_v8 = vsel %vm1738_vm7, %v304_v7, 0 }
 0x19e   : > { %7284 = vmatprep.subr.msk.bf16.mxu1 %vm1738_vm7, %v293_v5  ;;  %v308_v5 = vld [vmem:[%s9277_s3 + $0x58] sm:$0xf] }
 0x1a4   : > { %6642 = vmatmul.mubr.msk.bf16.gmra.mrb[12].mxu1 %vm1481_vm5, %v8256_v62 }
 0x1a5   : > { %6647 = vmatprep.mubr.msk.bf16.mxu1 %vm1481_vm5, %v8097_v21 }
 0x1ac   : > { %6648 = vmatmul.mubr.msk.bf16.vlgmr.msra.gmra.mrb[8].mxu1 %vm1481_vm5, %v8102_v25 }
 0x1ad   : > { %6656 = vmatpush3.bf16.msra.mxu1 %v2432_v16  ;;  %6651 = vmatprep.mubr.msk.bf16.mxu1 %vm1481_vm5, %v8128_v48 }
 0x1ae   : > { %7285 = vmatprep.subr.msk.bf16.mxu1 %vm1738_vm7, %v294_v61 }
 0x1b4   : > { %6652 = vmatmul.mubr.msk.bf16.gmra.mrb[12].mxu1 %vm1481_vm5, %v8271_v33 }
 0x1b5   : > { %6657 = vmatprep.mubr.msk.bf16.mxu1 %vm1481_vm5, %v8045_v43 }
 0x1bc   : > { %6658 = vmatmul.mubr.msk.bf16.vlgmr.msra.gmra.mrb[8].mxu1 %vm1481_vm5, %v8071_v42 }
 0x1bd   : > { %6666 = vmatpush3.bf16.msra.mxu1 %v2517_v29  ;;  %6661 = vmatprep.mubr.msk.bf16.mxu1 %vm1481_vm5, %v8085_v46 }
 0x1be   : > { %7295 = vmatprep.subr.msk.bf16.mxu1 %vm1738_vm7, %v305_v55 }
 0x1c4   : > { %6662 = vmatmul.mubr.msk.bf16.gmra.mrb[12].mxu1 %vm1481_vm5, %v8288_v22 }
 0x1c5   : > { %6667 = vmatprep.mubr.msk.bf16.mxu1 %vm1481_vm5, %v8151_v1 }
 0x1cc   : > { %6668 = vmatmul.mubr.msk.bf16.vlgmr.msra.gmra.mrb[8].mxu1 %vm1481_vm5, %v8156_v18 }
 0x1cd   : > { %6766 = vmatpush3.bf16.msra.mxu1 %v3806_v54  ;;  %6671 = vmatprep.mubr.msk.bf16.mxu1 %vm1481_vm5, %v8174_v9 }
 0x1ce   : > { %7296 = vmatprep.subr.msk.bf16.mxu1 %vm1738_vm7, %v304_v7  ;;  %v8447_v7 = vld [vmem:[#allocation3] sm:$0xff] }
 0x1d4   : > { %6672 = vmatmul.mubr.msk.bf16.gmra.mrb[12].mxu1 %vm1481_vm5, %v8305_v32 }
 0x1d5   : > { %6767 = vmatprep.mubr.msk.bf16.mxu1 %vm1481_vm5, %v8023_v4  ;;  %v3942_v4 = vsel %vm1738_vm7, %v306_v63, 0 }
 0x1dc   : > { %6768 = vmatmul.mubr.msk.bf16.vlgmr.msra.gmra.mrb[16].mxu1 %vm1481_vm5, %v8045_v43 }
 0x1dd   : > { %6776 = vmatpush3.bf16.msra.mxu1 %v3874_v8  ;;  %6771 = vmatprep.mubr.msk.bf16.mxu1 %vm1481_vm5, %v8071_v42 }
 0x1de   : > { %7297 = vmatprep.subr.msk.bf16.mxu1 %vm1738_vm7, %v306_v63 }
 0x1e4   : > { %6772 = vmatmul.mubr.msk.bf16.gmra.mrb[20].mxu1 %vm1481_vm5, %v8085_v46 }
 0x1e5   : > { %6777 = vmatprep.mubr.msk.bf16.mxu1 %vm1481_vm5, %v8089_v40  ;;  %v4018_v40 = vsel %vm1738_vm7, %v307_v50, 0 }
 0x1ec   : > { %6778 = vmatmul.mubr.msk.bf16.vlgmr.msra.gmra.mrb[16].mxu1 %vm1481_vm5, %v8097_v21 }
 0x1ed   : > { %6786 = vmatpush3.bf16.msra.mxu1 %v3942_v4  ;;  %6781 = vmatprep.mubr.msk.bf16.mxu1 %vm1481_vm5, %v8102_v25 }
 0x1ee   : > { %7298 = vmatprep.subr.msk.bf16.mxu1 %vm1738_vm7, %v307_v50 }
 0x1f4   : > { %6782 = vmatmul.mubr.msk.bf16.gmra.mrb[20].mxu1 %vm1481_vm5, %v8128_v48 }
 0x1f5   : > { %6787 = vmatprep.mubr.msk.bf16.mxu1 %vm1481_vm5, %v8132_v59  ;;  %v4094_v59 = vsel %vm1738_vm7, %v308_v5, 0 }
 0x1fc   : > { %6788 = vmatmul.mubr.msk.bf16.vlgmr.msra.gmra.mrb[16].mxu1 %vm1481_vm5, %v8151_v1 }
 0x1fd   : > { %6796 = vmatpush3.bf16.msra.mxu1 %v4018_v40  ;;  %6791 = vmatprep.mubr.msk.bf16.mxu1 %vm1481_vm5, %v8156_v18 }
 0x1fe   : > { %7299 = vmatprep.subr.msk.bf16.mxu1 %vm1738_vm7, %v308_v5 }
 0x204   : > { %6792 = vmatmul.mubr.msk.bf16.gmra.mrb[20].mxu1 %vm1481_vm5, %v8174_v9 }
 0x205   : > { %6797 = vmatprep.mubr.msk.bf16.mxu1 %vm1481_vm5, %v8178_v49  ;;  %v4170_v49 = vsel %vm1738_vm7, %v309_v30, 0 }
 0x20c   : > { %6798 = vmatmul.mubr.msk.bf16.vlgmr.msra.gmra.mrb[16].mxu1 %vm1481_vm5, %v8186_v6  ;;  %v4246_v6 = vsel %vm1738_vm7, %v310_v10, 0 }
 0x20d   : > { %6806 = vmatpush3.bf16.msra.mxu1 %v4094_v59  ;;  %6801 = vmatprep.mubr.msk.bf16.mxu1 %vm1481_vm5, %v8191_v11  ;;  %v311_v11 = vld [vmem:[%s9277_s3 + $0x64] sm:$0xf] }
 0x20e   : > { %7300 = vmatprep.subr.msk.bf16.mxu1 %vm1738_vm7, %v309_v30 }
 0x214   : > { %6802 = vmatmul.mubr.msk.bf16.gmra.mrb[20].mxu1 %vm1481_vm5, %v8202_v44  ;;  %v4322_v44 = vsel %vm1738_vm7, %v311_v11, 0 }
 0x215   : > { %6807 = vmatprep.mubr.msk.bf16.mxu1 %vm1481_vm5, %v8206_v26  ;;  %v312_v26 = vld [vmem:[%s9277_s3 + $0x68] sm:$0xf] }
 0x21c   : > { %6808 = vmatmul.mubr.msk.bf16.vlgmr.msra.gmra.mrb[16].mxu1 %vm1481_vm5, %v8214_v47  ;;  %v4398_v47 = vsel %vm1738_vm7, %v312_v26, 0 }
 0x21d   : > { %6816 = vmatpush3.bf16.msra.mxu1 %v4170_v49  ;;  %6811 = vmatprep.mubr.msk.bf16.mxu1 %vm1481_vm5, %v8219_v13 }
 0x21e   : > { %7301 = vmatprep.subr.msk.bf16.mxu1 %vm1738_vm7, %v310_v10 }
 0x224   : > { %6812 = vmatmul.mubr.msk.bf16.gmra.mrb[20].mxu1 %vm1481_vm5, %v8232_v23 }
 0x225   : > { %6817 = vmatprep.mubr.msk.bf16.mxu1 %vm1481_vm5, %v8235_v28 }
 0x22c   : > { %6818 = vmatmul.mubr.msk.bf16.vlgmr.msra.gmra.mrb[16].mxu1 %vm1481_vm5, %v8241_v27 }
 0x22d   : > { %6826 = vmatpush3.bf16.msra.mxu1 %v4246_v6  ;;  %6821 = vmatprep.mubr.msk.bf16.mxu1 %vm1481_vm5, %v8244_v19 }
 0x22e   : > { %7302 = vmatprep.subr.msk.bf16.mxu1 %vm1738_vm7, %v311_v11 }
 0x234   : > { %6822 = vmatmul.mubr.msk.bf16.gmra.mrb[20].mxu1 %vm1481_vm5, %v8256_v62 }
 0x235   : > { %6827 = vmatprep.mubr.msk.bf16.mxu1 %vm1481_vm5, %v8097_v21  ;;  %v296_v21 = vld [vmem:[%s9277_s3 + $0x28] sm:$0xf] }
 0x236   : > { %7286 = vmatprep.subr.msk.bf16.mxu0 %vm1738_vm7, %v296_v21 }
 0x23c   : > { %6828 = vmatmul.mubr.msk.bf16.vlgmr.msra.gmra.mrb[16].mxu1 %vm1481_vm5, %v8102_v25  ;;  %v2878_v25 = vsel %vm1738_vm7, %v296_v21, 0 }
 0x23d   : > { %6836 = vmatpush3.bf16.msra.mxu1 %v4322_v44  ;;  %6831 = vmatprep.mubr.msk.bf16.mxu1 %vm1481_vm5, %v8128_v48  ;;  %v2672_v44 = vld [vmem:[#allocation3 + $0x8] sm:$0x3] }
 0x23e   : > { %7303 = vmatprep.subr.msk.bf16.mxu1 %vm1738_vm7, %v312_v26  ;;  %6676 = vmatpush3.bf16.msra.mxu0 %v2878_v25 }
 0x244   : > { %6832 = vmatmul.mubr.msk.bf16.gmra.mrb[20].mxu1 %vm1481_vm5, %v8271_v33 }
 0x245   : > { %6837 = vmatprep.mubr.msk.bf16.mxu1 %vm1481_vm5, %v8045_v43  ;;  %v8417_v43 = vld [vmem:[%s9277_s3 + $0x24] sm:$0xf] }
 0x246   : > { %7287 = vmatprep.subr.msk.bf16.mxu0 %vm1738_vm7, %v8417_v43 }
 0x24c   : > { %6838 = vmatmul.mubr.msk.bf16.vlgmr.msra.gmra.mrb[16].mxu1 %vm1481_vm5, %v8071_v42  ;;  %v5922_v42 = vld [vmem:[%s9278_s4] ss:$0 sm:$0xff] }
 0x24d   : > { %6846 = vmatpush3.bf16.msra.mxu1 %v4398_v47  ;;  %6841 = vmatprep.mubr.msk.bf16.mxu1 %vm1481_vm5, %v8085_v46 }
 0x254   : > { %6842 = vmatmul.mubr.msk.bf16.gmra.mrb[20].mxu1 %vm1481_vm5, %v8288_v22 }
 0x255   : > { %6847 = vmatprep.mubr.msk.bf16.mxu1 %vm1481_vm5, %v8151_v1 }
 0x25c   : > { %6848 = vmatmul.mubr.msk.bf16.vlgmr.msra.gmra.mrb[16].mxu1 %vm1481_vm5, %v8156_v18 }
 0x25d   : > { %6851 = vmatprep.mubr.msk.bf16.mxu1 %vm1481_vm5, %v8174_v9 }
 0x264   : > { %6852 = vmatmul.mubr.msk.bf16.gmra.mrb[20].mxu1 %vm1481_vm5, %v8305_v32  ;;  %v8451_v32 = vpack.c.bf16 %v8447_v7, %v8447_v7 }
 0x266   : > { %v2742_v30 = vshrl.u32 %v8451_v32, 16  ;;  %v2745_v49 = vshll.u32 %v8451_v32, 16 }
 0x29f   : > { %v6669_v46 = vpop.f32.mrb[8].mxu1 }
 0x2a0   : > { %v2600_v48 = vadd.f32 %v6669_v46, %v5922_v42  ;;  %v2553_v13 = vpop.f32.mrb[9].mxu1  ;;  %v2747_v46 = vrot.slane %v2745_v49, 5 }
 0x2a1   : > { %v2598_v1 = vadd.f32 %v5922_v42, %v2553_v13  ;;  %v6670_v23 = vpop.f32.mrb[10].mxu1 }
 0x2a2   : > { %v5925_v28 = vmul.f32 -1.442695, %v2600_v48  ;;  %v2601_v27 = vadd.f32 %v6670_v23, %v5922_v42  ;;  %v2556_v19 = vpop.f32.mrb[11].mxu1  ;;  %v8458_v23 = vpack.c.bf16 %v2672_v44, %v2672_v44 }
 0x2a3   : > { %v5923_v62 = vmul.f32 -1.442695, %v2598_v1  ;;  %v8432_v18 = vadd.f32 %v5922_v42, %v2556_v19 }
 0x2a4   : > { %7347 = vpow2.f32 %v5925_v28  ;;  %v5926_v9 = vmul.f32 -1.442695, %v2601_v27 }
 0x2a5   : > { %7349 = vpow2.f32 %v5923_v62  ;;  %v5924_v16 = vmul.f32 -1.442695, %v8432_v18 }
 0x2a6   : > { %7351 = vpow2.f32 %v5926_v9 }
 0x2a7   : > { %7353 = vpow2.f32 %v5924_v16  ;;  %v6673_v37 = vpop.f32.mrb[12].mxu1 }
 0x2a8   : > { %v8435_v61 = vadd.f32 %v6673_v37, %v5922_v42  ;;  %v2569_v2 = vpop.f32.mrb[13].mxu1 }
 0x2a9   : > { %v8437_v58 = vadd.f32 %v5922_v42, %v2569_v2  ;;  %v6674_v33 = vpop.f32.mrb[14].mxu1 }
 0x2aa   : > { %v5929_v36 = vmul.f32 -1.442695, %v8435_v61  ;;  %v8440_v51 = vadd.f32 %v6674_v33, %v5922_v42  ;;  %v2572_v34 = vpop.f32.mrb[15].mxu1 }
 0x2ab   : > { %v5927_v20 = vmul.f32 -1.442695, %v8437_v58  ;;  %v8443_v57 = vadd.f32 %v5922_v42, %v2572_v34  ;;  %v2744_v42 = vrot.slane %v2742_v30, 4 }
 0x2ac   : > { %7355 = vpow2.f32 %v5929_v36  ;;  %v5930_v60 = vmul.f32 -1.442695, %v8440_v51 }
 0x2ad   : > { %7357 = vpow2.f32 %v5927_v20  ;;  %v5928_v29 = vmul.f32 -1.442695, %v8443_v57  ;;  %v2748_v28 = vor.u32 %v2747_v46, %v2744_v42 }
 0x2ae   : > { %v7348_v12 = vpop.eup %7347  ;;  %7359 = vpow2.f32 %v5930_v60 }
 0x2af   : > { %v7350_v3 = vpop.eup %7349  ;;  %v2632_v55 = vadd.f32 1.0, %v7348_v12  ;;  %7361 = vpow2.f32 %v5928_v29  ;;  %v8473_v20 = vrot.slane %v2748_v28, 4  ;;  %v8491_v12 = vsel %vm1738_vm7, %v8417_v43, 0 }
 0x2b0   : > { %v7352_v24 = vpop.eup %7351  ;;  %v2630_v22 = vadd.f32 1.0, %v7350_v3 }
 0x2b1   : > { %v7354_v54 = vpop.eup %7353  ;;  %7363 = vrcp.f32 %v2632_v55  ;;  %v2633_v39 = vadd.f32 1.0, %v7352_v24 }
 0x2b2   : > { %7365 = vrcp.f32 %v2630_v22  ;;  %v2631_v15 = vadd.f32 1.0, %v7354_v54 }
 0x2b3   : > { %7367 = vrcp.f32 %v2633_v39 }
 0x2b4   : > { %7369 = vrcp.f32 %v2631_v15 }
 0x2b6   : > { %v7356_v0 = vpop.eup %7355 }
 0x2b7   : > { %v7358_v8 = vpop.eup %7357  ;;  %v2636_v63 = vadd.f32 1.0, %v7356_v0 }
 0x2b8   : > { %v7360_v4 = vpop.eup %7359  ;;  %v2634_v50 = vadd.f32 1.0, %v7358_v8 }
 0x2b9   : > { %v7362_v40 = vpop.eup %7361  ;;  %7371 = vrcp.f32 %v2636_v63  ;;  %v2637_v5 = vadd.f32 1.0, %v7360_v4 }
 0x2ba   : > { %7373 = vrcp.f32 %v2634_v50  ;;  %v2635_v59 = vadd.f32 1.0, %v7362_v40 }
 0x2bb   : > { %v7364_v10 = vpop.eup %7363  ;;  %7375 = vrcp.f32 %v2637_v5 }
 0x2bc   : > { %v7366_v6 = vpop.eup %7365  ;;  %v2656_v11 = vmul.f32 %v7364_v10, %v2600_v48  ;;  %7377 = vrcp.f32 %v2635_v59  ;;  %v2751_v48 = vshll.u32 %v8458_v23, 16 }
 0x2bd   : > { %v7368_v26 = vpop.eup %7367  ;;  %v2654_v21 = vmul.f32 %v7366_v6, %v2598_v1 }
 0x2be   : > { %v7370_v47 = vpop.eup %7369  ;;  %2665 = vst.msk [vmem:[#allocation3 + $0x31] sm:$0xff] %vm1481_vm5, %v2656_v11  ;;  %v2657_v25 = vmul.f32 %v7368_v26, %v2601_v27  ;;  %v8465_v16 = vrot.slane %v2751_v48, 5 }
 0x2bf   : > { %2663 = vst.msk [vmem:[#allocation3 + $0x11] sm:$0xff] %vm1481_vm5, %v2654_v21  ;;  %v2655_v13 = vmul.f32 %v7370_v47, %v8432_v18 }
 0x2c0   : > { %2666 = vst.msk [vmem:[#allocation3 + $0x41] sm:$0xff] %vm1481_vm5, %v2657_v25  ;;  %v2754_v46 = vsel %vm7636_vm4, %v8473_v20, %v8465_v16 }
 0x2c1   : > { %2664 = vst.msk [vmem:[#allocation3 + $0x21] sm:$0xff] %vm1481_vm5, %v2655_v13 }
 0x2c3   : > { %v7372_v1 = vpop.eup %7371 }
 0x2c4   : > { %v7374_v19 = vpop.eup %7373  ;;  %v2660_v62 = vmul.f32 %v7372_v1, %v8435_v61 }
 0x2c5   : > { %v7376_v27 = vpop.eup %7375  ;;  %v2658_v9 = vmul.f32 %v7374_v19, %v8437_v58  ;;  %v8467_v37 = vld [vmem:[#allocation3 + $0x30] sm:$0xff]  ;;  %v2678_v18 = vld [vmem:[#allocation3 + $0x38] sm:$0x3] }
 0x2c6   : > { %v7378_v2 = vpop.eup %7377  ;;  %2669 = vst.msk [vmem:[#allocation3 + $0x71] sm:$0xff] %vm1481_vm5, %v2660_v62  ;;  %v2661_v33 = vmul.f32 %v7376_v27, %v8440_v51  ;;  %v8471_v36 = vld [vmem:[#allocation3 + $0x10] sm:$0xff]  ;;  %v2674_v34 = vld [vmem:[#allocation3 + $0x18] sm:$0x3]  ;;  %v8477_v61 = vpack.c.bf16 %v8467_v37, %v8467_v37  ;;  %v8479_v58 = vpack.c.bf16 %v2678_v18, %v2678_v18 }
 0x2c7   : > { %2667 = vst.msk [vmem:[#allocation3 + $0x51] sm:$0xff] %vm1481_vm5, %v2658_v9  ;;  %v2659_v60 = vmul.f32 %v7378_v2, %v8443_v57  ;;  %v8485_v29 = vpack.c.bf16 %v8471_v36, %v8471_v36  ;;  %v8487_v51 = vpack.c.bf16 %v2674_v34, %v2674_v34  ;;  %v8493_v3 = vld [vmem:[#allocation3 + $0x40] sm:$0xff]  ;;  %v2680_v0 = vld [vmem:[#allocation3 + $0x48] sm:$0x3] }
 0x2c8   : > { %2670 = vst.msk [vmem:[#allocation3 + $0x81] sm:$0xff] %vm1481_vm5, %v2661_v33  ;;  %v8496_v55 = vld [vmem:[#allocation3 + $0x20] sm:$0xff]  ;;  %v2676_v24 = vld [vmem:[#allocation3 + $0x28] sm:$0x3]  ;;  %v2784_v22 = vshrl.u32 %v8477_v61, 16  ;;  %v2787_v57 = vshll.u32 %v8477_v61, 16  ;;  %v8510_v8 = vpack.c.bf16 %v8493_v3, %v8493_v3  ;;  %v8518_v44 = vpack.c.bf16 %v2680_v0, %v2680_v0 }
 0x2c9   : > { %v2793_v54 = vshll.u32 %v8479_v58, 16  ;;  %2668 = vst.msk [vmem:[#allocation3 + $0x61] sm:$0xff] %vm1481_vm5, %v2659_v60  ;;  %v2756_v39 = vshrl.u32 %v8485_v29, 16  ;;  %v2759_v43 = vshll.u32 %v8485_v29, 16  ;;  %v8506_v15 = vpack.c.bf16 %v8496_v55, %v8496_v55 }
 0x2ca   : > { %v2765_v63 = vshll.u32 %v8487_v51, 16  ;;  %v8513_v4 = vpack.c.bf16 %v2676_v24, %v2676_v24  ;;  %v2786_v50 = vrot.slane %v2784_v22, 4  ;;  %v2789_v40 = vrot.slane %v2787_v57, 5 }
 0x2cb   : > { %v2758_v5 = vrot.slane %v2756_v39, 4  ;;  %v2761_v59 = vrot.slane %v2759_v43, 5  ;;  %v2770_v30 = vshrl.u32 %v8506_v15, 16  ;;  %v2795_v49 = vrot.slane %v2793_v54, 5 }
 0x2cc   : > { %v2773_v10 = vshll.u32 %v8506_v15, 16  ;;  %v2779_v6 = vshll.u32 %v8513_v4, 16  ;;  %v2790_v11 = vor.u32 %v2789_v40, %v2786_v50  ;;  %v2798_v47 = vshrl.u32 %v8510_v8, 16 }
 0x2cd   : > { %v2762_v26 = vor.u32 %v2761_v59, %v2758_v5  ;;  %v2772_v21 = vrot.slane %v2770_v30, 4  ;;  %v2801_v25 = vshll.u32 %v8510_v8, 16  ;;  %v8522_v42 = vld [vmem:[#allocation3 + $0x70] sm:$0xff]  ;;  %v2767_v13 = vrot.slane %v2765_v63, 5  ;;  %v2686_v16 = vld [vmem:[#allocation3 + $0x78] sm:$0x3] }
 0x2ce   : > { %v2775_v48 = vrot.slane %v2773_v10, 5  ;;  %v2791_v28 = vrot.slane %v2790_v11, 4  ;;  %v8528_v1 = vld [vmem:[#allocation3 + $0x50] sm:$0xff]  ;;  %v2682_v19 = vld [vmem:[#allocation3 + $0x58] sm:$0x3]  ;;  %v2800_v18 = vrot.slane %v2798_v47, 4  ;;  %v8540_v24 = vpack.c.bf16 %v8522_v42, %v8522_v42 }
 0x2cf   : > { %v2763_v62 = vrot.slane %v2762_v26, 4  ;;  %v8532_v27 = vpack.c.bf16 %v8528_v1, %v8528_v1  ;;  %v8534_v9 = vpack.c.bf16 %v2682_v19, %v2682_v19  ;;  %v2781_v33 = vrot.slane %v2779_v6, 5 }
 0x2d0   : > { %v2776_v2 = vor.u32 %v2775_v48, %v2772_v21  ;;  %v2803_v34 = vrot.slane %v2801_v25, 5  ;;  %v8536_v60 = vld [vmem:[#allocation3 + $0x60] sm:$0xff]  ;;  %v2807_v57 = vshll.u32 %v8518_v44, 16  ;;  %v2684_v43 = vld [vmem:[#allocation3 + $0x68] sm:$0x3]  ;;  %v8553_v5 = vsel %vm7636_vm4, %v2791_v28, %v2795_v49 }
 0x2d1   : > { %v8544_v22 = vsel %vm7636_vm4, %v2763_v62, %v2767_v13  ;;  %v2812_v54 = vshrl.u32 %v8532_v27, 16  ;;  %v2815_v39 = vshll.u32 %v8532_v27, 16  ;;  %v2821_v40 = vshll.u32 %v8534_v9, 16  ;;  %v297_v62 = vld [vmem:[%s9277_s3 + $0x2c] sm:$0xf] }
 0x2d2   : > { %v5947_v0 = vcombine.low %v2754_v46, %v8544_v22  ;;  %v2777_v63 = vrot.slane %v2776_v2, 4  ;;  %v2804_v50 = vor.u32 %v2803_v34, %v2800_v18  ;;  %v8557_v10 = vpack.c.bf16 %v8536_v60, %v8536_v60 }
 0x2d3   : > { %v2814_v59 = vrot.slane %v2812_v54, 4  ;;  %v2817_v30 = vrot.slane %v2815_v39, 5  ;;  %v8564_v26 = vpack.c.bf16 %v2684_v43, %v2684_v43  ;;  %v8566_v21 = vpack.c.bf16 %v2686_v16, %v2686_v16 }
 0x2d4   : > { %6677 = vmatprep.mubr.msk.bf16.mxu0 %vm1481_vm5, %v5947_v0  ;;  %v8562_v6 = vsel %vm7636_vm4, %v2777_v63, %v2781_v33  ;;  %v2805_v11 = vrot.slane %v2804_v50, 4  ;;  %v2826_v25 = vshrl.u32 %v8557_v10, 16  ;;  %v2829_v46 = vshll.u32 %v8557_v10, 16 }
 0x2d5   : > { %v8570_v49 = vcombine.low %v8562_v6, %v8553_v5  ;;  %v2818_v47 = vor.u32 %v2817_v30, %v2814_v59  ;;  %v2809_v13 = vrot.slane %v2807_v57, 5  ;;  %v2823_v48 = vrot.slane %v2821_v40, 5 }
 0x2d6   : > { %v2840_v28 = vshrl.u32 %v8540_v24, 16  ;;  %v2843_v19 = vshll.u32 %v8540_v24, 16  ;;  %v2828_v2 = vrot.slane %v2826_v25, 4  ;;  %v2831_v33 = vrot.slane %v2829_v46, 5 }
 0x2d7   : > { %6678 = vmatmul.mubr.msk.bf16.vlgmr.msra.gmra.mrb[8].mxu0 %vm1481_vm5, %v8570_v49  ;;  %v2819_v18 = vrot.slane %v2818_v47, 4  ;;  %v2835_v34 = vshll.u32 %v8564_v26, 16  ;;  %v2849_v54 = vshll.u32 %v8566_v21, 16  ;;  %v8586_v39 = vsel %vm7636_vm4, %v2805_v11, %v2809_v13 }
 0x2d8   : > { %6686 = vmatpush3.bf16.msra.mxu0 %v8491_v12  ;;  %v2842_v16 = vrot.slane %v2840_v28, 4  ;;  %v2845_v57 = vrot.slane %v2843_v19, 5  ;;  %v2832_v0 = vor.u32 %v2831_v33, %v2828_v2  ;;  %v6228_v46 = vpack.c.bf16 %v8471_v36, %v8447_v7  ;;  %v298_v19 = vld [vmem:[%s9277_s3 + $0x30] sm:$0xf] }
 0x2d9   : > { %v8590_v43 = vsel %vm7636_vm4, %v2819_v18, %v2823_v48  ;;  %7288 = vmatprep.subr.msk.bf16.mxu0 %vm1738_vm7, %v297_v62  ;;  %v2837_v40 = vrot.slane %v2835_v34, 5  ;;  %v2851_v30 = vrot.slane %v2849_v54, 5  ;;  %v8618_v13 = vpack.c.bf16 %v8467_v37, %v8496_v55 }
 0x2da   : > { %v8595_v63 = vcombine.low %v8586_v39, %v8590_v43  ;;  %v2846_v12 = vor.u32 %v2845_v57, %v2842_v16  ;;  %v2833_v50 = vrot.slane %v2832_v0, 4  ;;  %v3086_v48 = vsel %vm1738_vm7, %v297_v62, 0 }
 0x2db   : > { %v8623_v28 = vpack.c.bf16 %v8528_v1, %v8493_v3  ;;  %v5963_v18 = vrot.slane %v8451_v32, 9  ;;  %v3031_v2 = vrot.slane %v8458_v23, 5  ;;  %v5964_v33 = vrot.slane %v8485_v29, 9 }
 0x2dc   : > { %6681 = vmatprep.mubr.msk.bf16.mxu0 %vm1481_vm5, %v8595_v63  ;;  %v2847_v59 = vrot.slane %v2846_v12, 4  ;;  %v8601_v11 = vsel %vm7636_vm4, %v2833_v50, %v2837_v40  ;;  %v3035_v34 = vrot.slane %v8487_v51, 5  ;;  %v8647_v23 = vpack.c.bf16 %v8522_v42, %v8536_v60 }
 0x2dd   : > { %v3032_v62 = vsel %vm8115_vm10, %v5963_v18, %v3031_v2  ;;  %v5965_v51 = vrot.slane %v8506_v15, 9  ;;  %v3039_v57 = vrot.slane %v8513_v4, 5  ;;  %v5968_v54 = vrot.slane %v8532_v27, 9 }
 0x2de   : > { %v8605_v47 = vsel %vm7636_vm4, %v2847_v59, %v2851_v30  ;;  %v8643_v16 = vsel %vm8115_vm10, %v5964_v33, %v3035_v34  ;;  %v3051_v0 = vrot.slane %v8534_v9, 5  ;;  %v5966_v12 = vrot.slane %v8477_v61, 9 }
 0x2df   : > { %v8609_v25 = vcombine.low %v8601_v11, %v8605_v47  ;;  %v5971_v29 = vcombine.low %v3032_v62, %v8643_v16  ;;  %v3043_v50 = vrot.slane %v8479_v58, 5  ;;  %v5967_v40 = vrot.slane %v8510_v8, 9 }
 0x2e0   : > { %v3047_v59 = vrot.slane %v8518_v44, 5  ;;  %v3040_v15 = vsel %vm8115_vm10, %v5965_v51, %v3039_v57  ;;  %v8665_v4 = vsel %vm8115_vm10, %v5968_v54, %v3051_v0  ;;  %v3180_v61 = vsel %vm1738_vm7, %v298_v19, 0 }
 0x2e1   : > { %6682 = vmatmul.mubr.msk.bf16.gmra.mrb[12].mxu0 %vm1481_vm5, %v8609_v25  ;;  %v8669_v27 = vsel %vm8115_vm10, %v5966_v12, %v3043_v50  ;;  %v5969_v44 = vrot.slane %v8557_v10, 9  ;;  %v3055_v30 = vrot.slane %v8564_v26, 5  ;;  %v6232_v33 = vpack.c.bf16 %v8496_v55, %v8471_v36  ;;  %v300_v36 = vld [vmem:[%s9277_s3 + $0x38] sm:$0xf] }
 0x2e2   : > { %6687 = vmatprep.mubr.msk.bf16.mxu0 %vm1481_vm5, %v6228_v46  ;;  %v8672_v9 = vcombine.low %v3040_v15, %v8669_v27  ;;  %v3048_v58 = vsel %vm8115_vm10, %v5967_v40, %v3047_v59  ;;  %v299_v46 = vld [vmem:[%s9277_s3 + $0x34] sm:$0xf]  ;;  %v6234_v62 = vpack.c.bf16 %v8536_v60, %v8528_v1  ;;  %v2688_v1 = vld [vmem:[#allocation3 + $0x88] sm:$0x3]  ;;  %v5989_v60 = vcombine.low %v8544_v22, %v8562_v6  ;;  %v301_v22 = vld [vmem:[%s9277_s3 + $0x3c] sm:$0xf] }
 0x2e3   : > { %v8678_v8 = vcombine.low %v3048_v58, %v8665_v4  ;;  %v3056_v10 = vsel %vm8115_vm10, %v5969_v44, %v3055_v30  ;;  %v3290_v34 = vsel %vm1738_vm7, %v299_v46, 0  ;;  %v6237_v54 = vpack.c.bf16 %v2688_v1, %v2688_v1 }
 0x2e4   : > { %v5990_v50 = vcombine.low %v8553_v5, %v8586_v39  ;;  %v3387_v40 = vsel %vm1738_vm7, %v300_v36, 0  ;;  %v6000_v44 = vcombine.low %v8665_v4, %v3056_v10 }
 0x2e5   : > { %v3268_v12 = vshll.u32 %v6237_v54, 16 }
 0x2e7   : > { %v3270_v6 = vrot.slane %v3268_v12, 5 }
 0x2e9   : > { %6688 = vmatmul.mubr.msk.bf16.vlgmr.msra.gmra.mrb[8].mxu0 %vm1481_vm5, %v8618_v13 }
 0x2ea   : > { %6696 = vmatpush3.bf16.msra.mxu0 %v3086_v48  ;;  %6691 = vmatprep.mubr.msk.bf16.mxu0 %vm1481_vm5, %v8623_v28  ;;  %v5970_v48 = vrot.slane %v8540_v24, 9  ;;  %v8703_v24 = vld [vmem:[#allocation3 + $0x80] sm:$0xff] }
 0x2eb   : > { %7289 = vmatprep.subr.msk.bf16.mxu0 %vm1738_vm7, %v298_v19  ;;  %v3059_v19 = vrot.slane %v8566_v21, 5  ;;  %v6233_v21 = vpack.c.bf16 %v8493_v3, %v8467_v37  ;;  %v6235_v55 = vpack.c.bf16 %v8703_v24, %v8522_v42  ;;  %v5991_v42 = vcombine.low %v8590_v43, %v8601_v11 }
 0x2ec   : > { %v5998_v43 = vcombine.low %v8643_v16, %v3040_v15  ;;  %v5999_v11 = vcombine.low %v8669_v27, %v3048_v58  ;;  %v6069_v16 = vld [vmem:[%s9278_s4 + $0x2] ss:$0 sm:$0xff] }
 0x2ed   : > { %v3060_v26 = vsel %vm8115_vm10, %v5970_v48, %v3059_v19  ;;  %v302_v48 = vld [vmem:[%s9277_s3 + $0x40] sm:$0xf] }
 0x2ee   : > { %v8696_v2 = vcombine.low %v3056_v10, %v3060_v26 }
 0x2f1   : > { %6692 = vmatmul.mubr.msk.bf16.gmra.mrb[12].mxu0 %vm1481_vm5, %v8647_v23 }
 0x2f2   : > { %6697 = vmatprep.mubr.msk.bf16.mxu0 %vm1481_vm5, %v5971_v29  ;;  %v6236_v29 = vpack.c.bf16 %v8703_v24, %v8703_v24 }
 0x2f4   : > { %v3259_v37 = vshrl.u32 %v6236_v29, 16  ;;  %v3262_v3 = vshll.u32 %v6236_v29, 16  ;;  %v5997_v30 = vrot.slane %v6236_v29, 9 }
 0x2f6   : > { %v3261_v51 = vrot.slane %v3259_v37, 4  ;;  %v3264_v57 = vrot.slane %v3262_v3, 5  ;;  %v8776_v37 = vld [vmem:[#allocation3 + $0x90] sm:$0xff] }
 0x2f8   : > { %v3265_v0 = vor.u32 %v3264_v57, %v3261_v51  ;;  %v303_v51 = vld [vmem:[%s9277_s3 + $0x44] sm:$0xf] }
 0x2f9   : > { %6698 = vmatmul.mubr.msk.bf16.vlgmr.msra.gmra.mrb[8].mxu0 %vm1481_vm5, %v8672_v9 }
 0x2fa   : > { %6706 = vmatpush3.bf16.msra.mxu0 %v3180_v61  ;;  %6701 = vmatprep.mubr.msk.bf16.mxu0 %vm1481_vm5, %v8678_v8  ;;  %v3266_v59 = vrot.slane %v3265_v0, 4  ;;  %v3469_v61 = vsel %vm1738_vm7, %v301_v22, 0 }
 0x2fb   : > { %7290 = vmatprep.subr.msk.bf16.mxu0 %vm1738_vm7, %v299_v46  ;;  %v3367_v46 = vrot.slane %v6237_v54, 5 }
 0x2fc   : > { %v8737_v5 = vsel %vm7636_vm4, %v3266_v59, %v3270_v6 }
 0x2fd   : > { %v5992_v39 = vcombine.low %v8605_v47, %v8737_v5  ;;  %v8755_v47 = vsel %vm8115_vm10, %v5997_v30, %v3367_v46 }
 0x2fe   : > { %v6001_v15 = vcombine.low %v3060_v26, %v8755_v47 }
 0x301   : > { %6702 = vmatmul.mubr.msk.bf16.gmra.mrb[12].mxu0 %vm1481_vm5, %v8696_v2 }
 0x302   : > { %6707 = vmatprep.mubr.msk.bf16.mxu0 %vm1481_vm5, %v6232_v33 }
 0x309   : > { %6708 = vmatmul.mubr.msk.bf16.vlgmr.msra.gmra.mrb[8].mxu0 %vm1481_vm5, %v6233_v21 }
 0x30a   : > { %6716 = vmatpush3.bf16.msra.mxu0 %v3290_v34  ;;  %6711 = vmatprep.mubr.msk.bf16.mxu0 %vm1481_vm5, %v6234_v62 }
 0x30b   : > { %7291 = vmatprep.subr.msk.bf16.mxu0 %vm1738_vm7, %v300_v36 }
 0x311   : > { %6712 = vmatmul.mubr.msk.bf16.gmra.mrb[12].mxu0 %vm1481_vm5, %v6235_v55 }
 0x312   : > { %6717 = vmatprep.mubr.msk.bf16.mxu0 %vm1481_vm5, %v5989_v60  ;;  %v8783_v60 = vpack.c.bf16 %v8776_v37, %v8776_v37 }
 0x314   : > { %v3548_v59 = vshrl.u32 %v8783_v60, 16 }
 0x316   : > { %v3550_v46 = vrot.slane %v3548_v59, 4 }
 0x319   : > { %6718 = vmatmul.mubr.msk.bf16.vlgmr.msra.gmra.mrb[8].mxu0 %vm1481_vm5, %v5990_v50 }
 0x31a   : > { %6726 = vmatpush3.bf16.msra.mxu0 %v3387_v40  ;;  %6721 = vmatprep.mubr.msk.bf16.mxu0 %vm1481_vm5, %v5991_v42 }
 0x31b   : > { %7292 = vmatprep.subr.msk.bf16.mxu0 %vm1738_vm7, %v301_v22  ;;  %v3551_v22 = vshll.u32 %v8783_v60, 16 }
 0x321   : > { %6722 = vmatmul.mubr.msk.bf16.gmra.mrb[12].mxu0 %vm1481_vm5, %v5992_v39 }
 0x322   : > { %6727 = vmatprep.mubr.msk.bf16.mxu0 %vm1481_vm5, %v5998_v43 }
 0x329   : > { %6728 = vmatmul.mubr.msk.bf16.vlgmr.msra.gmra.mrb[8].mxu0 %vm1481_vm5, %v5999_v11  ;;  %v6238_v11 = vpack.c.bf16 %v8776_v37, %v8703_v24 }
 0x32a   : > { %6736 = vmatpush3.bf16.msra.mxu0 %v3469_v61  ;;  %6731 = vmatprep.mubr.msk.bf16.mxu0 %vm1481_vm5, %v6000_v44  ;;  %v2690_v61 = vld [vmem:[#allocation3 + $0x98] sm:$0x3] }
 0x32b   : > { %7293 = vmatprep.subr.msk.bf16.mxu0 %vm1738_vm7, %v302_v48 }
 0x32f   : > { %v6849_v4 = vpop.f32.mrb[16].mxu1 }
 0x330   : > { %v8761_v27 = vadd.f32 %v6849_v4, %v6069_v16  ;;  %v4434_v58 = vpop.f32.mrb[17].mxu1 }
 0x331   : > { %6732 = vmatmul.mubr.msk.bf16.gmra.mrb[12].mxu0 %vm1481_vm5, %v6001_v15  ;;  %v8764_v19 = vadd.f32 %v6069_v16, %v4434_v58  ;;  %v6850_v10 = vpop.f32.mrb[18].mxu1  ;;  %v6240_v58 = vpack.c.bf16 %v2690_v61, %v2690_v61 }
 0x332   : > { %6737 = vmatprep.mubr.msk.bf16.mxu0 %vm1481_vm5, %v8618_v13  ;;  %v6072_v33 = vmul.f32 -1.442695, %v8761_v27  ;;  %v8769_v21 = vadd.f32 %v6850_v10, %v6069_v16  ;;  %v4437_v34 = vpop.f32.mrb[19].mxu1  ;;  %v3567_v13 = vsel %vm1738_vm7, %v302_v48, 0  ;;  %v3553_v48 = vrot.slane %v3551_v22, 5 }
 0x333   : > { %v6070_v62 = vmul.f32 -1.442695, %v8764_v19  ;;  %v8772_v26 = vadd.f32 %v6069_v16, %v4437_v34  ;;  %v3557_v24 = vshll.u32 %v6240_v58, 16 }
 0x334   : > { %7379 = vpow2.f32 %v6072_v33  ;;  %v6073_v29 = vmul.f32 -1.442695, %v8769_v21  ;;  %v3554_v10 = vor.u32 %v3553_v48, %v3550_v46 }
 0x335   : > { %7381 = vpow2.f32 %v6070_v62  ;;  %v6071_v36 = vmul.f32 -1.442695, %v8772_v26 }
 0x336   : > { %7383 = vpow2.f32 %v6073_v29  ;;  %v3652_v29 = vsel %vm1738_vm7, %v303_v51, 0 }
 0x337   : > { %7385 = vpow2.f32 %v6071_v36  ;;  %v6853_v3 = vpop.f32.mrb[20].mxu1 }
 0x338   : > { %v8779_v55 = vadd.f32 %v6853_v3, %v6069_v16  ;;  %v4450_v1 = vpop.f32.mrb[21].mxu1  ;;  %v8811_v3 = vrot.slane %v3554_v10, 4 }
 0x339   : > { %6738 = vmatmul.mubr.msk.bf16.vlgmr.msra.gmra.mrb[8].mxu0 %vm1481_vm5, %v8623_v28  ;;  %v8790_v57 = vadd.f32 %v6069_v16, %v4450_v1  ;;  %v6854_v54 = vpop.f32.mrb[22].mxu1  ;;  %v3559_v1 = vrot.slane %v3557_v24, 5 }
 0x33a   : > { %6746 = vmatpush3.bf16.msra.mxu0 %v3567_v13  ;;  %6741 = vmatprep.mubr.msk.bf16.mxu0 %vm1481_vm5, %v8647_v23  ;;  %v6076_v0 = vmul.f32 -1.442695, %v8779_v55  ;;  %v8795_v12 = vadd.f32 %v6854_v54, %v6069_v16  ;;  %v4453_v50 = vpop.f32.mrb[23].mxu1  ;;  %v314_v54 = vld [vmem:[%s9277_s3 + $0x70] sm:$0xf] }
 0x33b   : > { %v6074_v40 = vmul.f32 -1.442695, %v8790_v57  ;;  %v8798_v42 = vadd.f32 %v6069_v16, %v4453_v50  ;;  %7294 = vmatprep.subr.msk.bf16.mxu0 %vm1738_vm7, %v303_v51  ;;  %v3560_v59 = vsel %vm7636_vm4, %v8811_v3, %v3559_v1  ;;  %v4758_v48 = vsel %vm1738_vm7, %v314_v54, 0 }
 0x33c   : > { %7387 = vpow2.f32 %v6076_v0  ;;  %v6077_v28 = vmul.f32 -1.442695, %v8795_v12 }
 0x33d   : > { %7389 = vpow2.f32 %v6074_v40  ;;  %v6075_v23 = vmul.f32 -1.442695, %v8798_v42 }
 0x33e   : > { %v7380_v6 = vpop.eup %7379  ;;  %7391 = vpow2.f32 %v6077_v28 }
 0x33f   : > { %v7382_v39 = vpop.eup %7381  ;;  %v4513_v43 = vadd.f32 1.0, %v7380_v6  ;;  %7393 = vpow2.f32 %v6075_v23  ;;  %v4552_v6 = vld [vmem:[#allocation3 + $0x8] sm:$0x3] }
 0x340   : > { %v7384_v44 = vpop.eup %7383  ;;  %v4511_v30 = vadd.f32 1.0, %v7382_v39 }
 0x341   : > { %v7386_v16 = vpop.eup %7385  ;;  %7395 = vrcp.f32 %v4513_v43  ;;  %v4514_v15 = vadd.f32 1.0, %v7384_v44  ;;  %6742 = vmatmul.mubr.msk.bf16.gmra.mrb[12].mxu0 %vm1481_vm5, %v6238_v11  ;;  %v3644_v43 = vrot.slane %v6240_v58, 5  ;;  %v8835_v11 = vpack.c.bf16 %v4552_v6, %v4552_v6 }
 0x342   : > { %7397 = vrcp.f32 %v4511_v30  ;;  %v4512_v4 = vadd.f32 1.0, %v7386_v16  ;;  %6747 = vmatprep.mubr.msk.bf16.mxu0 %vm1481_vm5, %v8570_v49 }
 0x343   : > { %7399 = vrcp.f32 %v4514_v15  ;;  %v4631_v61 = vshll.u32 %v8835_v11, 16 }
 0x344   : > { %7401 = vrcp.f32 %v4512_v4 }
 0x346   : > { %v7388_v33 = vpop.eup %7387 }
 0x347   : > { %v7390_v34 = vpop.eup %7389  ;;  %v4517_v62 = vadd.f32 1.0, %v7388_v33 }
 0x348   : > { %v7392_v36 = vpop.eup %7391  ;;  %v4515_v13 = vadd.f32 1.0, %v7390_v34 }
 0x349   : > { %v7394_v49 = vpop.eup %7393  ;;  %7403 = vrcp.f32 %v4517_v62  ;;  %v4518_v0 = vadd.f32 1.0, %v7392_v36  ;;  %6748 = vmatmul.mubr.msk.bf16.vlgmr.msra.gmra.mrb[8].mxu0 %vm1481_vm5, %v8595_v63 }
 0x34a   : > { %7405 = vrcp.f32 %v4515_v13  ;;  %v4516_v50 = vadd.f32 1.0, %v7394_v49  ;;  %6756 = vmatpush3.bf16.msra.mxu0 %v3652_v29  ;;  %6751 = vmatprep.mubr.msk.bf16.mxu0 %vm1481_vm5, %v8609_v25  ;;  %v4633_v29 = vrot.slane %v4631_v61, 5 }
 0x34b   : > { %v7396_v51 = vpop.eup %7395  ;;  %7407 = vrcp.f32 %v4518_v0  ;;  %7304 = vmatprep.subr.msk.bf16.mxu0 %vm1738_vm7, %v314_v54 }
 0x34c   : > { %v7398_v40 = vpop.eup %7397  ;;  %v4537_v28 = vmul.f32 %v7396_v51, %v8761_v27  ;;  %7409 = vrcp.f32 %v4516_v50  ;;  %v6013_v27 = vcombine.low %v8737_v5, %v3560_v59  ;;  %v313_v5 = vld [vmem:[%s9277_s3 + $0x6c] sm:$0xf] }
 0x34d   : > { %v7400_v22 = vpop.eup %7399  ;;  %v4535_v63 = vmul.f32 %v7398_v40, %v8764_v19  ;;  %v6018_v19 = vrot.slane %v8783_v60, 9  ;;  %v8865_v33 = vsel %vm1738_vm7, %v313_v5, 0 }
 0x34e   : > { %v7402_v23 = vpop.eup %7401  ;;  %4545 = vst.msk [vmem:[#allocation3 + $0x31] sm:$0xff] %vm1481_vm5, %v4537_v28  ;;  %v4538_v25 = vmul.f32 %v7400_v22, %v8769_v21 }
 0x34f   : > { %4543 = vst.msk [vmem:[#allocation3 + $0x11] sm:$0xff] %vm1481_vm5, %v4535_v63  ;;  %v4536_v39 = vmul.f32 %v7402_v23, %v8772_v26 }
 0x350   : > { %4546 = vst.msk [vmem:[#allocation3 + $0x41] sm:$0xff] %vm1481_vm5, %v4538_v25 }
 0x351   : > { %4544 = vst.msk [vmem:[#allocation3 + $0x21] sm:$0xff] %vm1481_vm5, %v4536_v39  ;;  %6752 = vmatmul.mubr.msk.bf16.gmra.mrb[12].mxu0 %vm1481_vm5, %v6013_v27 }
 0x352   : > { %6757 = vmatprep.mubr.msk.bf16.mxu0 %vm1481_vm5, %v8672_v9  ;;  %v8850_v9 = vsel %vm8115_vm10, %v6018_v19, %v3644_v43 }
 0x353   : > { %v7404_v21 = vpop.eup %7403  ;;  %v6019_v13 = vcombine.low %v8755_v47, %v8850_v9 }
 0x354   : > { %v7406_v26 = vpop.eup %7405  ;;  %v4541_v44 = vmul.f32 %v7404_v21, %v8779_v55 }
 0x355   : > { %v7408_v30 = vpop.eup %7407  ;;  %v4539_v46 = vmul.f32 %v7406_v26, %v8790_v57  ;;  %v8852_v16 = vld [vmem:[#allocation3 + $0x30] sm:$0xff]  ;;  %v4558_v15 = vld [vmem:[#allocation3 + $0x38] sm:$0x3] }
 0x356   : > { %v7410_v4 = vpop.eup %7409  ;;  %4549 = vst.msk [vmem:[#allocation3 + $0x71] sm:$0xff] %vm1481_vm5, %v4541_v44  ;;  %v4542_v58 = vmul.f32 %v7408_v30, %v8795_v12  ;;  %v8856_v55 = vld [vmem:[#allocation3 + $0x10] sm:$0xff]  ;;  %v4554_v10 = vld [vmem:[#allocation3 + $0x18] sm:$0x3]  ;;  %v8860_v57 = vpack.c.bf16 %v8852_v16, %v8852_v16  ;;  %v8862_v24 = vpack.c.bf16 %v4558_v15, %v4558_v15 }
 0x357   : > { %4547 = vst.msk [vmem:[#allocation3 + $0x51] sm:$0xff] %vm1481_vm5, %v4539_v46  ;;  %v4540_v34 = vmul.f32 %v7410_v4, %v8798_v42  ;;  %v8871_v62 = vpack.c.bf16 %v8856_v55, %v8856_v55  ;;  %v8873_v12 = vpack.c.bf16 %v4554_v10, %v4554_v10  ;;  %v8875_v36 = vld [vmem:[#allocation3 + $0x40] sm:$0xff]  ;;  %v4560_v40 = vld [vmem:[#allocation3 + $0x48] sm:$0x3] }
 0x358   : > { %4550 = vst.msk [vmem:[#allocation3 + $0x81] sm:$0xff] %vm1481_vm5, %v4542_v58  ;;  %v8880_v1 = vld [vmem:[#allocation3 + $0x20] sm:$0xff]  ;;  %v4556_v54 = vld [vmem:[#allocation3 + $0x28] sm:$0x3]  ;;  %v4664_v49 = vshrl.u32 %v8860_v57, 16  ;;  %v4667_v42 = vshll.u32 %v8860_v57, 16  ;;  %v8896_v28 = vpack.c.bf16 %v8875_v36, %v8875_v36  ;;  %v8907_v61 = vpack.c.bf16 %v4560_v40, %v4560_v40 }
 0x359   : > { %v4673_v0 = vshll.u32 %v8862_v24, 16  ;;  %4548 = vst.msk [vmem:[#allocation3 + $0x61] sm:$0xff] %vm1481_vm5, %v4540_v34  ;;  %6758 = vmatmul.mubr.msk.bf16.vlgmr.msra.gmra.mrb[8].mxu0 %vm1481_vm5, %v8678_v8  ;;  %v4636_v50 = vshrl.u32 %v8871_v62, 16  ;;  %v4639_v51 = vshll.u32 %v8871_v62, 16  ;;  %v8892_v47 = vpack.c.bf16 %v8880_v1, %v8880_v1 }
 0x35a   : > { %6856 = vmatpush3.bf16.msra.mxu0 %v4758_v48  ;;  %6761 = vmatprep.mubr.msk.bf16.mxu0 %vm1481_vm5, %v8696_v2  ;;  %v4645_v59 = vshll.u32 %v8873_v12, 16  ;;  %v8901_v8 = vpack.c.bf16 %v4556_v54, %v4556_v54  ;;  %v4666_v22 = vrot.slane %v4664_v49, 4  ;;  %v4669_v63 = vrot.slane %v4667_v42, 5 }
 0x35b   : > { %v4638_v23 = vrot.slane %v4636_v50, 4  ;;  %v4641_v25 = vrot.slane %v4639_v51, 5  ;;  %7305 = vmatprep.subr.msk.bf16.mxu0 %vm1738_vm7, %v313_v5  ;;  %v4650_v6 = vshrl.u32 %v8892_v47, 16  ;;  %v4675_v39 = vrot.slane %v4673_v0, 5 }
 0x35c   : > { %v4653_v27 = vshll.u32 %v8892_v47, 16  ;;  %v4659_v43 = vshll.u32 %v8901_v8, 16  ;;  %v4670_v21 = vor.u32 %v4669_v63, %v4666_v22  ;;  %v4678_v44 = vshrl.u32 %v8896_v28, 16 }
 0x35d   : > { %v4642_v2 = vor.u32 %v4641_v25, %v4638_v23  ;;  %v4652_v26 = vrot.slane %v4650_v6, 4  ;;  %v4681_v30 = vshll.u32 %v8896_v28, 16  ;;  %v8911_v46 = vld [vmem:[#allocation3 + $0x70] sm:$0xff]  ;;  %v4634_v5 = vsel %vm7636_vm4, %v8473_v20, %v4633_v29  ;;  %v4566_v20 = vld [vmem:[#allocation3 + $0x78] sm:$0x3] }
 0x35e   : > { %v4647_v48 = vrot.slane %v4645_v59, 5  ;;  %v4655_v9 = vrot.slane %v4653_v27, 5  ;;  %v4671_v15 = vrot.slane %v4670_v21, 4  ;;  %v8916_v4 = vld [vmem:[#allocation3 + $0x50] sm:$0xff]  ;;  %v4562_v58 = vld [vmem:[#allocation3 + $0x58] sm:$0x3]  ;;  %v8928_v29 = vpack.c.bf16 %v8911_v46, %v8911_v46 }
 0x35f   : > { %v4643_v10 = vrot.slane %v4642_v2, 4  ;;  %v8920_v34 = vpack.c.bf16 %v8916_v4, %v8916_v4  ;;  %v8922_v54 = vpack.c.bf16 %v4562_v58, %v4562_v58  ;;  %v4680_v49 = vrot.slane %v4678_v44, 4 }
 0x360   : > { %v4656_v42 = vor.u32 %v4655_v9, %v4652_v26  ;;  %v4661_v0 = vrot.slane %v4659_v43, 5  ;;  %v4683_v50 = vrot.slane %v4681_v30, 5  ;;  %v8924_v51 = vld [vmem:[#allocation3 + $0x60] sm:$0xff]  ;;  %v4687_v59 = vshll.u32 %v8907_v61, 16  ;;  %v4564_v23 = vld [vmem:[#allocation3 + $0x68] sm:$0x3] }
 0x361   : > { %6762 = vmatmul.mubr.msk.bf16.gmra.mrb[12].mxu0 %vm1481_vm5, %v6019_v13  ;;  %v8933_v40 = vsel %vm7636_vm4, %v4643_v10, %v4647_v48  ;;  %v4692_v22 = vshrl.u32 %v8920_v34, 16  ;;  %v4695_v63 = vshll.u32 %v8920_v34, 16  ;;  %v4701_v43 = vshll.u32 %v8922_v54, 16 }
 0x362   : > { %v6094_v25 = vcombine.low %v4634_v5, %v8933_v40  ;;  %v4657_v6 = vrot.slane %v4656_v42, 4  ;;  %v4684_v27 = vor.u32 %v4683_v50, %v4680_v49  ;;  %v8942_v13 = vsel %vm7636_vm4, %v4671_v15, %v4675_v39 }
 0x363   : > { %v4694_v21 = vrot.slane %v4692_v22, 4  ;;  %v4697_v2 = vrot.slane %v4695_v63, 5  ;;  %v8946_v26 = vpack.c.bf16 %v8924_v51, %v8924_v51  ;;  %v8953_v5 = vpack.c.bf16 %v4564_v23, %v4564_v23 }
 0x364   : > { %6857 = vmatprep.mubr.msk.bf16.mxu0 %vm1481_vm5, %v6094_v25  ;;  %v8951_v44 = vsel %vm7636_vm4, %v4657_v6, %v4661_v0  ;;  %v4685_v30 = vrot.slane %v4684_v27, 4  ;;  %v8955_v48 = vpack.c.bf16 %v4566_v20, %v4566_v20  ;;  %v4689_v10 = vrot.slane %v4687_v59, 5  ;;  %v315_v27 = vld [vmem:[%s9277_s3 + $0x74] sm:$0xf] }
 0x365   : > { %v8959_v39 = vcombine.low %v8951_v44, %v8942_v13  ;;  %v4698_v9 = vor.u32 %v4697_v2, %v4694_v21  ;;  %v4706_v15 = vshrl.u32 %v8946_v26, 16  ;;  %v4709_v58 = vshll.u32 %v8946_v26, 16 }
 0x366   : > { %v4703_v49 = vrot.slane %v4701_v43, 5  ;;  %v4720_v42 = vshrl.u32 %v8928_v29, 16  ;;  %v4723_v0 = vshll.u32 %v8928_v29, 16  ;;  %v4715_v20 = vshll.u32 %v8953_v5, 16 }
 0x367   : > { %v4699_v50 = vrot.slane %v4698_v9, 4  ;;  %v4708_v22 = vrot.slane %v4706_v15, 4  ;;  %v4711_v63 = vrot.slane %v4709_v58, 5  ;;  %v4729_v6 = vshll.u32 %v8955_v48, 16 }
 0x368   : > { %v4722_v23 = vrot.slane %v4720_v42, 4  ;;  %v4725_v25 = vrot.slane %v4723_v0, 5  ;;  %v8974_v59 = vsel %vm7636_vm4, %v4685_v30, %v4689_v10  ;;  %v4717_v58 = vrot.slane %v4715_v20, 5  ;;  %v316_v20 = vld [vmem:[%s9277_s3 + $0x78] sm:$0xf] }
 0x369   : > { %6858 = vmatmul.mubr.msk.bf16.vlgmr.msra.gmra.mrb[16].mxu0 %vm1481_vm5, %v8959_v39  ;;  %v8978_v43 = vsel %vm7636_vm4, %v4699_v50, %v4703_v49  ;;  %v4712_v21 = vor.u32 %v4711_v63, %v4708_v22  ;;  %v4731_v10 = vrot.slane %v4729_v6, 5  ;;  %v6257_v0 = vpack.c.bf16 %v8856_v55, %v8447_v7 }
 0x36a   : > { %6866 = vmatpush3.bf16.msra.mxu0 %v8865_v33  ;;  %v8983_v2 = vcombine.low %v8974_v59, %v8978_v43  ;;  %v4726_v9 = vor.u32 %v4725_v25, %v4722_v23  ;;  %v9007_v50 = vpack.c.bf16 %v8852_v16, %v8880_v1  ;;  %v4966_v22 = vsel %vm1738_vm7, %v315_v27, 0 }
 0x36b   : > { %v4713_v15 = vrot.slane %v4712_v21, 4  ;;  %7306 = vmatprep.subr.msk.bf16.mxu0 %vm1738_vm7, %v315_v27  ;;  %v9012_v63 = vpack.c.bf16 %v8916_v4, %v8875_v36  ;;  %v4911_v7 = vrot.slane %v8835_v11, 5  ;;  %v6111_v23 = vrot.slane %v8871_v62, 9 }
 0x36c   : > { %6861 = vmatprep.mubr.msk.bf16.mxu0 %vm1481_vm5, %v8983_v2  ;;  %v4727_v30 = vrot.slane %v4726_v9, 4  ;;  %v4915_v25 = vrot.slane %v8873_v12, 5  ;;  %v9035_v11 = vpack.c.bf16 %v8911_v46, %v8924_v51  ;;  %v6112_v12 = vrot.slane %v8892_v47, 9 }
 0x36d   : > { %v8990_v49 = vsel %vm7636_vm4, %v4713_v15, %v4717_v58  ;;  %v4912_v6 = vsel %vm8115_vm10, %v5963_v18, %v4911_v7  ;;  %v4919_v21 = vrot.slane %v8901_v8, 5  ;;  %v6115_v32 = vrot.slane %v8920_v34, 9 }
 0x36e   : > { %v8994_v33 = vsel %vm7636_vm4, %v4727_v30, %v4731_v10  ;;  %v9031_v27 = vsel %vm8115_vm10, %v6111_v23, %v4915_v25  ;;  %v4931_v18 = vrot.slane %v8922_v54, 5  ;;  %v6113_v9 = vrot.slane %v8860_v57, 9 }
 0x36f   : > { %v8998_v42 = vcombine.low %v8990_v49, %v8994_v33  ;;  %v6118_v62 = vcombine.low %v4912_v6, %v9031_v27  ;;  %v4923_v15 = vrot.slane %v8862_v24, 5  ;;  %v6114_v58 = vrot.slane %v8896_v28, 9 }
 0x370   : > { %v4927_v30 = vrot.slane %v8907_v61, 5  ;;  %v4920_v47 = vsel %vm8115_vm10, %v6112_v12, %v4919_v21  ;;  %v9053_v8 = vsel %vm8115_vm10, %v6115_v32, %v4931_v18  ;;  %v5060_v57 = vsel %vm1738_vm7, %v316_v20, 0  ;;  %v318_v12 = vld [vmem:[%s9277_s3 + $0x80] sm:$0xf] }
 0x371   : > { %6862 = vmatmul.mubr.msk.bf16.gmra.mrb[20].mxu0 %vm1481_vm5, %v8998_v42  ;;  %v9057_v34 = vsel %vm8115_vm10, %v6113_v9, %v4923_v15  ;;  %v6116_v61 = vrot.slane %v8946_v26, 9  ;;  %v4935_v10 = vrot.slane %v8953_v5, 5  ;;  %v6261_v23 = vpack.c.bf16 %v8880_v1, %v8856_v55 }
 0x372   : > { %6867 = vmatprep.mubr.msk.bf16.mxu0 %vm1481_vm5, %v6257_v0  ;;  %v9060_v54 = vcombine.low %v4920_v47, %v9057_v34  ;;  %v4928_v24 = vsel %vm8115_vm10, %v6114_v58, %v4927_v30  ;;  %v317_v0 = vld [vmem:[%s9277_s3 + $0x7c] sm:$0xf]  ;;  %v6263_v6 = vpack.c.bf16 %v8924_v51, %v8916_v4  ;;  %v6136_v4 = vcombine.low %v8933_v40, %v8951_v44  ;;  %v319_v40 = vld [vmem:[%s9277_s3 + $0x84] sm:$0xf] }
 0x373   : > { %v9066_v28 = vcombine.low %v4928_v24, %v9053_v8  ;;  %v4936_v26 = vsel %vm8115_vm10, %v6116_v61, %v4935_v10  ;;  %v5170_v25 = vsel %vm1738_vm7, %v317_v0, 0  ;;  %v6137_v15 = vcombine.low %v8942_v13, %v8974_v59 }
 0x374   : > { %v5267_v58 = vsel %vm1738_vm7, %v318_v12, 0  ;;  %v6147_v61 = vcombine.low %v9053_v8, %v4936_v26  ;;  %v321_v8 = vld [vmem:[%s9277_s3 + $0x8c] sm:$0xf] }
 0x379   : > { %6868 = vmatmul.mubr.msk.bf16.vlgmr.msra.gmra.mrb[16].mxu0 %vm1481_vm5, %v9007_v50 }
 0x37a   : > { %6876 = vmatpush3.bf16.msra.mxu0 %v4966_v22  ;;  %6871 = vmatprep.mubr.msk.bf16.mxu0 %vm1481_vm5, %v9012_v63  ;;  %v6117_v22 = vrot.slane %v8928_v29, 9  ;;  %v4567_v29 = vld [vmem:[#allocation3 + $0x80] sm:$0xff] }
 0x37b   : > { %7307 = vmatprep.subr.msk.bf16.mxu0 %vm1738_vm7, %v316_v20  ;;  %v4939_v20 = vrot.slane %v8955_v48, 5  ;;  %v6262_v48 = vpack.c.bf16 %v8875_v36, %v8852_v16  ;;  %v6264_v16 = vpack.c.bf16 %v4567_v29, %v8911_v46  ;;  %v4568_v36 = vld [vmem:[#allocation3 + $0x88] sm:$0x3]  ;;  %v6138_v46 = vcombine.low %v8978_v43, %v8990_v49 }
 0x37c   : > { %v6266_v32 = vpack.c.bf16 %v4568_v36, %v4568_v36  ;;  %v6145_v43 = vcombine.low %v9031_v27, %v4920_v47  ;;  %v6146_v49 = vcombine.low %v9057_v34, %v4928_v24  ;;  %v6267_v34 = vpack.c.bf16 %v8776_v37, %v4567_v29  ;;  %v4570_v24 = vld [vmem:[#allocation3 + $0x98] sm:$0x3] }
 0x37d   : > { %v4940_v5 = vsel %vm8115_vm10, %v6117_v22, %v4939_v20  ;;  %v320_v22 = vld [vmem:[%s9277_s3 + $0x88] sm:$0xf] }
 0x37e   : > { %v9084_v7 = vcombine.low %v4936_v26, %v4940_v5  ;;  %v5148_v9 = vshll.u32 %v6266_v32, 16  ;;  %v5447_v47 = vsel %vm1738_vm7, %v320_v22, 0  ;;  %v5532_v26 = vsel %vm1738_vm7, %v321_v8, 0 }
 0x380   : > { %v5150_v44 = vrot.slane %v5148_v9, 5  ;;  %v6171_v9 = vld [vmem:[%s9278_s4 + $0x3] ss:$0 sm:$0xff] }
 0x381   : > { %6872 = vmatmul.mubr.msk.bf16.gmra.mrb[20].mxu0 %vm1481_vm5, %v9035_v11 }
 0x382   : > { %6877 = vmatprep.mubr.msk.bf16.mxu0 %vm1481_vm5, %v6118_v62  ;;  %v6265_v62 = vpack.c.bf16 %v4567_v29, %v4567_v29 }
 0x384   : > { %v5139_v55 = vshrl.u32 %v6265_v62, 16  ;;  %v5142_v1 = vshll.u32 %v6265_v62, 16  ;;  %v6144_v10 = vrot.slane %v6265_v62, 9 }
 0x386   : > { %v5141_v51 = vrot.slane %v5139_v55, 4  ;;  %v5144_v21 = vrot.slane %v5142_v1, 5 }
 0x388   : > { %v5145_v18 = vor.u32 %v5144_v21, %v5141_v51 }
 0x389   : > { %6878 = vmatmul.mubr.msk.bf16.vlgmr.msra.gmra.mrb[16].mxu0 %vm1481_vm5, %v9060_v54 }
 0x38a   : > { %6886 = vmatpush3.bf16.msra.mxu0 %v5060_v57  ;;  %6881 = vmatprep.mubr.msk.bf16.mxu0 %vm1481_vm5, %v9066_v28  ;;  %v5146_v30 = vrot.slane %v5145_v18, 4  ;;  %v5349_v57 = vsel %vm1738_vm7, %v319_v40, 0 }
 0x38b   : > { %7308 = vmatprep.subr.msk.bf16.mxu0 %vm1738_vm7, %v317_v0  ;;  %v5247_v0 = vrot.slane %v6266_v32, 5 }
 0x38c   : > { %v5151_v13 = vsel %vm7636_vm4, %v5146_v30, %v5150_v44 }
 0x38d   : > { %v6139_v59 = vcombine.low %v8994_v33, %v5151_v13  ;;  %v5248_v33 = vsel %vm8115_vm10, %v6144_v10, %v5247_v0 }
 0x38e   : > { %v6148_v27 = vcombine.low %v4940_v5, %v5248_v33 }
 0x391   : > { %6882 = vmatmul.mubr.msk.bf16.gmra.mrb[20].mxu0 %vm1481_vm5, %v9084_v7 }
 0x392   : > { %6887 = vmatprep.mubr.msk.bf16.mxu0 %vm1481_vm5, %v6261_v23 }
 0x399   : > { %6888 = vmatmul.mubr.msk.bf16.vlgmr.msra.gmra.mrb[16].mxu0 %vm1481_vm5, %v6262_v48 }
 0x39a   : > { %6896 = vmatpush3.bf16.msra.mxu0 %v5170_v25  ;;  %6891 = vmatprep.mubr.msk.bf16.mxu0 %vm1481_vm5, %v6263_v6 }
 0x39b   : > { %7309 = vmatprep.subr.msk.bf16.mxu0 %vm1738_vm7, %v318_v12 }
 0x3a1   : > { %6892 = vmatmul.mubr.msk.bf16.gmra.mrb[20].mxu0 %vm1481_vm5, %v6264_v16 }
 0x3a2   : > { %6897 = vmatprep.mubr.msk.bf16.mxu0 %vm1481_vm5, %v6136_v4 }
 0x3a9   : > { %6898 = vmatmul.mubr.msk.bf16.vlgmr.msra.gmra.mrb[16].mxu0 %vm1481_vm5, %v6137_v15 }
 0x3aa   : > { %6906 = vmatpush3.bf16.msra.mxu0 %v5267_v58  ;;  %6901 = vmatprep.mubr.msk.bf16.mxu0 %vm1481_vm5, %v6138_v46 }
 0x3ab   : > { %7310 = vmatprep.subr.msk.bf16.mxu0 %vm1738_vm7, %v319_v40 }
 0x3b1   : > { %6902 = vmatmul.mubr.msk.bf16.gmra.mrb[20].mxu0 %vm1481_vm5, %v6139_v59 }
 0x3b2   : > { %6907 = vmatprep.mubr.msk.bf16.mxu0 %vm1481_vm5, %v6145_v43 }
 0x3b9   : > { %6908 = vmatmul.mubr.msk.bf16.vlgmr.msra.gmra.mrb[16].mxu0 %vm1481_vm5, %v6146_v49 }
 0x3ba   : > { %6916 = vmatpush3.bf16.msra.mxu0 %v5349_v57  ;;  %6911 = vmatprep.mubr.msk.bf16.mxu0 %vm1481_vm5, %v6147_v61 }
 0x3bb   : > { %7311 = vmatprep.subr.msk.bf16.mxu0 %vm1738_vm7, %v320_v22 }
 0x3c1   : > { %6912 = vmatmul.mubr.msk.bf16.gmra.mrb[20].mxu0 %vm1481_vm5, %v6148_v27 }
 0x3c2   : > { %6917 = vmatprep.mubr.msk.bf16.mxu0 %vm1481_vm5, %v9007_v50  ;;  %v6269_v50 = vpack.c.bf16 %v4570_v24, %v4570_v24 }
 0x3c4   : > { %v5437_v20 = vshll.u32 %v6269_v50, 16 }
 0x3c6   : > { %v5439_v5 = vrot.slane %v5437_v20, 5 }
 0x3c8   : > { %v5440_v37 = vsel %vm7636_vm4, %v8811_v3, %v5439_v5 }
 0x3c9   : > { %6918 = vmatmul.mubr.msk.bf16.vlgmr.msra.gmra.mrb[16].mxu0 %vm1481_vm5, %v9012_v63  ;;  %v6160_v63 = vcombine.low %v5151_v13, %v5440_v37 }
 0x3ca   : > { %6926 = vmatpush3.bf16.msra.mxu0 %v5447_v47  ;;  %6921 = vmatprep.mubr.msk.bf16.mxu0 %vm1481_vm5, %v9035_v11 }
 0x3cb   : > { %7312 = vmatprep.subr.msk.bf16.mxu0 %vm1738_vm7, %v321_v8 }
 0x3d1   : > { %6922 = vmatmul.mubr.msk.bf16.gmra.mrb[20].mxu0 %vm1481_vm5, %v6267_v34 }
 0x3d2   : > { %6927 = vmatprep.mubr.msk.bf16.mxu0 %vm1481_vm5, %v8959_v39  ;;  %v5524_v39 = vrot.slane %v6269_v50, 5 }
 0x3d9   : > { %6928 = vmatmul.mubr.msk.bf16.vlgmr.msra.gmra.mrb[16].mxu0 %vm1481_vm5, %v8983_v2  ;;  %v5525_v2 = vsel %vm8115_vm10, %v6018_v19, %v5524_v39 }
 0x3da   : > { %6936 = vmatpush3.bf16.msra.mxu0 %v5532_v26  ;;  %6931 = vmatprep.mubr.msk.bf16.mxu0 %vm1481_vm5, %v8998_v42  ;;  %v6166_v53 = vcombine.low %v5248_v33, %v5525_v2 }
 0x3e1   : > { %6932 = vmatmul.mubr.msk.bf16.gmra.mrb[20].mxu0 %vm1481_vm5, %v6160_v63 }
 0x3e2   : > { %6937 = vmatprep.mubr.msk.bf16.mxu0 %vm1481_vm5, %v9060_v54 }
 0x3e9   : > { %6938 = vmatmul.mubr.msk.bf16.vlgmr.msra.gmra.mrb[16].mxu0 %vm1481_vm5, %v9066_v28  ;;  %v6024_v28 = vld [vmem:[%s9278_s4 + $0x1] ss:$0 sm:$0xff] }
 0x3ea   : > { %6941 = vmatprep.mubr.msk.bf16.mxu0 %vm1481_vm5, %v9084_v7 }
 0x3f1   : > { %6942 = vmatmul.mubr.msk.bf16.gmra.mrb[20].mxu0 %vm1481_vm5, %v6166_v53 }
 0x42c   : > { %v6759_v3 = vpop.f32.mrb[8].mxu0 }
 0x42d   : > { %v3688_v42 = vpop.f32.mrb[9].mxu0  ;;  %v9174_v7 = vadd.f32 %v6759_v3, %v6024_v28 }
 0x42e   : > { %v6760_v11 = vpop.f32.mrb[10].mxu0  ;;  %v9177_v60 = vadd.f32 %v6024_v28, %v3688_v42 }
 0x42f   : > { %v3691_v23 = vpop.f32.mrb[11].mxu0  ;;  %v6027_v17 = vmul.f32 -1.442695, %v9174_v7  ;;  %v9179_v19 = vadd.f32 %v6760_v11, %v6024_v28 }
 0x430   : > { %v9181_v6 = vadd.f32 %v6024_v28, %v3691_v23  ;;  %v6025_v12 = vmul.f32 -1.442695, %v9177_v60 }
 0x431   : > { %7411 = vpow2.f32 %v6027_v17  ;;  %v6028_v55 = vmul.f32 -1.442695, %v9179_v19 }
 0x432   : > { %v6026_v1 = vmul.f32 -1.442695, %v9181_v6  ;;  %7413 = vpow2.f32 %v6025_v12 }
 0x433   : > { %7415 = vpow2.f32 %v6028_v55 }
 0x434   : > { %v6763_v54 = vpop.f32.mrb[12].mxu0  ;;  %7417 = vpow2.f32 %v6026_v1 }
 0x435   : > { %v3704_v29 = vpop.f32.mrb[13].mxu0  ;;  %v9183_v62 = vadd.f32 %v6763_v54, %v6024_v28 }
 0x436   : > { %v6764_v48 = vpop.f32.mrb[14].mxu0  ;;  %v9189_v36 = vadd.f32 %v6024_v28, %v3704_v29 }
 0x437   : > { %v3707_v25 = vpop.f32.mrb[15].mxu0  ;;  %v6031_v16 = vmul.f32 -1.442695, %v9183_v62  ;;  %v9191_v4 = vadd.f32 %v6764_v48, %v6024_v28 }
 0x438   : > { %v9193_v51 = vadd.f32 %v6024_v28, %v3707_v25  ;;  %v6029_v21 = vmul.f32 -1.442695, %v9189_v36 }
 0x439   : > { %7419 = vpow2.f32 %v6031_v16  ;;  %v6032_v18 = vmul.f32 -1.442695, %v9191_v4 }
 0x43a   : > { %v6030_v15 = vmul.f32 -1.442695, %v9193_v51  ;;  %7421 = vpow2.f32 %v6029_v21 }
 0x43b   : > { %v7412_v32 = vpop.eup %7411  ;;  %7423 = vpow2.f32 %v6032_v18 }
 0x43c   : > { %v3767_v58 = vadd.f32 1.0, %v7412_v32  ;;  %v7414_v44 = vpop.eup %7413  ;;  %7425 = vpow2.f32 %v6030_v15 }
 0x43d   : > { %v7416_v43 = vpop.eup %7415  ;;  %v3765_v27 = vadd.f32 1.0, %v7414_v44 }
 0x43e   : > { %v7418_v10 = vpop.eup %7417  ;;  %7427 = vrcp.f32 %v3767_v58  ;;  %v3768_v8 = vadd.f32 1.0, %v7416_v43 }
 0x43f   : > { %v3766_v24 = vadd.f32 1.0, %v7418_v10 }
 0x443   : > { %v7420_v33 = vpop.eup %7419 }
 0x444   : > { %v3771_v50 = vadd.f32 1.0, %v7420_v33  ;;  %v7422_v37 = vpop.eup %7421 }
 0x445   : > { %v7424_v42 = vpop.eup %7423  ;;  %v3769_v29 = vadd.f32 1.0, %v7422_v37 }
 0x446   : > { %v7426_v54 = vpop.eup %7425  ;;  %v3772_v32 = vadd.f32 1.0, %v7424_v42 }
 0x447   : > { %v3770_v15 = vadd.f32 1.0, %v7426_v54 }
 0x448   : > { %v7428_v25 = vpop.eup %7427 }
 0x449   : > { %v3791_v10 = vmul.f32 %v7428_v25, %v9174_v7 }
 0x44b   : > { %v3799_v37 = vadd.f32 %v3791_v10, %v7918_v45 }
 0x4bc   : > { %v6939_v46 = vpop.f32.mrb[16].mxu0 }
 0x4bd   : > { %v9201_v30 = vadd.f32 %v6939_v46, %v6171_v9  ;;  %v5568_v40 = vpop.f32.mrb[17].mxu0 }
 0x4be   : > { %v9203_v13 = vadd.f32 %v6171_v9, %v5568_v40  ;;  %v6940_v59 = vpop.f32.mrb[18].mxu0 }
 0x4bf   : > { %v6174_v49 = vmul.f32 -1.442695, %v9201_v30  ;;  %v9206_v57 = vadd.f32 %v6940_v59, %v6171_v9  ;;  %v5571_v61 = vpop.f32.mrb[19].mxu0 }
 0x4c0   : > { %v6172_v0 = vmul.f32 -1.442695, %v9203_v13  ;;  %v9209_v22 = vadd.f32 %v6171_v9, %v5571_v61 }
 0x4c1   : > { %7429 = vpow2.f32 %v6174_v49  ;;  %v6175_v47 = vmul.f32 -1.442695, %v9206_v57 }
 0x4c2   : > { %7431 = vpow2.f32 %v6172_v0  ;;  %v6173_v34 = vmul.f32 -1.442695, %v9209_v22 }
 0x4c3   : > { %7433 = vpow2.f32 %v6175_v47 }
 0x4c4   : > { %7435 = vpow2.f32 %v6173_v34  ;;  %v6943_v20 = vpop.f32.mrb[20].mxu0 }
 0x4c5   : > { %7437 = vrcp.f32 %v3765_v27  ;;  %v9213_v26 = vadd.f32 %v6943_v20, %v6171_v9  ;;  %v5584_v5 = vpop.f32.mrb[21].mxu0 }
 0x4c6   : > { %7439 = vrcp.f32 %v3768_v8  ;;  %v9215_v63 = vadd.f32 %v6171_v9, %v5584_v5  ;;  %v6944_v39 = vpop.f32.mrb[22].mxu0 }
 0x4c7   : > { %7441 = vrcp.f32 %v3766_v24  ;;  %v6178_v2 = vmul.f32 -1.442695, %v9213_v26  ;;  %v9218_v53 = vadd.f32 %v6944_v39, %v6171_v9  ;;  %v5587_v3 = vpop.f32.mrb[23].mxu0 }
 0x4c8   : > { %7443 = vrcp.f32 %v3771_v50  ;;  %v6176_v11 = vmul.f32 -1.442695, %v9215_v63  ;;  %v9221_v23 = vadd.f32 %v6171_v9, %v5587_v3 }
 0x4c9   : > { %7445 = vpow2.f32 %v6178_v2  ;;  %v6179_v48 = vmul.f32 -1.442695, %v9218_v53 }
 0x4ca   : > { %7447 = vpow2.f32 %v6176_v11  ;;  %v6177_v28 = vmul.f32 -1.442695, %v9221_v23 }
 0x4cb   : > { %v7430_v17 = vpop.eup %7429  ;;  %7449 = vpow2.f32 %v6179_v48 }
 0x4cc   : > { %v7432_v12 = vpop.eup %7431  ;;  %v5647_v55 = vadd.f32 1.0, %v7430_v17  ;;  %7451 = vpow2.f32 %v6177_v28 }
 0x4cd   : > { %v7434_v1 = vpop.eup %7433  ;;  %7453 = vrcp.f32 %v3769_v29  ;;  %v5645_v16 = vadd.f32 1.0, %v7432_v12 }
 0x4ce   : > { %v7436_v21 = vpop.eup %7435  ;;  %7455 = vrcp.f32 %v5647_v55  ;;  %v5648_v18 = vadd.f32 1.0, %v7434_v1 }
 0x4cf   : > { %v7438_v9 = vpop.eup %7437  ;;  %7457 = vrcp.f32 %v5645_v16  ;;  %v5646_v58 = vadd.f32 1.0, %v7436_v21 }
 0x4d0   : > { %v7440_v46 = vpop.eup %7439  ;;  %7459 = vrcp.f32 %v5648_v18  ;;  %v3789_v27 = vmul.f32 %v7438_v9, %v9177_v60 }
 0x4d1   : > { %v7442_v40 = vpop.eup %7441  ;;  %7461 = vrcp.f32 %v5646_v58  ;;  %v3792_v34 = vmul.f32 %v7440_v46, %v9179_v19 }
 0x4d2   : > { %v7444_v44 = vpop.eup %7443  ;;  %7463 = vrcp.f32 %v3772_v32  ;;  %v3790_v20 = vmul.f32 %v7442_v40, %v9181_v6  ;;  %v3797_v60 = vadd.f32 %v3789_v27, %v7920_v41 }
 0x4d3   : > { %v7446_v59 = vpop.eup %7445  ;;  %7465 = vrcp.f32 %v3770_v15  ;;  %v3800_v2 = vadd.f32 %v3792_v34, %v7924_v52  ;;  %v3795_v29 = vmul.f32 %v7444_v44, %v9183_v62 }
 0x4d4   : > { %v7448_v43 = vpop.eup %7447  ;;  %v5651_v49 = vadd.f32 1.0, %v7446_v59  ;;  %v3798_v41 = vadd.f32 %v3790_v20, %v7928_v35 }
 0x4d5   : > { %v7450_v61 = vpop.eup %7449  ;;  %v5649_v0 = vadd.f32 1.0, %v7448_v43 }
 0x4d6   : > { %v7452_v33 = vpop.eup %7451  ;;  %7467 = vrcp.f32 %v5651_v49  ;;  %v5652_v47 = vadd.f32 1.0, %v7450_v61 }
 0x4d7   : > { %v7454_v8 = vpop.eup %7453  ;;  %7469 = vrcp.f32 %v5649_v0  ;;  %v5650_v24 = vadd.f32 1.0, %v7452_v33 }
 0x4d8   : > { %v7456_v50 = vpop.eup %7455  ;;  %7471 = vrcp.f32 %v5652_v47  ;;  %v3793_v48 = vmul.f32 %v7454_v8, %v9189_v36 }
 0x4d9   : > { %v7458_v5 = vpop.eup %7457  ;;  %v5671_v7 = vmul.f32 %v7456_v50, %v9201_v30  ;;  %7473 = vrcp.f32 %v5650_v24 }
 0x4da   : > { %v7460_v39 = vpop.eup %7459  ;;  %v5669_v19 = vmul.f32 %v7458_v5, %v9203_v13  ;;  %v3801_v17 = vadd.f32 %v3793_v48, %v7939_v56 }
 0x4db   : > { %v7462_v6 = vpop.eup %7461  ;;  %v5679_v45 = vadd.f32 %v5671_v7, %v3799_v37  ;;  %v5672_v30 = vmul.f32 %v7460_v39, %v9206_v57 }
 0x4dc   : > { %v7464_v3 = vpop.eup %7463  ;;  %v5677_v42 = vadd.f32 %v5669_v19, %v3797_v60  ;;  %v5670_v11 = vmul.f32 %v7462_v6, %v9209_v22  ;;  %v3803_v22 = vadd.f32 %v3795_v29, %v7937_v38 }
 0x4dd   : > { %v7466_v54 = vpop.eup %7465  ;;  %5687 = vst.msk [vmem:[%s9236_s10 + $0x10] sm:$0xff] %vm1481_vm5, %v5679_v45  ;;  %v5680_v13 = vadd.f32 %v5672_v30, %v3800_v2  ;;  %v3796_v57 = vmul.f32 %v7464_v3, %v9191_v4 }
 0x4de   : > { %5685 = vst.msk [vmem:[%s9236_s10] sm:$0xff] %vm1481_vm5, %v5677_v42  ;;  %v5678_v52 = vadd.f32 %v5670_v11, %v3798_v41  ;;  %v3794_v35 = vmul.f32 %v7466_v54, %v9193_v51 }
 0x4df   : > { %5688 = vst.msk [vmem:[%s9236_s10 + $0x18] sm:$0xff] %vm1481_vm5, %v5680_v13  ;;  %v3804_v55 = vadd.f32 %v3796_v57, %v7945_v14 }
 0x4e0   : > { %v7468_v25 = vpop.eup %7467  ;;  %5686 = vst.msk [vmem:[%s9236_s10 + $0x8] sm:$0xff] %vm1481_vm5, %v5678_v52  ;;  %v3802_v16 = vadd.f32 %v3794_v35, %v7957_v31 }
 0x4e1   : > { %v7470_v62 = vpop.eup %7469  ;;  %v5675_v36 = vmul.f32 %v7468_v25, %v9213_v26 }
 0x4e2   : > { %v7472_v28 = vpop.eup %7471  ;;  %v5673_v4 = vmul.f32 %v7470_v62, %v9215_v63 }
 0x4e3   : > { %v7474_v12 = vpop.eup %7473  ;;  %v5683_v1 = vadd.f32 %v5675_v36, %v3803_v22  ;;  %v5676_v51 = vmul.f32 %v7472_v28, %v9218_v53 }
 0x4e4   : > { %v5681_v21 = vadd.f32 %v5673_v4, %v3801_v17  ;;  %v5674_v38 = vmul.f32 %v7474_v12, %v9221_v23 }
 0x4e5   : > { %5691 = vst.msk [vmem:[%s9236_s10 + $0x30] sm:$0xff] %vm1481_vm5, %v5683_v1  ;;  %v5684_v26 = vadd.f32 %v5676_v51, %v3804_v55 }
 0x4e6   : > { %5689 = vst.msk [vmem:[%s9236_s10 + $0x20] sm:$0xff] %vm1481_vm5, %v5681_v21  ;;  %v5682_v32 = vadd.f32 %v5674_v38, %v3802_v16 }
 0x4e7   : > { %5692 = vst.msk [vmem:[%s9236_s10 + $0x38] sm:$0xff] %vm1481_vm5, %v5684_v26 }
 0x4e8   : > { %5690 = vst.msk [vmem:[%s9236_s10 + $0x28] sm:$0xff] %vm1481_vm5, %v5682_v32 }
 0x4e9 PF: > { %s15_s18 = sadd.s32 1, %s7481_s18  }
 0x4ea   : > { %p12_p4 = scmp.ge.s32.totalorder %s15_s18, 4  }
 0x4ec   :  { %14 = sbr.rel (!%p12_p4) target bundleno = 1 (0x1), region = 72 }

</bundles_post_ra>
